<compile_context>
chip_gen: v5e
topology: v5e:2x2
jax: 0.10.0
libtpu: 0.0.40
codegen_flags: <defaults>
</compile_context>

<pallas_src>
import string

import jax
import jax.numpy as jnp
import numpy as np
from jax.experimental import pallas as pl
from jax.experimental.pallas import tpu as pltpu

# ----------------------------- hyperparameters -------------------------------
n_embd = 100
sqrt_d = 10                      # int(sqrt(n_embd))
n_head = sqrt_d // 5             # 2
head_size = sqrt_d // n_head     # 5   (n_head * head_size == sqrt_d)
block_size = 8
batch_size = 2
n_layer = 2
dropout = 0.0                    # eval mode -> dropout is identity
EPS = 1e-5

D_ATT = sqrt_d * block_size      # 80  : flat (T, sqrt_d) per-batch width
D_EMB = n_embd * block_size      # 800 : flat (T, n_embd) per-batch width

# ----------------------------- vocab (built in-script) -----------------------
def preprocess_text(text):
    translator = str.maketrans('', '', string.punctuation)
    text = text.translate(translator)
    text = text.lower()
    return text

_TEXT = ("The quick brown fox jumps over the lazy dog. "
         "A journey of a thousand miles begins with a single step! "
         "To be or not to be, that is the question; "
         "All that glitters is not gold.")
_TEXT = preprocess_text(_TEXT)
words = sorted(list(set(_TEXT.split(' '))))
stoi = {wd: i for i, wd in enumerate(words)}
encode = lambda word_list: [stoi[word] for word in word_list]
vocab_size = len(words)

VP = max(16, ((vocab_size + 15) // 16) * 16)   # padded per-step vocab width (8*VP % 128 == 0)


# ----------------------------- fused Pallas kernel ----------------------------
def fused_forward_kernel(x_ref, a_ref, c_ref, p_ref, bb_ref, gf_ref, bf_ref,
                         wlm_ref, blm_ref,
                         f_ref, g_ref, wk_ref, wq_ref, wv_ref, wp_ref, bp_ref,
                         g1_ref, b1_ref, g2_ref, b2_ref,
                         w1_ref, c1_ref, w2_ref, c2_ref, out_ref):
    dot = lambda a, b: jnp.dot(a, b, preferred_element_type=jnp.float32)

    x = x_ref[...]           # (B, D_EMB)  flat contiguous activation buffer
    A = a_ref[...]           # (D_ATT, D_ATT) per-time-step group averaging (LN mean/var)
    C = c_ref[...]           # (D_ATT, D_ATT) per-channel sum over T, broadcast back over T

    for l in range(n_layer):                       # static unroll (n_layer = 2)
        # Feebler + flat .view(): (B, 800) @ (800, 80) -> (B, 80)
        xa = dot(x, f_ref[l])

        # LayerNorm 1 (over the sqrt_d channels of each time step)
        mu = dot(xa, A)
        xc = xa - mu
        var = dot(xc * xc, A)
        h = xc * jax.lax.rsqrt(var + EPS) * g1_ref[l] + b1_ref[l]

        # QuickHead multi-head attention (channel-wise; heads concatenated in weights)
        k = dot(h, wk_ref[l])
        q = dot(h, wq_ref[l])
        v = dot(h, wv_ref[l])
        qk = q * dot(k, C)                          # q * collective_k (broadcast over T)
        m = jnp.max(qk, axis=-1, keepdims=True)     # per-row shift: softmax-over-T invariant
        e = jnp.exp(qk - m)
        attw = e / dot(e, C)                        # softmax over T, per channel, per batch
        head = dot(v, C) * attw                     # collective_v * attention_weights
        sa = dot(head, wp_ref[l]) + bp_ref[l]       # proj (dropout = identity)
        x1 = xa + sa                                # residual

        # LayerNorm 2 + FeedForward
        mu2 = dot(x1, A)
        xc2 = x1 - mu2
        var2 = dot(xc2 * xc2, A)
        h2 = xc2 * jax.lax.rsqrt(var2 + EPS) * g2_ref[l] + b2_ref[l]
        ff = jnp.maximum(dot(h2, w1_ref[l]) + c1_ref[l], 0.0)
        ff = dot(ff, w2_ref[l]) + c2_ref[l]
        x2 = x1 + ff                                # residual

        # Booster + flat .view(): (B, 80) @ (80, 800) -> (B, 800)
        x = dot(x2, g_ref[l])

    # Final LayerNorm (over n_embd channels of each time step) + lm_head (vocab padded to VP)
    P = p_ref[...]            # (D_EMB, T)   group-mean (1/n_embd entries)
    Bc = bb_ref[...]          # (T, D_EMB)   broadcast back
    muf = dot(dot(x, P), Bc)
    xcf = x - muf
    varf = dot(dot(xcf * xcf, P), Bc)
    hf = xcf * jax.lax.rsqrt(varf + EPS) * gf_ref[...] + bf_ref[...]
    out_ref[...] = dot(hf, wlm_ref[...]) + blm_ref[...]        # (B, T*VP)


# ----------------------------- derived-matrix preparation ---------------------
def prepare_fused(params):
    """Fold the flat .view() reinterpretations and per-time-step Linears/LayerNorms into
    block-structured matrices so the fused kernel needs no reshapes / batch loops."""
    f32 = jnp.float32
    eyeT = jnp.eye(block_size, dtype=f32)

    # static index maps of the flat .view() reinterpretations
    ii, jj, ss = np.meshgrid(np.arange(sqrt_d), np.arange(sqrt_d),
                             np.arange(block_size), indexing="ij")
    n_idx = (ii * sqrt_d * block_size + jj * block_size + ss).ravel()   # i*80 + j*8 + s
    m_idx = (ii * block_size + ss).ravel()                              # i*8  + s
    q_idx = (jj * block_size + ss).ravel()                              # j*8  + s

    grp10 = np.arange(D_ATT) // sqrt_d
    A80 = jnp.asarray((grp10[:, None] == grp10[None, :]).astype(np.float32) / sqrt_d)
    ch10 = np.arange(D_ATT) % sqrt_d
    C80 = jnp.asarray((ch10[:, None] == ch10[None, :]).astype(np.float32))
    grp100 = np.arange(D_EMB) // n_embd
    P800 = jnp.asarray((grp100[:, None] == np.arange(block_size)[None, :])
                       .astype(np.float32) / n_embd)
    B800 = jnp.asarray((np.arange(block_size)[:, None] == grp100[None, :])
                       .astype(np.float32))

    gF = jnp.tile(params["lnf_g"], (1, block_size))                     # (1, 800)
    bF = jnp.tile(params["lnf_b"], (1, block_size))
    wpad = jnp.zeros((n_embd, VP), f32).at[:, :vocab_size].set(params["lm_w_t"])
    WLM = jnp.kron(eyeT, wpad)                                          # (800, 8*VP)
    bpad = jnp.zeros((1, VP), f32).at[:, :vocab_size].set(params["lm_b"])
    bLM = jnp.tile(bpad, (1, block_size))                               # (1, 8*VP)

    F_l, G_l, Wk_l, Wq_l, Wv_l, Wp_l = [], [], [], [], [], []
    bp_l, g1_l, b1_l, g2_l, b2_l = [], [], [], [], []
    W1_l, c1_l, W2_l, c2_l = [], [], [], []
    for lp in params["layers"]:
        F_l.append(jnp.zeros((D_EMB, D_ATT), f32)
                   .at[n_idx, m_idx].set(lp["feebler_w"].reshape(-1)))
        G_l.append(jnp.zeros((D_ATT, D_EMB), f32)
                   .at[q_idx, n_idx].set(lp["booster_w"].reshape(-1)))
        Wk_l.append(jnp.kron(eyeT, lp["wk_t"]))
        Wq_l.append(jnp.kron(eyeT, lp["wq_t"]))
        Wv_l.append(jnp.kron(eyeT, lp["wv_t"]))
        Wp_l.append(jnp.kron(eyeT, lp["wp_t"]))
        bp_l.append(jnp.tile(lp["bp"], (1, block_size)))
        g1_l.append(jnp.tile(lp["ln1_g"], (1, block_size)))
        b1_l.append(jnp.tile(lp["ln1_b"], (1, block_size)))
        g2_l.append(jnp.tile(lp["ln2_g"], (1, block_size)))
        b2_l.append(jnp.tile(lp["ln2_b"], (1, block_size)))
        W1_l.append(jnp.kron(eyeT, lp["w1_t"]))
        c1_l.append(jnp.tile(lp["b1"], (1, block_size)))
        W2_l.append(jnp.kron(eyeT, lp["w2_t"]))
        c2_l.append(jnp.tile(lp["b2"], (1, block_size)))

    stack = lambda xs: jnp.stack(xs, axis=0)
    return [A80, C80, P800, B800, gF, bF, WLM, bLM,
            stack(F_l), stack(G_l), stack(Wk_l), stack(Wq_l), stack(Wv_l),
            stack(Wp_l), stack(bp_l), stack(g1_l), stack(b1_l), stack(g2_l),
            stack(b2_l), stack(W1_l), stack(c1_l), stack(W2_l), stack(c2_l)]


# ----------------------------- model forward ---------------------------------
def forward(params, fused, idx, targets=None):
    B, T = idx.shape
    assert T == block_size, "flat .view() reinterpretation requires T == block_size (as in torch)"
    tok = jnp.take(params["tok_emb"], idx, axis=0)               # (B, T, n_embd)  XLA gather
    x = tok + params["pos_emb"][:T][None]
    x_flat = x.reshape(B, T * n_embd)                            # contiguous .view() buffer

    args = (x_flat,) + tuple(fused)
    flops = 2 * B * (n_layer * (2 * D_EMB * D_ATT + 19 * D_ATT * D_ATT)
                     + 4 * D_EMB * block_size + D_EMB * block_size * VP)
    transcendentals = B * (n_layer * 3 * D_ATT + D_EMB)
    bytes_accessed = sum(int(a.size) * 4 for a in args) + B * block_size * VP * 4
    cost = pl.CostEstimate(flops=int(flops), transcendentals=int(transcendentals),
                           bytes_accessed=int(bytes_accessed))

    out = pl.pallas_call(
        fused_forward_kernel,
        out_shape=jax.ShapeDtypeStruct((B, block_size * VP), jnp.float32),
        in_specs=[pl.BlockSpec(memory_space=pltpu.MemorySpace.VMEM)] * len(args),
        out_specs=pl.BlockSpec(memory_space=pltpu.MemorySpace.VMEM),
        cost_estimate=cost,
    )(*args)

    logits = out.reshape(B, block_size, VP)[:, :, :vocab_size]   # drop lane padding
    if targets is None:
        loss = None
    else:
        lg = logits.reshape(B * T, vocab_size)
        tg = targets.reshape(B * T)
        loss = -jnp.mean(jax.nn.log_softmax(lg, axis=-1)[jnp.arange(B * T), tg])
    return logits, loss
    # TODO(synk): generate() uses torch.multinomial sampling; no Pallas equivalent implemented.


# ----------------------------- pure-JAX reference ----------------------------
def _ln(x, g, b):
    mu = jnp.mean(x, axis=-1, keepdims=True)
    var = jnp.mean((x - mu) ** 2, axis=-1, keepdims=True)
    return (x - mu) * jax.lax.rsqrt(var + EPS) * g + b


def forward_ref(params, idx):
    B, T = idx.shape
    x = jnp.take(params["tok_emb"], idx, axis=0) + params["pos_emb"][:T][None]
    x4 = x.reshape(B, sqrt_d, sqrt_d, block_size)
    for lp in params["layers"]:
        u = jnp.sum(x4 * lp["feebler_w"][None], axis=2)
        xa = u.reshape(B, block_size, sqrt_d)
        h = _ln(xa, lp["ln1_g"], lp["ln1_b"])
        k = h @ lp["wk_t"]; q = h @ lp["wq_t"]; v = h @ lp["wv_t"]
        qk = q * jnp.sum(k, axis=1, keepdims=True)
        attw = jax.nn.softmax(qk, axis=1)
        sa = (jnp.sum(v, axis=1, keepdims=True) * attw) @ lp["wp_t"] + lp["bp"]
        x1 = xa + sa
        h2 = _ln(x1, lp["ln2_g"], lp["ln2_b"])
        ff = jnp.maximum(h2 @ lp["w1_t"] + lp["b1"], 0.0) @ lp["w2_t"] + lp["b2"]
        xa = x1 + ff
        ub = xa.reshape(B, sqrt_d, block_size)
        x4 = lp["booster_w"][None] * ub[:, None, :, :]
    xf = x4.reshape(B, block_size, n_embd)
    return _ln(xf, params["lnf_g"], params["lnf_b"]) @ params["lm_w_t"] + params["lm_b"]


# ----------------------------- parameter init --------------------------------
def init_params(key):
    ks = iter(jax.random.split(key, 8 + 16 * n_layer))

    def nrm(shape, scale=1.0):
        return (scale * jax.random.normal(next(ks), shape)).astype(jnp.float32)

    params = {
        "tok_emb": nrm((vocab_size, n_embd)),
        "pos_emb": nrm((block_size, n_embd)),
        "lnf_g": jnp.ones((1, n_embd), jnp.float32),
        "lnf_b": jnp.zeros((1, n_embd), jnp.float32),
        "lm_w_t": nrm((n_embd, vocab_size), 0.02),
        "lm_b": jnp.zeros((1, vocab_size), jnp.float32),
        "layers": [],
    }
    for _ in range(n_layer):
        lp = {
            "feebler_w": nrm((sqrt_d, sqrt_d, block_size)),       # torch.randn init
            "booster_w": nrm((sqrt_d, sqrt_d, block_size)),
            "ln1_g": jnp.ones((1, sqrt_d), jnp.float32),
            "ln1_b": jnp.zeros((1, sqrt_d), jnp.float32),
            "ln2_g": jnp.ones((1, sqrt_d), jnp.float32),
            "ln2_b": jnp.zeros((1, sqrt_d), jnp.float32),
            # per-head key/query/value Linears concatenated, stored pre-transposed (in, out)
            "wk_t": nrm((sqrt_d, sqrt_d), 0.3),
            "wq_t": nrm((sqrt_d, sqrt_d), 0.3),
            "wv_t": nrm((sqrt_d, sqrt_d), 0.3),
            "wp_t": nrm((sqrt_d, sqrt_d), 0.3),
            "bp": jnp.zeros((1, sqrt_d), jnp.float32),
            "w1_t": nrm((sqrt_d, 4 * sqrt_d), 0.3),
            "b1": jnp.zeros((1, 4 * sqrt_d), jnp.float32),
            "w2_t": nrm((4 * sqrt_d, sqrt_d), 0.3),
            "b2": jnp.zeros((1, sqrt_d), jnp.float32),
        }
        params["layers"].append(lp)
    return params


# ----------------------------- main -------------------------------------------
if __name__ == "__main__":
    key = jax.random.PRNGKey(0)
    params = init_params(key)
    fused = prepare_fused(params)          # derived matrices built once, outside the kernel

    data = np.array(encode(_TEXT.split(' ')), dtype=np.int32)
    idx = jnp.asarray(data[: batch_size * block_size].reshape(batch_size, block_size))

    logits, loss = forward(params, fused, idx, targets=None)
    logits = jax.block_until_ready(logits)

    with jax.default_matmul_precision("float32"):
        ref = forward_ref(params, idx)
    ref = jax.block_until_ready(ref)

    np.testing.assert_allclose(np.asarray(logits), np.asarray(ref), rtol=2e-3, atol=2e-3)
    assert logits.shape == (batch_size, block_size, vocab_size)
    assert loss is None

    print("KERNEL_OK")
</pallas_src>

<mosaic_0001>
module attributes {stable_mosaic.version = 11 : i64} {
  func.func @fused_forward_kernel(%arg0: memref<2x800xf32, #tpu.memory_space<vmem>>, %arg1: memref<80x80xf32, #tpu.memory_space<vmem>>, %arg2: memref<80x80xf32, #tpu.memory_space<vmem>>, %arg3: memref<800x8xf32, #tpu.memory_space<vmem>>, %arg4: memref<8x800xf32, #tpu.memory_space<vmem>>, %arg5: memref<1x800xf32, #tpu.memory_space<vmem>>, %arg6: memref<1x800xf32, #tpu.memory_space<vmem>>, %arg7: memref<800x256xf32, #tpu.memory_space<vmem>>, %arg8: memref<1x256xf32, #tpu.memory_space<vmem>>, %arg9: memref<2x800x80xf32, #tpu.memory_space<vmem>>, %arg10: memref<2x80x800xf32, #tpu.memory_space<vmem>>, %arg11: memref<2x80x80xf32, #tpu.memory_space<vmem>>, %arg12: memref<2x80x80xf32, #tpu.memory_space<vmem>>, %arg13: memref<2x80x80xf32, #tpu.memory_space<vmem>>, %arg14: memref<2x80x80xf32, #tpu.memory_space<vmem>>, %arg15: memref<2x1x80xf32, #tpu.memory_space<vmem>>, %arg16: memref<2x1x80xf32, #tpu.memory_space<vmem>>, %arg17: memref<2x1x80xf32, #tpu.memory_space<vmem>>, %arg18: memref<2x1x80xf32, #tpu.memory_space<vmem>>, %arg19: memref<2x1x80xf32, #tpu.memory_space<vmem>>, %arg20: memref<2x80x320xf32, #tpu.memory_space<vmem>>, %arg21: memref<2x1x320xf32, #tpu.memory_space<vmem>>, %arg22: memref<2x320x80xf32, #tpu.memory_space<vmem>>, %arg23: memref<2x1x80xf32, #tpu.memory_space<vmem>>, %arg24: memref<2x256xf32, #tpu.memory_space<vmem>>) attributes {dimension_semantics = [], scalar_prefetch = 0 : i64, scratch_operands = 0 : i64, tpu.core_type = #tpu.core_type<tc>} {
    %c0 = arith.constant 0 : index
    %c0_0 = arith.constant 0 : index
    %0 = vector.load %arg0[%c0, %c0_0] : memref<2x800xf32, #tpu.memory_space<vmem>>, vector<2x800xf32>
    %c0_1 = arith.constant 0 : index
    %c0_2 = arith.constant 0 : index
    %1 = vector.load %arg1[%c0_1, %c0_2] : memref<80x80xf32, #tpu.memory_space<vmem>>, vector<80x80xf32>
    %c0_3 = arith.constant 0 : index
    %c0_4 = arith.constant 0 : index
    %2 = vector.load %arg2[%c0_3, %c0_4] : memref<80x80xf32, #tpu.memory_space<vmem>>, vector<80x80xf32>
    %c0_5 = arith.constant 0 : index
    %c0_6 = arith.constant 0 : index
    %c0_7 = arith.constant 0 : index
    %3 = vector.load %arg9[%c0_5, %c0_6, %c0_7] : memref<2x800x80xf32, #tpu.memory_space<vmem>>, vector<1x800x80xf32>
    %4 = vector.shape_cast %3 : vector<1x800x80xf32> to vector<800x80xf32>
    %cst = arith.constant dense<0.000000e+00> : vector<2x80xf32>
    %5 = tpu.matmul %0, %4, %cst {dimension_numbers = #tpu.dot_dimension_numbers<[1], [0], [0], [1], [0, 0, 1, 1], [], []>} : vector<2x800xf32>, vector<800x80xf32>, vector<2x80xf32> -> vector<2x80xf32>
    %cst_8 = arith.constant dense<0.000000e+00> : vector<2x80xf32>
    %6 = tpu.matmul %5, %1, %cst_8 {dimension_numbers = #tpu.dot_dimension_numbers<[1], [0], [0], [1], [0, 0, 1, 1], [], []>} : vector<2x80xf32>, vector<80x80xf32>, vector<2x80xf32> -> vector<2x80xf32>
    %7 = arith.subf %5, %6 : vector<2x80xf32>
    %8 = arith.mulf %7, %7 : vector<2x80xf32>
    %cst_9 = arith.constant dense<0.000000e+00> : vector<2x80xf32>
    %9 = tpu.matmul %8, %1, %cst_9 {dimension_numbers = #tpu.dot_dimension_numbers<[1], [0], [0], [1], [0, 0, 1, 1], [], []>} : vector<2x80xf32>, vector<80x80xf32>, vector<2x80xf32> -> vector<2x80xf32>
    %cst_10 = arith.constant 9.99999974E-6 : f32
    %10 = vector.broadcast %cst_10 : f32 to vector<2x80xf32>
    %11 = arith.addf %9, %10 : vector<2x80xf32>
    %12 = math.rsqrt %11 : vector<2x80xf32>
    %13 = arith.mulf %7, %12 : vector<2x80xf32>
    %c0_11 = arith.constant 0 : index
    %c0_12 = arith.constant 0 : index
    %c0_13 = arith.constant 0 : index
    %14 = vector.load %arg16[%c0_11, %c0_12, %c0_13] : memref<2x1x80xf32, #tpu.memory_space<vmem>>, vector<1x1x80xf32>
    %15 = vector.shape_cast %14 : vector<1x1x80xf32> to vector<1x80xf32>
    %16 = vector.broadcast %15 : vector<1x80xf32> to vector<2x80xf32>
    %17 = arith.mulf %13, %16 : vector<2x80xf32>
    %c0_14 = arith.constant 0 : index
    %c0_15 = arith.constant 0 : index
    %c0_16 = arith.constant 0 : index
    %18 = vector.load %arg17[%c0_14, %c0_15, %c0_16] : memref<2x1x80xf32, #tpu.memory_space<vmem>>, vector<1x1x80xf32>
    %19 = vector.shape_cast %18 : vector<1x1x80xf32> to vector<1x80xf32>
    %20 = vector.broadcast %19 : vector<1x80xf32> to vector<2x80xf32>
    %21 = arith.addf %17, %20 : vector<2x80xf32>
    %c0_17 = arith.constant 0 : index
    %c0_18 = arith.constant 0 : index
    %c0_19 = arith.constant 0 : index
    %22 = vector.load %arg11[%c0_17, %c0_18, %c0_19] : memref<2x80x80xf32, #tpu.memory_space<vmem>>, vector<1x80x80xf32>
    %23 = vector.shape_cast %22 : vector<1x80x80xf32> to vector<80x80xf32>
    %cst_20 = arith.constant dense<0.000000e+00> : vector<2x80xf32>
    %24 = tpu.matmul %21, %23, %cst_20 {dimension_numbers = #tpu.dot_dimension_numbers<[1], [0], [0], [1], [0, 0, 1, 1], [], []>} : vector<2x80xf32>, vector<80x80xf32>, vector<2x80xf32> -> vector<2x80xf32>
    %c0_21 = arith.constant 0 : index
    %c0_22 = arith.constant 0 : index
    %c0_23 = arith.constant 0 : index
    %25 = vector.load %arg12[%c0_21, %c0_22, %c0_23] : memref<2x80x80xf32, #tpu.memory_space<vmem>>, vector<1x80x80xf32>
    %26 = vector.shape_cast %25 : vector<1x80x80xf32> to vector<80x80xf32>
    %cst_24 = arith.constant dense<0.000000e+00> : vector<2x80xf32>
    %27 = tpu.matmul %21, %26, %cst_24 {dimension_numbers = #tpu.dot_dimension_numbers<[1], [0], [0], [1], [0, 0, 1, 1], [], []>} : vector<2x80xf32>, vector<80x80xf32>, vector<2x80xf32> -> vector<2x80xf32>
    %c0_25 = arith.constant 0 : index
    %c0_26 = arith.constant 0 : index
    %c0_27 = arith.constant 0 : index
    %28 = vector.load %arg13[%c0_25, %c0_26, %c0_27] : memref<2x80x80xf32, #tpu.memory_space<vmem>>, vector<1x80x80xf32>
    %29 = vector.shape_cast %28 : vector<1x80x80xf32> to vector<80x80xf32>
    %cst_28 = arith.constant dense<0.000000e+00> : vector<2x80xf32>
    %30 = tpu.matmul %21, %29, %cst_28 {dimension_numbers = #tpu.dot_dimension_numbers<[1], [0], [0], [1], [0, 0, 1, 1], [], []>} : vector<2x80xf32>, vector<80x80xf32>, vector<2x80xf32> -> vector<2x80xf32>
    %cst_29 = arith.constant dense<0.000000e+00> : vector<2x80xf32>
    %31 = tpu.matmul %24, %2, %cst_29 {dimension_numbers = #tpu.dot_dimension_numbers<[1], [0], [0], [1], [0, 0, 1, 1], [], []>} : vector<2x80xf32>, vector<80x80xf32>, vector<2x80xf32> -> vector<2x80xf32>
    %32 = arith.mulf %27, %31 : vector<2x80xf32>
    %cst_30 = arith.constant dense<0xFF800000> : vector<2xf32>
    %33 = vector.multi_reduction <maximumf>, %32, %cst_30 [1] : vector<2x80xf32> to vector<2xf32>
    %34 = vector.shape_cast %33 : vector<2xf32> to vector<2x1xf32>
    %35 = vector.broadcast %34 : vector<2x1xf32> to vector<2x80xf32>
    %36 = arith.subf %32, %35 : vector<2x80xf32>
    %37 = math.exp %36 : vector<2x80xf32>
    %cst_31 = arith.constant dense<0.000000e+00> : vector<2x80xf32>
    %38 = tpu.matmul %37, %2, %cst_31 {dimension_numbers = #tpu.dot_dimension_numbers<[1], [0], [0], [1], [0, 0, 1, 1], [], []>} : vector<2x80xf32>, vector<80x80xf32>, vector<2x80xf32> -> vector<2x80xf32>
    %39 = arith.divf %37, %38 : vector<2x80xf32>
    %cst_32 = arith.constant dense<0.000000e+00> : vector<2x80xf32>
    %40 = tpu.matmul %30, %2, %cst_32 {dimension_numbers = #tpu.dot_dimension_numbers<[1], [0], [0], [1], [0, 0, 1, 1], [], []>} : vector<2x80xf32>, vector<80x80xf32>, vector<2x80xf32> -> vector<2x80xf32>
    %41 = arith.mulf %40, %39 : vector<2x80xf32>
    %c0_33 = arith.constant 0 : index
    %c0_34 = arith.constant 0 : index
    %c0_35 = arith.constant 0 : index
    %42 = vector.load %arg14[%c0_33, %c0_34, %c0_35] : memref<2x80x80xf32, #tpu.memory_space<vmem>>, vector<1x80x80xf32>
    %43 = vector.shape_cast %42 : vector<1x80x80xf32> to vector<80x80xf32>
    %cst_36 = arith.constant dense<0.000000e+00> : vector<2x80xf32>
    %44 = tpu.matmul %41, %43, %cst_36 {dimension_numbers = #tpu.dot_dimension_numbers<[1], [0], [0], [1], [0, 0, 1, 1], [], []>} : vector<2x80xf32>, vector<80x80xf32>, vector<2x80xf32> -> vector<2x80xf32>
    %c0_37 = arith.constant 0 : index
    %c0_38 = arith.constant 0 : index
    %c0_39 = arith.constant 0 : index
    %45 = vector.load %arg15[%c0_37, %c0_38, %c0_39] : memref<2x1x80xf32, #tpu.memory_space<vmem>>, vector<1x1x80xf32>
    %46 = vector.shape_cast %45 : vector<1x1x80xf32> to vector<1x80xf32>
    %47 = vector.broadcast %46 : vector<1x80xf32> to vector<2x80xf32>
    %48 = arith.addf %44, %47 : vector<2x80xf32>
    %49 = arith.addf %5, %48 : vector<2x80xf32>
    %cst_40 = arith.constant dense<0.000000e+00> : vector<2x80xf32>
    %50 = tpu.matmul %49, %1, %cst_40 {dimension_numbers = #tpu.dot_dimension_numbers<[1], [0], [0], [1], [0, 0, 1, 1], [], []>} : vector<2x80xf32>, vector<80x80xf32>, vector<2x80xf32> -> vector<2x80xf32>
    %51 = arith.subf %49, %50 : vector<2x80xf32>
    %52 = arith.mulf %51, %51 : vector<2x80xf32>
    %cst_41 = arith.constant dense<0.000000e+00> : vector<2x80xf32>
    %53 = tpu.matmul %52, %1, %cst_41 {dimension_numbers = #tpu.dot_dimension_numbers<[1], [0], [0], [1], [0, 0, 1, 1], [], []>} : vector<2x80xf32>, vector<80x80xf32>, vector<2x80xf32> -> vector<2x80xf32>
    %cst_42 = arith.constant 9.99999974E-6 : f32
    %54 = vector.broadcast %cst_42 : f32 to vector<2x80xf32>
    %55 = arith.addf %53, %54 : vector<2x80xf32>
    %56 = math.rsqrt %55 : vector<2x80xf32>
    %57 = arith.mulf %51, %56 : vector<2x80xf32>
    %c0_43 = arith.constant 0 : index
    %c0_44 = arith.constant 0 : index
    %c0_45 = arith.constant 0 : index
    %58 = vector.load %arg18[%c0_43, %c0_44, %c0_45] : memref<2x1x80xf32, #tpu.memory_space<vmem>>, vector<1x1x80xf32>
    %59 = vector.shape_cast %58 : vector<1x1x80xf32> to vector<1x80xf32>
    %60 = vector.broadcast %59 : vector<1x80xf32> to vector<2x80xf32>
    %61 = arith.mulf %57, %60 : vector<2x80xf32>
    %c0_46 = arith.constant 0 : index
    %c0_47 = arith.constant 0 : index
    %c0_48 = arith.constant 0 : index
    %62 = vector.load %arg19[%c0_46, %c0_47, %c0_48] : memref<2x1x80xf32, #tpu.memory_space<vmem>>, vector<1x1x80xf32>
    %63 = vector.shape_cast %62 : vector<1x1x80xf32> to vector<1x80xf32>
    %64 = vector.broadcast %63 : vector<1x80xf32> to vector<2x80xf32>
    %65 = arith.addf %61, %64 : vector<2x80xf32>
    %c0_49 = arith.constant 0 : index
    %c0_50 = arith.constant 0 : index
    %c0_51 = arith.constant 0 : index
    %66 = vector.load %arg20[%c0_49, %c0_50, %c0_51] : memref<2x80x320xf32, #tpu.memory_space<vmem>>, vector<1x80x320xf32>
    %67 = vector.shape_cast %66 : vector<1x80x320xf32> to vector<80x320xf32>
    %cst_52 = arith.constant dense<0.000000e+00> : vector<2x320xf32>
    %68 = tpu.matmul %65, %67, %cst_52 {dimension_numbers = #tpu.dot_dimension_numbers<[1], [0], [0], [1], [0, 0, 1, 1], [], []>} : vector<2x80xf32>, vector<80x320xf32>, vector<2x320xf32> -> vector<2x320xf32>
    %c0_53 = arith.constant 0 : index
    %c0_54 = arith.constant 0 : index
    %c0_55 = arith.constant 0 : index
    %69 = vector.load %arg21[%c0_53, %c0_54, %c0_55] : memref<2x1x320xf32, #tpu.memory_space<vmem>>, vector<1x1x320xf32>
    %70 = vector.shape_cast %69 : vector<1x1x320xf32> to vector<1x320xf32>
    %71 = vector.broadcast %70 : vector<1x320xf32> to vector<2x320xf32>
    %72 = arith.addf %68, %71 : vector<2x320xf32>
    %cst_56 = arith.constant 0.000000e+00 : f32
    %73 = vector.broadcast %cst_56 : f32 to vector<2x320xf32>
    %74 = arith.maximumf %72, %73 : vector<2x320xf32>
    %c0_57 = arith.constant 0 : index
    %c0_58 = arith.constant 0 : index
    %c0_59 = arith.constant 0 : index
    %75 = vector.load %arg22[%c0_57, %c0_58, %c0_59] : memref<2x320x80xf32, #tpu.memory_space<vmem>>, vector<1x320x80xf32>
    %76 = vector.shape_cast %75 : vector<1x320x80xf32> to vector<320x80xf32>
    %cst_60 = arith.constant dense<0.000000e+00> : vector<2x80xf32>
    %77 = tpu.matmul %74, %76, %cst_60 {dimension_numbers = #tpu.dot_dimension_numbers<[1], [0], [0], [1], [0, 0, 1, 1], [], []>} : vector<2x320xf32>, vector<320x80xf32>, vector<2x80xf32> -> vector<2x80xf32>
    %c0_61 = arith.constant 0 : index
    %c0_62 = arith.constant 0 : index
    %c0_63 = arith.constant 0 : index
    %78 = vector.load %arg23[%c0_61, %c0_62, %c0_63] : memref<2x1x80xf32, #tpu.memory_space<vmem>>, vector<1x1x80xf32>
    %79 = vector.shape_cast %78 : vector<1x1x80xf32> to vector<1x80xf32>
    %80 = vector.broadcast %79 : vector<1x80xf32> to vector<2x80xf32>
    %81 = arith.addf %77, %80 : vector<2x80xf32>
    %82 = arith.addf %49, %81 : vector<2x80xf32>
    %c0_64 = arith.constant 0 : index
    %c0_65 = arith.constant 0 : index
    %c0_66 = arith.constant 0 : index
    %83 = vector.load %arg10[%c0_64, %c0_65, %c0_66] : memref<2x80x800xf32, #tpu.memory_space<vmem>>, vector<1x80x800xf32>
    %84 = vector.shape_cast %83 : vector<1x80x800xf32> to vector<80x800xf32>
    %cst_67 = arith.constant dense<0.000000e+00> : vector<2x800xf32>
    %85 = tpu.matmul %82, %84, %cst_67 {dimension_numbers = #tpu.dot_dimension_numbers<[1], [0], [0], [1], [0, 0, 1, 1], [], []>} : vector<2x80xf32>, vector<80x800xf32>, vector<2x800xf32> -> vector<2x800xf32>
    %c1 = arith.constant 1 : index
    %c0_68 = arith.constant 0 : index
    %c0_69 = arith.constant 0 : index
    %86 = vector.load %arg9[%c1, %c0_68, %c0_69] : memref<2x800x80xf32, #tpu.memory_space<vmem>>, vector<1x800x80xf32>
    %87 = vector.shape_cast %86 : vector<1x800x80xf32> to vector<800x80xf32>
    %cst_70 = arith.constant dense<0.000000e+00> : vector<2x80xf32>
    %88 = tpu.matmul %85, %87, %cst_70 {dimension_numbers = #tpu.dot_dimension_numbers<[1], [0], [0], [1], [0, 0, 1, 1], [], []>} : vector<2x800xf32>, vector<800x80xf32>, vector<2x80xf32> -> vector<2x80xf32>
    %cst_71 = arith.constant dense<0.000000e+00> : vector<2x80xf32>
    %89 = tpu.matmul %88, %1, %cst_71 {dimension_numbers = #tpu.dot_dimension_numbers<[1], [0], [0], [1], [0, 0, 1, 1], [], []>} : vector<2x80xf32>, vector<80x80xf32>, vector<2x80xf32> -> vector<2x80xf32>
    %90 = arith.subf %88, %89 : vector<2x80xf32>
    %91 = arith.mulf %90, %90 : vector<2x80xf32>
    %cst_72 = arith.constant dense<0.000000e+00> : vector<2x80xf32>
    %92 = tpu.matmul %91, %1, %cst_72 {dimension_numbers = #tpu.dot_dimension_numbers<[1], [0], [0], [1], [0, 0, 1, 1], [], []>} : vector<2x80xf32>, vector<80x80xf32>, vector<2x80xf32> -> vector<2x80xf32>
    %cst_73 = arith.constant 9.99999974E-6 : f32
    %93 = vector.broadcast %cst_73 : f32 to vector<2x80xf32>
    %94 = arith.addf %92, %93 : vector<2x80xf32>
    %95 = math.rsqrt %94 : vector<2x80xf32>
    %96 = arith.mulf %90, %95 : vector<2x80xf32>
    %c1_74 = arith.constant 1 : index
    %c0_75 = arith.constant 0 : index
    %c0_76 = arith.constant 0 : index
    %97 = vector.load %arg16[%c1_74, %c0_75, %c0_76] : memref<2x1x80xf32, #tpu.memory_space<vmem>>, vector<1x1x80xf32>
    %98 = vector.shape_cast %97 : vector<1x1x80xf32> to vector<1x80xf32>
    %99 = vector.broadcast %98 : vector<1x80xf32> to vector<2x80xf32>
    %100 = arith.mulf %96, %99 : vector<2x80xf32>
    %c1_77 = arith.constant 1 : index
    %c0_78 = arith.constant 0 : index
    %c0_79 = arith.constant 0 : index
    %101 = vector.load %arg17[%c1_77, %c0_78, %c0_79] : memref<2x1x80xf32, #tpu.memory_space<vmem>>, vector<1x1x80xf32>
    %102 = vector.shape_cast %101 : vector<1x1x80xf32> to vector<1x80xf32>
    %103 = vector.broadcast %102 : vector<1x80xf32> to vector<2x80xf32>
    %104 = arith.addf %100, %103 : vector<2x80xf32>
    %c1_80 = arith.constant 1 : index
    %c0_81 = arith.constant 0 : index
    %c0_82 = arith.constant 0 : index
    %105 = vector.load %arg11[%c1_80, %c0_81, %c0_82] : memref<2x80x80xf32, #tpu.memory_space<vmem>>, vector<1x80x80xf32>
    %106 = vector.shape_cast %105 : vector<1x80x80xf32> to vector<80x80xf32>
    %cst_83 = arith.constant dense<0.000000e+00> : vector<2x80xf32>
    %107 = tpu.matmul %104, %106, %cst_83 {dimension_numbers = #tpu.dot_dimension_numbers<[1], [0], [0], [1], [0, 0, 1, 1], [], []>} : vector<2x80xf32>, vector<80x80xf32>, vector<2x80xf32> -> vector<2x80xf32>
    %c1_84 = arith.constant 1 : index
    %c0_85 = arith.constant 0 : index
    %c0_86 = arith.constant 0 : index
    %108 = vector.load %arg12[%c1_84, %c0_85, %c0_86] : memref<2x80x80xf32, #tpu.memory_space<vmem>>, vector<1x80x80xf32>
    %109 = vector.shape_cast %108 : vector<1x80x80xf32> to vector<80x80xf32>
    %cst_87 = arith.constant dense<0.000000e+00> : vector<2x80xf32>
    %110 = tpu.matmul %104, %109, %cst_87 {dimension_numbers = #tpu.dot_dimension_numbers<[1], [0], [0], [1], [0, 0, 1, 1], [], []>} : vector<2x80xf32>, vector<80x80xf32>, vector<2x80xf32> -> vector<2x80xf32>
    %c1_88 = arith.constant 1 : index
    %c0_89 = arith.constant 0 : index
    %c0_90 = arith.constant 0 : index
    %111 = vector.load %arg13[%c1_88, %c0_89, %c0_90] : memref<2x80x80xf32, #tpu.memory_space<vmem>>, vector<1x80x80xf32>
    %112 = vector.shape_cast %111 : vector<1x80x80xf32> to vector<80x80xf32>
    %cst_91 = arith.constant dense<0.000000e+00> : vector<2x80xf32>
    %113 = tpu.matmul %104, %112, %cst_91 {dimension_numbers = #tpu.dot_dimension_numbers<[1], [0], [0], [1], [0, 0, 1, 1], [], []>} : vector<2x80xf32>, vector<80x80xf32>, vector<2x80xf32> -> vector<2x80xf32>
    %cst_92 = arith.constant dense<0.000000e+00> : vector<2x80xf32>
    %114 = tpu.matmul %107, %2, %cst_92 {dimension_numbers = #tpu.dot_dimension_numbers<[1], [0], [0], [1], [0, 0, 1, 1], [], []>} : vector<2x80xf32>, vector<80x80xf32>, vector<2x80xf32> -> vector<2x80xf32>
    %115 = arith.mulf %110, %114 : vector<2x80xf32>
    %cst_93 = arith.constant dense<0xFF800000> : vector<2xf32>
    %116 = vector.multi_reduction <maximumf>, %115, %cst_93 [1] : vector<2x80xf32> to vector<2xf32>
    %117 = vector.shape_cast %116 : vector<2xf32> to vector<2x1xf32>
    %118 = vector.broadcast %117 : vector<2x1xf32> to vector<2x80xf32>
    %119 = arith.subf %115, %118 : vector<2x80xf32>
    %120 = math.exp %119 : vector<2x80xf32>
    %cst_94 = arith.constant dense<0.000000e+00> : vector<2x80xf32>
    %121 = tpu.matmul %120, %2, %cst_94 {dimension_numbers = #tpu.dot_dimension_numbers<[1], [0], [0], [1], [0, 0, 1, 1], [], []>} : vector<2x80xf32>, vector<80x80xf32>, vector<2x80xf32> -> vector<2x80xf32>
    %122 = arith.divf %120, %121 : vector<2x80xf32>
    %cst_95 = arith.constant dense<0.000000e+00> : vector<2x80xf32>
    %123 = tpu.matmul %113, %2, %cst_95 {dimension_numbers = #tpu.dot_dimension_numbers<[1], [0], [0], [1], [0, 0, 1, 1], [], []>} : vector<2x80xf32>, vector<80x80xf32>, vector<2x80xf32> -> vector<2x80xf32>
    %124 = arith.mulf %123, %122 : vector<2x80xf32>
    %c1_96 = arith.constant 1 : index
    %c0_97 = arith.constant 0 : index
    %c0_98 = arith.constant 0 : index
    %125 = vector.load %arg14[%c1_96, %c0_97, %c0_98] : memref<2x80x80xf32, #tpu.memory_space<vmem>>, vector<1x80x80xf32>
    %126 = vector.shape_cast %125 : vector<1x80x80xf32> to vector<80x80xf32>
    %cst_99 = arith.constant dense<0.000000e+00> : vector<2x80xf32>
    %127 = tpu.matmul %124, %126, %cst_99 {dimension_numbers = #tpu.dot_dimension_numbers<[1], [0], [0], [1], [0, 0, 1, 1], [], []>} : vector<2x80xf32>, vector<80x80xf32>, vector<2x80xf32> -> vector<2x80xf32>
    %c1_100 = arith.constant 1 : index
    %c0_101 = arith.constant 0 : index
    %c0_102 = arith.constant 0 : index
    %128 = vector.load %arg15[%c1_100, %c0_101, %c0_102] : memref<2x1x80xf32, #tpu.memory_space<vmem>>, vector<1x1x80xf32>
    %129 = vector.shape_cast %128 : vector<1x1x80xf32> to vector<1x80xf32>
    %130 = vector.broadcast %129 : vector<1x80xf32> to vector<2x80xf32>
    %131 = arith.addf %127, %130 : vector<2x80xf32>
    %132 = arith.addf %88, %131 : vector<2x80xf32>
    %cst_103 = arith.constant dense<0.000000e+00> : vector<2x80xf32>
    %133 = tpu.matmul %132, %1, %cst_103 {dimension_numbers = #tpu.dot_dimension_numbers<[1], [0], [0], [1], [0, 0, 1, 1], [], []>} : vector<2x80xf32>, vector<80x80xf32>, vector<2x80xf32> -> vector<2x80xf32>
    %134 = arith.subf %132, %133 : vector<2x80xf32>
    %135 = arith.mulf %134, %134 : vector<2x80xf32>
    %cst_104 = arith.constant dense<0.000000e+00> : vector<2x80xf32>
    %136 = tpu.matmul %135, %1, %cst_104 {dimension_numbers = #tpu.dot_dimension_numbers<[1], [0], [0], [1], [0, 0, 1, 1], [], []>} : vector<2x80xf32>, vector<80x80xf32>, vector<2x80xf32> -> vector<2x80xf32>
    %cst_105 = arith.constant 9.99999974E-6 : f32
    %137 = vector.broadcast %cst_105 : f32 to vector<2x80xf32>
    %138 = arith.addf %136, %137 : vector<2x80xf32>
    %139 = math.rsqrt %138 : vector<2x80xf32>
    %140 = arith.mulf %134, %139 : vector<2x80xf32>
    %c1_106 = arith.constant 1 : index
    %c0_107 = arith.constant 0 : index
    %c0_108 = arith.constant 0 : index
    %141 = vector.load %arg18[%c1_106, %c0_107, %c0_108] : memref<2x1x80xf32, #tpu.memory_space<vmem>>, vector<1x1x80xf32>
    %142 = vector.shape_cast %141 : vector<1x1x80xf32> to vector<1x80xf32>
    %143 = vector.broadcast %142 : vector<1x80xf32> to vector<2x80xf32>
    %144 = arith.mulf %140, %143 : vector<2x80xf32>
    %c1_109 = arith.constant 1 : index
    %c0_110 = arith.constant 0 : index
    %c0_111 = arith.constant 0 : index
    %145 = vector.load %arg19[%c1_109, %c0_110, %c0_111] : memref<2x1x80xf32, #tpu.memory_space<vmem>>, vector<1x1x80xf32>
    %146 = vector.shape_cast %145 : vector<1x1x80xf32> to vector<1x80xf32>
    %147 = vector.broadcast %146 : vector<1x80xf32> to vector<2x80xf32>
    %148 = arith.addf %144, %147 : vector<2x80xf32>
    %c1_112 = arith.constant 1 : index
    %c0_113 = arith.constant 0 : index
    %c0_114 = arith.constant 0 : index
    %149 = vector.load %arg20[%c1_112, %c0_113, %c0_114] : memref<2x80x320xf32, #tpu.memory_space<vmem>>, vector<1x80x320xf32>
    %150 = vector.shape_cast %149 : vector<1x80x320xf32> to vector<80x320xf32>
    %cst_115 = arith.constant dense<0.000000e+00> : vector<2x320xf32>
    %151 = tpu.matmul %148, %150, %cst_115 {dimension_numbers = #tpu.dot_dimension_numbers<[1], [0], [0], [1], [0, 0, 1, 1], [], []>} : vector<2x80xf32>, vector<80x320xf32>, vector<2x320xf32> -> vector<2x320xf32>
    %c1_116 = arith.constant 1 : index
    %c0_117 = arith.constant 0 : index
    %c0_118 = arith.constant 0 : index
    %152 = vector.load %arg21[%c1_116, %c0_117, %c0_118] : memref<2x1x320xf32, #tpu.memory_space<vmem>>, vector<1x1x320xf32>
    %153 = vector.shape_cast %152 : vector<1x1x320xf32> to vector<1x320xf32>
    %154 = vector.broadcast %153 : vector<1x320xf32> to vector<2x320xf32>
    %155 = arith.addf %151, %154 : vector<2x320xf32>
    %cst_119 = arith.constant 0.000000e+00 : f32
    %156 = vector.broadcast %cst_119 : f32 to vector<2x320xf32>
    %157 = arith.maximumf %155, %156 : vector<2x320xf32>
    %c1_120 = arith.constant 1 : index
    %c0_121 = arith.constant 0 : index
    %c0_122 = arith.constant 0 : index
    %158 = vector.load %arg22[%c1_120, %c0_121, %c0_122] : memref<2x320x80xf32, #tpu.memory_space<vmem>>, vector<1x320x80xf32>
    %159 = vector.shape_cast %158 : vector<1x320x80xf32> to vector<320x80xf32>
    %cst_123 = arith.constant dense<0.000000e+00> : vector<2x80xf32>
    %160 = tpu.matmul %157, %159, %cst_123 {dimension_numbers = #tpu.dot_dimension_numbers<[1], [0], [0], [1], [0, 0, 1, 1], [], []>} : vector<2x320xf32>, vector<320x80xf32>, vector<2x80xf32> -> vector<2x80xf32>
    %c1_124 = arith.constant 1 : index
    %c0_125 = arith.constant 0 : index
    %c0_126 = arith.constant 0 : index
    %161 = vector.load %arg23[%c1_124, %c0_125, %c0_126] : memref<2x1x80xf32, #tpu.memory_space<vmem>>, vector<1x1x80xf32>
    %162 = vector.shape_cast %161 : vector<1x1x80xf32> to vector<1x80xf32>
    %163 = vector.broadcast %162 : vector<1x80xf32> to vector<2x80xf32>
    %164 = arith.addf %160, %163 : vector<2x80xf32>
    %165 = arith.addf %132, %164 : vector<2x80xf32>
    %c1_127 = arith.constant 1 : index
    %c0_128 = arith.constant 0 : index
    %c0_129 = arith.constant 0 : index
    %166 = vector.load %arg10[%c1_127, %c0_128, %c0_129] : memref<2x80x800xf32, #tpu.memory_space<vmem>>, vector<1x80x800xf32>
    %167 = vector.shape_cast %166 : vector<1x80x800xf32> to vector<80x800xf32>
    %cst_130 = arith.constant dense<0.000000e+00> : vector<2x800xf32>
    %168 = tpu.matmul %165, %167, %cst_130 {dimension_numbers = #tpu.dot_dimension_numbers<[1], [0], [0], [1], [0, 0, 1, 1], [], []>} : vector<2x80xf32>, vector<80x800xf32>, vector<2x800xf32> -> vector<2x800xf32>
    %c0_131 = arith.constant 0 : index
    %c0_132 = arith.constant 0 : index
    %169 = vector.load %arg3[%c0_131, %c0_132] : memref<800x8xf32, #tpu.memory_space<vmem>>, vector<800x8xf32>
    %c0_133 = arith.constant 0 : index
    %c0_134 = arith.constant 0 : index
    %170 = vector.load %arg4[%c0_133, %c0_134] : memref<8x800xf32, #tpu.memory_space<vmem>>, vector<8x800xf32>
    %cst_135 = arith.constant dense<0.000000e+00> : vector<2x8xf32>
    %171 = tpu.matmul %168, %169, %cst_135 {dimension_numbers = #tpu.dot_dimension_numbers<[1], [0], [0], [1], [0, 0, 1, 1], [], []>} : vector<2x800xf32>, vector<800x8xf32>, vector<2x8xf32> -> vector<2x8xf32>
    %cst_136 = arith.constant dense<0.000000e+00> : vector<2x800xf32>
    %172 = tpu.matmul %171, %170, %cst_136 {dimension_numbers = #tpu.dot_dimension_numbers<[1], [0], [0], [1], [0, 0, 1, 1], [], []>} : vector<2x8xf32>, vector<8x800xf32>, vector<2x800xf32> -> vector<2x800xf32>
    %173 = arith.subf %168, %172 : vector<2x800xf32>
    %174 = arith.mulf %173, %173 : vector<2x800xf32>
    %cst_137 = arith.constant dense<0.000000e+00> : vector<2x8xf32>
    %175 = tpu.matmul %174, %169, %cst_137 {dimension_numbers = #tpu.dot_dimension_numbers<[1], [0], [0], [1], [0, 0, 1, 1], [], []>} : vector<2x800xf32>, vector<800x8xf32>, vector<2x8xf32> -> vector<2x8xf32>
    %cst_138 = arith.constant dense<0.000000e+00> : vector<2x800xf32>
    %176 = tpu.matmul %175, %170, %cst_138 {dimension_numbers = #tpu.dot_dimension_numbers<[1], [0], [0], [1], [0, 0, 1, 1], [], []>} : vector<2x8xf32>, vector<8x800xf32>, vector<2x800xf32> -> vector<2x800xf32>
    %cst_139 = arith.constant 9.99999974E-6 : f32
    %177 = vector.broadcast %cst_139 : f32 to vector<2x800xf32>
    %178 = arith.addf %176, %177 : vector<2x800xf32>
    %179 = math.rsqrt %178 : vector<2x800xf32>
    %180 = arith.mulf %173, %179 : vector<2x800xf32>
    %c0_140 = arith.constant 0 : index
    %c0_141 = arith.constant 0 : index
    %181 = vector.load %arg5[%c0_140, %c0_141] : memref<1x800xf32, #tpu.memory_space<vmem>>, vector<1x800xf32>
    %182 = vector.broadcast %181 : vector<1x800xf32> to vector<2x800xf32>
    %183 = arith.mulf %180, %182 : vector<2x800xf32>
    %c0_142 = arith.constant 0 : index
    %c0_143 = arith.constant 0 : index
    %184 = vector.load %arg6[%c0_142, %c0_143] : memref<1x800xf32, #tpu.memory_space<vmem>>, vector<1x800xf32>
    %185 = vector.broadcast %184 : vector<1x800xf32> to vector<2x800xf32>
    %186 = arith.addf %183, %185 : vector<2x800xf32>
    %c0_144 = arith.constant 0 : index
    %c0_145 = arith.constant 0 : index
    %187 = vector.load %arg7[%c0_144, %c0_145] : memref<800x256xf32, #tpu.memory_space<vmem>>, vector<800x256xf32>
    %cst_146 = arith.constant dense<0.000000e+00> : vector<2x256xf32>
    %188 = tpu.matmul %186, %187, %cst_146 {dimension_numbers = #tpu.dot_dimension_numbers<[1], [0], [0], [1], [0, 0, 1, 1], [], []>} : vector<2x800xf32>, vector<800x256xf32>, vector<2x256xf32> -> vector<2x256xf32>
    %c0_147 = arith.constant 0 : index
    %c0_148 = arith.constant 0 : index
    %189 = vector.load %arg8[%c0_147, %c0_148] : memref<1x256xf32, #tpu.memory_space<vmem>>, vector<1x256xf32>
    %190 = vector.broadcast %189 : vector<1x256xf32> to vector<2x256xf32>
    %191 = arith.addf %188, %190 : vector<2x256xf32>
    %c0_149 = arith.constant 0 : index
    %c0_150 = arith.constant 0 : index
    %192 = vector.load %arg24[%c0_149, %c0_150] : memref<2x256xf32, #tpu.memory_space<vmem>>, vector<2x256xf32>
    tpu.vector_store %arg24[%c0_149, %c0_150], %191 {strides = array<i32>} : memref<2x256xf32, #tpu.memory_space<vmem>>, vector<2x256xf32>,
    return
  }
}

</mosaic_0001>

<bundles_post_ra>
// kernel: tpu_custom_call.1
= control target key start
LH: loop header
LB: loop body
LE: loop exit
PB: predicated region body
PF: predicated region fallthrough
CT: control target
= control target key end

     0   :  { %s8129_s0 = inlined_call_operand.hbm [shape: f32[2,800], index: 0, kind: input, shape index: {}]   ;;  %s8130_s1 = inlined_call_operand.hbm [shape: f32[80,80], index: 1, kind: input, shape index: {}]   ;;  %s8131_s2 = inlined_call_operand.hbm [shape: f32[80,80], index: 2, kind: input, shape index: {}]   ;;  %s8132_s3 = inlined_call_operand.vmem [shape: f32[800,8], index: 3, kind: input, shape index: {}]   ;;  %s8133_s4 = inlined_call_operand.vmem [shape: f32[8,800], index: 4, kind: input, shape index: {}]   ;;  %s8134_s5 = inlined_call_operand.vmem [shape: f32[1,800], index: 5, kind: input, shape index: {}]   ;;  %s8135_s6 = inlined_call_operand.hbm [shape: f32[1,800], index: 6, kind: input, shape index: {}]   ;;  %s8136_s7 = inlined_call_operand.vmem [shape: f32[800,256], index: 7, kind: input, shape index: {}]   ;;  %s8137_s8 = inlined_call_operand.hbm [shape: f32[1,256], index: 8, kind: input, shape index: {}]   ;;  %s8138_s9 = inlined_call_operand.vmem [shape: f32[2,800,80], index: 9, kind: input, shape index: {}]   ;;  %s8139_s10 = inlined_call_operand.vmem [shape: f32[2,80,800], index: 10, kind: input, shape index: {}]   ;;  %s8140_s11 = inlined_call_operand.vmem [shape: f32[2,80,80], index: 11, kind: input, shape index: {}]   ;;  %s8141_s12 = inlined_call_operand.vmem [shape: f32[2,80,80], index: 12, kind: input, shape index: {}]   ;;  %s8142_s13 = inlined_call_operand.hbm [shape: f32[2,80,80], index: 13, kind: input, shape index: {}]   ;;  %s8143_s14 = inlined_call_operand.hbm [shape: f32[2,80,80], index: 14, kind: input, shape index: {}]   ;;  %s8144_s15 = inlined_call_operand.hbm [shape: f32[2,1,80], index: 15, kind: input, shape index: {}]   ;;  %s8145_s16 = inlined_call_operand.hbm [shape: f32[2,1,80], index: 16, kind: input, shape index: {}]   ;;  %s8146_s17 = inlined_call_operand.hbm [shape: f32[2,1,80], index: 17, kind: input, shape index: {}]   ;;  %s8147_s18 = inlined_call_operand.hbm [shape: f32[2,1,80], index: 18, kind: input, shape index: {}]   ;;  %s8148_s19 = inlined_call_operand.hbm [shape: f32[2,1,80], index: 19, kind: input, shape index: {}]   ;;  %s8149_s20 = inlined_call_operand.vmem [shape: f32[2,80,320], index: 20, kind: input, shape index: {}]   ;;  %s8150_s21 = inlined_call_operand.hbm [shape: f32[2,1,320], index: 21, kind: input, shape index: {}]   ;;  %s8151_s22 = inlined_call_operand.vmem [shape: f32[2,320,80], index: 22, kind: input, shape index: {}]   ;;  %s8152_s23 = inlined_call_operand.hbm [shape: f32[2,1,80], index: 23, kind: input, shape index: {}]   ;;  %s8153_s24 = inlined_call_operand.hbm [shape: f32[2,256], index: 24, kind: output, shape index: {}]  }
   0x1   :  { %8199 = sst [smem:[#allocation77_spill]] %s8129_s0 }
   0x2   :  { %8200 = sst [smem:[#allocation78_spill]] %s8130_s1 }
   0x3   :  { %8201 = sst [smem:[#allocation79_spill]] %s8131_s2 }
   0x4   :  { %8202 = sst [smem:[#allocation80_spill]] %s8132_s3 }
   0x5   :  { %8203 = sst [smem:[#allocation81_spill]] %s8133_s4 }
   0x6   :  { %8204 = sst [smem:[#allocation82_spill]] %s8134_s5 }
   0x7   :  { %8205 = sst [smem:[#allocation83_spill]] %s8135_s6 }
   0x8   :  { %8206 = sst [smem:[#allocation84_spill]] %s8136_s7 }
   0x9   :  { %8207 = sst [smem:[#allocation85_spill]] %s8137_s8 }
   0xa   :  { %29 = vsyncpa [#allocation3], 0 }
   0xb   :  { %30 = vsyncpa [#allocation6], 0 }
   0xc   :  { %31 = vsyncpa [#allocation9], 0 }
   0xd   :  { %32 = vsyncpa [#allocation12], 0 }
   0xe   :  { %33 = vsyncpa [#allocation15], 0 }
   0xf   :  { %34 = vsyncpa [#allocation18], 0 }
  0x10   :  { %35 = vsyncpa [#allocation21], 0 }
  0x11   :  { %36 = vsyncpa [#allocation24], 0  ;;  %s8208_s27 = sld [smem:[#allocation78_spill]] }
  0x17   :  { %s53_s28 = sshll.u32 %s8208_s27, 4  ;;  %s54_s28 = int_to_ptr.hbm [resolvable:$true] %s53_s28 }
  0x18   :  { %37 = vsyncpa [#allocation4], 0  ;;  %s4528_s6 = smov [#allocation5]   ;;  %s8209_s7 = sld [smem:[#allocation83_spill]] }
  0x19   :  { %s55_s2 = sshll.u32 %s4528_s6, 4  ;;  %s4529_s3 = smov 128   ;;  %s56_s2 = int_to_ptr.vmem [resolvable:$true] %s55_s2 }
  0x1a   :  { %s4530_s25 = smov 8   ;;  %s4531_s8 = smov [#allocation8]  }
  0x1b   :  { %61 = dma.hbm_to_vmem [thread:$0]  %s54_s28, 1280, %s56_s2, [#allocation6], %s4529_s3, %s4529_s3, %s4530_s25  }
  0x1c   :  { %s88_s4 = sshll.u32 %s4531_s8, 4  ;;  %s117_s26 = sshll.u32 %s8142_s13, 4  ;;  %s89_s4 = int_to_ptr.vmem [resolvable:$true] %s88_s4  ;;  %s118_s26 = int_to_ptr.hbm [resolvable:$true] %s117_s26 }
  0x1d   :  { %s143_s29 = sshll.u32 %s8144_s15, 4  ;;  %s4532_s0 = smov [#allocation11]   ;;  %s144_s29 = int_to_ptr.hbm [resolvable:$true] %s143_s29 }
  0x1e   :  { %s86_s30 = sshll.u32 %s8209_s7, 4  ;;  %s119_s7 = sshll.u32 %s4532_s0, 4  ;;  %s87_s30 = int_to_ptr.hbm [resolvable:$true] %s86_s30  ;;  %s120_s7 = int_to_ptr.vmem [resolvable:$true] %s119_s7 }
  0x1f   :  { %91 = dma.hbm_to_vmem [thread:$0]  %s87_s30, 112, %s89_s4, [#allocation9]  }
  0x20   :  { %125 = dma.hbm_to_vmem [thread:$0]  %s118_s26, 2560, %s120_s7, [#allocation12], %s4529_s3, %s4529_s3, %s4530_s25  }
  0x21   :  { %s4533_s28 = smov [#allocation14]   ;;  %s4534_s8 = smov 16  }
  0x22   :  { %s145_s2 = sshll.u32 %s4533_s28, 4  ;;  %s4535_s13 = smov 1   ;;  %s146_s2 = int_to_ptr.vmem [resolvable:$true] %s145_s2 }
  0x23   :  { %151 = dma.hbm_to_vmem [thread:$0]  %s144_s29, 32, %s146_s2, [#allocation15], %s4534_s8, %s4534_s8, %s4535_s13  }
  0x24   :  { %s169_s15 = sshll.u32 %s8146_s17, 4  ;;  %s4536_s1 = smov [#allocation17]   ;;  %s170_s15 = int_to_ptr.hbm [resolvable:$true] %s169_s15 }
  0x25   :  { %s171_s5 = sshll.u32 %s4536_s1, 4  ;;  %s195_s26 = sshll.u32 %s8148_s19, 4  ;;  %s172_s5 = int_to_ptr.vmem [resolvable:$true] %s171_s5  ;;  %s196_s26 = int_to_ptr.hbm [resolvable:$true] %s195_s26 }
  0x26   :  { %177 = dma.hbm_to_vmem [thread:$0]  %s170_s15, 32, %s172_s5, [#allocation18], %s4534_s8, %s4534_s8, %s4535_s13  }
  0x27   :  { %s4537_s0 = smov [#allocation20]   ;;  %s8210_s2 = sld [smem:[#allocation77_spill]] }
  0x28   :  { %s197_s7 = sshll.u32 %s4537_s0, 4  ;;  %s8211_s19 = sld [smem:[#allocation79_spill]]  ;;  %s198_s7 = int_to_ptr.vmem [resolvable:$true] %s197_s7 }
  0x29   :  { %203 = dma.hbm_to_vmem [thread:$0]  %s196_s26, 32, %s198_s7, [#allocation21], %s4534_s8, %s4534_s8, %s4535_s13  }
  0x2a   :  { %s4538_s27 = smov [#allocation2]   ;;  %s4539_s15 = smov [#allocation7]  }
  0x2b   :  { %s45_s6 = sshll.u32 %s4538_s27, 4  ;;  %s68_s5 = sshll.u32 %s4539_s15, 4  ;;  %s46_s6 = int_to_ptr.vmem [resolvable:$true] %s45_s6  ;;  %s69_s5 = int_to_ptr.vmem [resolvable:$true] %s68_s5 }
  0x2c   :  { %s8212_s28 = sld [smem:[#allocation85_spill]]  ;;  %s130_s17 = sshll.u32 %s8143_s14, 4  ;;  %s131_s17 = int_to_ptr.hbm [resolvable:$true] %s130_s17 }
  0x2d   :  { %s43_s30 = sshll.u32 %s8210_s2, 4  ;;  %s4540_s4 = smov [#allocation10]   ;;  %s44_s30 = int_to_ptr.hbm [resolvable:$true] %s43_s30 }
  0x2e   :  { %s66_s1 = sshll.u32 %s8211_s19, 4  ;;  %s101_s19 = sshll.u32 %s4540_s4, 4  ;;  %s67_s1 = int_to_ptr.hbm [resolvable:$true] %s66_s1  ;;  %s102_s19 = int_to_ptr.vmem [resolvable:$true] %s101_s19 }
  0x2f   :  { %48 = dma.hbm_to_vmem [thread:$0]  %s44_s30, 224, %s46_s6, [#allocation3]  }
  0x30   :  { %74 = dma.hbm_to_vmem [thread:$0]  %s67_s1, 1280, %s69_s5, [#allocation6], %s4529_s3, %s4529_s3, %s4530_s25  }
  0x31   :  { %s4541_s30 = smov [#allocation13]   ;;  %s156_s0 = sshll.u32 %s8145_s16, 4  ;;  %s157_s0 = int_to_ptr.hbm [resolvable:$true] %s156_s0 }
  0x32   :  { %s99_s2 = sshll.u32 %s8212_s28, 4  ;;  %s132_s27 = sshll.u32 %s4541_s30, 4  ;;  %s100_s2 = int_to_ptr.hbm [resolvable:$true] %s99_s2  ;;  %s133_s27 = int_to_ptr.vmem [resolvable:$true] %s132_s27 }
  0x33   :  { %104 = dma.hbm_to_vmem [thread:$0]  %s100_s2, 32, %s102_s19, [#allocation9]  }
  0x34   :  { %138 = dma.hbm_to_vmem [thread:$0]  %s131_s17, 2560, %s133_s27, [#allocation12], %s4529_s3, %s4529_s3, %s4530_s25  }
  0x35   :  { %s182_s14 = sshll.u32 %s8147_s18, 4  ;;  %s4542_s29 = smov [#allocation16]   ;;  %s183_s14 = int_to_ptr.hbm [resolvable:$true] %s182_s14 }
  0x36   :  { %s158_s28 = sshll.u32 %s4542_s29, 4  ;;  %s4543_s2 = smov [#allocation19]   ;;  %s159_s28 = int_to_ptr.vmem [resolvable:$true] %s158_s28 }
  0x37   :  { %164 = dma.hbm_to_vmem [thread:$0]  %s157_s0, 32, %s159_s28, [#allocation15], %s4534_s8, %s4534_s8, %s4535_s13  }
  0x38   :  { %s184_s16 = sshll.u32 %s4543_s2, 4  ;;  %s210_s4 = sshll.u32 %s8150_s21, 4  ;;  %s185_s16 = int_to_ptr.vmem [resolvable:$true] %s184_s16  ;;  %s211_s4 = int_to_ptr.hbm [resolvable:$true] %s210_s4 }
  0x39   :  { %190 = dma.hbm_to_vmem [thread:$0]  %s183_s14, 32, %s185_s16, [#allocation18], %s4534_s8, %s4534_s8, %s4535_s13  }
  0x3a   :  { %s4544_s18 = smov [#allocation22]   ;;  %s225_s19 = sshll.u32 %s8152_s23, 4  ;;  %s226_s19 = int_to_ptr.hbm [resolvable:$true] %s225_s19 }
  0x3b   :  { %s212_s3 = sshll.u32 %s4544_s18, 4  ;;  %s4545_s30 = smov 48   ;;  %s213_s3 = int_to_ptr.vmem [resolvable:$true] %s212_s3 }
  0x3c   :  { %s4546_s27 = smov 3   ;;  %s4547_s6 = smov [#allocation23]  }
  0x3d   :  { %218 = dma.hbm_to_vmem [thread:$0]  %s211_s4, 96, %s213_s3, [#allocation21], %s4545_s30, %s4545_s30, %s4546_s27  }
  0x3e   :  { %s227_s15 = sshll.u32 %s4547_s6, 4  ;;  %s228_s15 = int_to_ptr.vmem [resolvable:$true] %s227_s15 }
  0x3f   :  { %233 = dma.hbm_to_vmem [thread:$0]  %s226_s19, 32, %s228_s15, [#allocation24], %s4534_s8, %s4534_s8, %s4535_s13  }
  0x40   :  { %4510 = dma.done.wait [#allocation3], 224  }
  0x41   :  { %4511 = vsyncadd [#allocation3], 4294967072 }
  0x42   :  { %4512 = dma.done.wait [#allocation6], 2560  }
  0x43   :  { %4513 = vsyncadd [#allocation6], 4294964736 }
  0x44   :  { %4514 = dma.done.wait [#allocation9], 144  }
  0x45   :  { %4515 = vsyncadd [#allocation9], 4294967152 }
  0x46   :  { %4516 = dma.done.wait [#allocation12], 5120  }
  0x47   :  { %4517 = vsyncadd [#allocation12], 4294962176 }
  0x48   :  { %4518 = dma.done.wait [#allocation15], 64  }
  0x49   :  { %4519 = vsyncadd [#allocation15], 4294967232 }
  0x4a   :  { %4520 = dma.done.wait [#allocation18], 64  }
  0x4b   :  { %4521 = vsyncadd [#allocation18], 4294967232 }
  0x4c   :  { %4522 = dma.done.wait [#allocation21], 128  }
  0x4d   :  { %4523 = vsyncadd [#allocation21], 4294967168 }
  0x4e   :  { %4524 = dma.done.wait [#allocation24], 32  }
  0x4f   :  { %4525 = vsyncadd [#allocation24], 4294967264  ;;  %v327_v0 = vld [vmem:[%s8138_s9 + $0x78] sm:$0xff]  ;;  %v326_v1 = vld [vmem:[%s8138_s9 + $0x70] sm:$0xff]  ;;  %vm430_vm0 = vcmask 261120   ;;  %vm573_vm1 = vcmask 654336  }
  0x50   :  { %v343_v2 = vld [vmem:[%s8138_s9 + $0xf8] sm:$0xff]  ;;  %433 = vmatpush.msra.mxu0 %v327_v0  ;;  %v342_v3 = vld [vmem:[%s8138_s9 + $0xf0] sm:$0xff]  ;;  %v325_v4 = vld [vmem:[%s8138_s9 + $0x68] sm:$0xff]  ;;  %vm760_vm5 = vcmask 648192   ;;  %vm1084_vm13 = vcmask 523264   ;;  %s8213_s30 = sld [smem:[#allocation80_spill]] }
  0x51   :  { %453 = vmatpush.msra.mxu1 %v343_v2  ;;  %v341_v5 = vld [vmem:[%s8138_s9 + $0xe8] sm:$0xff]  ;;  %v324_v6 = vld [vmem:[%s8138_s9 + $0x60] sm:$0xff]  ;;  %v323_v8 = vld [vmem:[%s8138_s9 + $0x58] sm:$0xff]  ;;  %s8256_s26 = sld [smem:[#allocation81_spill]]  ;;  %s3726_s15 = sshll.u32 %s8153_s24, 4  ;;  %s3727_s15 = int_to_ptr.hbm [resolvable:$true] %s3726_s15 }
  0x52   :  { %434 = vmatpush.msra.mxu0 %v326_v1  ;;  %v340_v7 = vld [vmem:[%s8138_s9 + $0xe0] sm:$0xff]  ;;  %v339_v9 = vld [vmem:[%s8138_s9 + $0xd8] sm:$0xff]  ;;  %v358_v11 = vld [vmem:[%s8138_s9 + $0x170] sm:$0xff]  ;;  %s8299_s21 = sld [smem:[#allocation84_spill]] }
  0x53   :  { %454 = vmatpush.msra.mxu1 %v342_v3  ;;  %v359_v10 = vld [vmem:[%s8138_s9 + $0x178] sm:$0xff]  ;;  %v322_v13 = vld [vmem:[%s8138_s9 + $0x50] sm:$0xff]  ;;  %v357_v15 = vld [vmem:[%s8138_s9 + $0x168] sm:$0xff] }
  0x54   :  { %435 = vmatpush.msra.mxu0 %v325_v4  ;;  %v375_v12 = vld [vmem:[%s8138_s9 + $0x1f8] sm:$0xff]  ;;  %v338_v14 = vld [vmem:[%s8138_s9 + $0xd0] sm:$0xff]  ;;  %473 = vmatpush.msra.mxu2 %v359_v10  ;;  %v321_v17 = vld [vmem:[%s8138_s9 + $0x48] sm:$0xff] }
  0x55   :  { %455 = vmatpush.msra.mxu1 %v341_v5  ;;  %493 = vmatpush.msra.mxu3 %v375_v12  ;;  %v374_v16 = vld [vmem:[%s8138_s9 + $0x1f0] sm:$0xff]  ;;  %v337_v18 = vld [vmem:[%s8138_s9 + $0xc8] sm:$0xff]  ;;  %v356_v20 = vld [vmem:[%s8138_s9 + $0x160] sm:$0xff] }
  0x56   :  { %436 = vmatpush.msra.mxu0 %v324_v6  ;;  %474 = vmatpush.msra.mxu2 %v358_v11  ;;  %v373_v19 = vld [vmem:[%s8138_s9 + $0x1e8] sm:$0xff]  ;;  %v372_v21 = vld [vmem:[%s8138_s9 + $0x1e0] sm:$0xff]  ;;  %v355_v24 = vld [vmem:[%s8138_s9 + $0x158] sm:$0xff] }
  0x57   :  { %456 = vmatpush.msra.mxu1 %v340_v7  ;;  %494 = vmatpush.msra.mxu3 %v374_v16  ;;  %v320_v22 = vld [vmem:[%s8138_s9 + $0x40] sm:$0xff]  ;;  %v371_v25 = vld [vmem:[%s8138_s9 + $0x1d8] sm:$0xff]  ;;  %v354_v28 = vld [vmem:[%s8138_s9 + $0x150] sm:$0xff] }
  0x58   :  { %437 = vmatpush.msra.mxu0 %v323_v8  ;;  %v336_v23 = vld [vmem:[%s8138_s9 + $0xc0] sm:$0xff]  ;;  %475 = vmatpush.msra.mxu2 %v357_v15  ;;  %v319_v26 = vld [vmem:[%s8138_s9 + $0x38] sm:$0xff]  ;;  %v370_v29 = vld [vmem:[%s8138_s9 + $0x1d0] sm:$0xff] }
  0x59   :  { %457 = vmatpush.msra.mxu1 %v339_v9  ;;  %495 = vmatpush.msra.mxu3 %v373_v19  ;;  %v335_v27 = vld [vmem:[%s8138_s9 + $0xb8] sm:$0xff]  ;;  %v318_v30 = vld [vmem:[%s8138_s9 + $0x30] sm:$0xff]  ;;  %v353_v32 = vld [vmem:[%s8138_s9 + $0x148] sm:$0xff] }
  0x5a   :  { %438 = vmatpush.msra.mxu0 %v322_v13  ;;  %476 = vmatpush.msra.mxu2 %v356_v20  ;;  %v334_v31 = vld [vmem:[%s8138_s9 + $0xb0] sm:$0xff]  ;;  %v369_v33 = vld [vmem:[%s8138_s9 + $0x1c8] sm:$0xff]  ;;  %v352_v36 = vld [vmem:[%s8138_s9 + $0x140] sm:$0xff] }
  0x5b   :  { %458 = vmatpush.msra.mxu1 %v338_v14  ;;  %496 = vmatpush.msra.mxu3 %v372_v21  ;;  %v317_v34 = vld [vmem:[%s8138_s9 + $0x28] sm:$0xff]  ;;  %v368_v37 = vld [vmem:[%s8138_s9 + $0x1c0] sm:$0xff]  ;;  %v351_v40 = vld [vmem:[%s8138_s9 + $0x138] sm:$0xff] }
  0x5c   :  { %439 = vmatpush.msra.mxu0 %v321_v17  ;;  %477 = vmatpush.msra.mxu2 %v355_v24  ;;  %v333_v35 = vld [vmem:[%s8138_s9 + $0xa8] sm:$0xff]  ;;  %v316_v38 = vld [vmem:[%s8138_s9 + $0x20] sm:$0xff]  ;;  %v367_v41 = vld [vmem:[%s8138_s9 + $0x1b8] sm:$0xff] }
  0x5d   :  { %459 = vmatpush.msra.mxu1 %v337_v18  ;;  %497 = vmatpush.msra.mxu3 %v371_v25  ;;  %v332_v39 = vld [vmem:[%s8138_s9 + $0xa0] sm:$0xff]  ;;  %v315_v42 = vld [vmem:[%s8138_s9 + $0x18] sm:$0xff]  ;;  %v350_v44 = vld [vmem:[%s8138_s9 + $0x130] sm:$0xff] }
  0x5e   :  { %440 = vmatpush.msra.mxu0 %v320_v22  ;;  %478 = vmatpush.msra.mxu2 %v354_v28  ;;  %v331_v43 = vld [vmem:[%s8138_s9 + $0x98] sm:$0xff]  ;;  %v366_v45 = vld [vmem:[%s8138_s9 + $0x1b0] sm:$0xff]  ;;  %v349_v48 = vld [vmem:[%s8138_s9 + $0x128] sm:$0xff] }
  0x5f   :  { %460 = vmatpush.msra.mxu1 %v336_v23  ;;  %498 = vmatpush.msra.mxu3 %v370_v29  ;;  %v314_v46 = vld [vmem:[%s8138_s9 + $0x10] sm:$0xff]  ;;  %v365_v49 = vld [vmem:[%s8138_s9 + $0x1a8] sm:$0xff]  ;;  %v348_v52 = vld [vmem:[%s8138_s9 + $0x120] sm:$0xff] }
  0x60   :  { %441 = vmatpush.msra.mxu0 %v319_v26  ;;  %479 = vmatpush.msra.mxu2 %v353_v32  ;;  %v330_v47 = vld [vmem:[%s8138_s9 + $0x90] sm:$0xff]  ;;  %v313_v50 = vld [vmem:[%s8138_s9 + $0x8] sm:$0xff]  ;;  %v364_v53 = vld [vmem:[%s8138_s9 + $0x1a0] sm:$0xff] }
  0x61   :  { %461 = vmatpush.msra.mxu1 %v335_v27  ;;  %499 = vmatpush.msra.mxu3 %v369_v33  ;;  %v329_v51 = vld [vmem:[%s8138_s9 + $0x88] sm:$0xff]  ;;  %v312_v55 = vld [vmem:[%s8138_s9] sm:$0xff]  ;;  %v391_v57 = vld [vmem:[%s8138_s9 + $0x278] sm:$0xff] }
  0x62   :  { %442 = vmatpush.msra.mxu0 %v318_v30  ;;  %480 = vmatpush.msra.mxu2 %v352_v36  ;;  %v290_v54 = vld [vmem:[#allocation2] sm:$0xff]  ;;  %v328_v56 = vld [vmem:[%s8138_s9 + $0x80] sm:$0xff]  ;;  %v407_v58 = vld [vmem:[%s8138_s9 + $0x2f8] sm:$0xff] }
  0x63   :  { %462 = vmatpush.msra.mxu1 %v334_v31  ;;  %500 = vmatpush.msra.mxu3 %v368_v37  ;;  %414 = vst [vmem:[#allocation1] ss:$4 sm:$0xff] %v290_v54  ;;  %v347_v59 = vld [vmem:[%s8138_s9 + $0x118] sm:$0xff]  ;;  %v390_v61 = vld [vmem:[%s8138_s9 + $0x270] sm:$0xff]  ;;  %v389_v62 = vld [vmem:[%s8138_s9 + $0x268] sm:$0xff] }
  0x64   :  { %443 = vmatpush.msra.mxu0 %v317_v34  ;;  %481 = vmatpush.msra.mxu2 %v351_v40  ;;  %v363_v60 = vld [vmem:[%s8138_s9 + $0x198] sm:$0xff]  ;;  %v406_v63 = vld [vmem:[%s8138_s9 + $0x2f0] sm:$0xff]  ;;  %v388_v3 = vld [vmem:[%s8138_s9 + $0x260] sm:$0xff] }
  0x65   :  { %463 = vmatpush.msra.mxu1 %v333_v35  ;;  %501 = vmatpush.msra.mxu3 %v367_v41  ;;  %v346_v0 = vld [vmem:[%s8138_s9 + $0x110] sm:$0xff]  ;;  %v405_v4 = vld [vmem:[%s8138_s9 + $0x2e8] sm:$0xff]  ;;  %v404_v5 = vld [vmem:[%s8138_s9 + $0x2e0] sm:$0xff] }
  0x66   :  { %444 = vmatpush.msra.mxu0 %v316_v38  ;;  %482 = vmatpush.msra.mxu2 %v350_v44  ;;  %v362_v1 = vld [vmem:[%s8138_s9 + $0x190] sm:$0xff]  ;;  %v345_v6 = vld [vmem:[%s8138_s9 + $0x108] sm:$0xff]  ;;  %v387_v8 = vld [vmem:[%s8138_s9 + $0x258] sm:$0xff] }
  0x67   :  { %464 = vmatpush.msra.mxu1 %v332_v39  ;;  %502 = vmatpush.msra.mxu3 %v366_v45  ;;  %v291_v2 = vld [vmem:[#allocation2 + $0x8] sm:$0x3f]  ;;  %v361_v7 = vld [vmem:[%s8138_s9 + $0x188] sm:$0xff]  ;;  %v403_v9 = vld [vmem:[%s8138_s9 + $0x2d8] sm:$0xff] }
  0x68   :  { %445 = vmatpush.msra.mxu0 %v315_v42  ;;  %483 = vmatpush.msra.mxu2 %v349_v48  ;;  %416 = vst [vmem:[#allocation1 + $0x20] ss:$4 sm:$0xff] %v291_v2  ;;  %v344_v10 = vld [vmem:[%s8138_s9 + $0x100] sm:$0xff]  ;;  %v386_v14 = vld [vmem:[%s8138_s9 + $0x250] sm:$0xff]  ;;  %v411_v16 = vld [vmem:[%s8138_s9 + $0x318] sm:$0xff] }
  0x69   :  { %465 = vmatpush.msra.mxu1 %v331_v43  ;;  %503 = vmatpush.msra.mxu3 %v365_v49  ;;  %v360_v11 = vld [vmem:[%s8138_s9 + $0x180] sm:$0xff]  ;;  %v402_v15 = vld [vmem:[%s8138_s9 + $0x2d0] sm:$0xff]  ;;  %v385_v18 = vld [vmem:[%s8138_s9 + $0x248] sm:$0xff] }
  0x6a   :  { %446 = vmatpush.msra.mxu0 %v314_v46  ;;  %484 = vmatpush.msra.mxu2 %v348_v52  ;;  %v419_v12 = vld.sshfl [vmem:[#allocation1 + $0x10] sm:$0xff pattern:$0x73625140]  ;;  %v420_v13 = vld.sshfl [vmem:[#allocation1 + $0x18] sm:$0xff pattern:$0x73625140] }
  0x6b   :  { %466 = vmatpush.msra.mxu1 %v330_v47  ;;  %504 = vmatpush.msra.mxu3 %v364_v53  ;;  %v417_v17 = vld.sshfl [vmem:[#allocation1] sm:$0xff pattern:$0x73625140]  ;;  %v401_v19 = vld [vmem:[%s8138_s9 + $0x2c8] sm:$0xff]  ;;  %v410_v21 = vld [vmem:[%s8138_s9 + $0x310] sm:$0xff] }
  0x6c   :  { %447 = vmatpush.msra.mxu0 %v313_v50  ;;  %485 = vmatpush.msra.mxu2 %v347_v59  ;;  %v418_v20 = vld.sshfl [vmem:[#allocation1 + $0x8] sm:$0xff pattern:$0x73625140]  ;;  %v384_v22 = vld [vmem:[%s8138_s9 + $0x240] sm:$0xff]  ;;  %v383_v26 = vld [vmem:[%s8138_s9 + $0x238] sm:$0xff] }
  0x6d   :  { %467 = vmatpush.msra.mxu1 %v329_v51  ;;  %505 = vmatpush.msra.mxu3 %v363_v60  ;;  %v400_v23 = vld [vmem:[%s8138_s9 + $0x2c0] sm:$0xff]  ;;  %v409_v24 = vld [vmem:[%s8138_s9 + $0x308] sm:$0xff]  ;;  %v399_v27 = vld [vmem:[%s8138_s9 + $0x2b8] sm:$0xff] }
  0x6e   :  { %448 = vmatpush.msra.mxu0 %v312_v55  ;;  %486 = vmatpush.msra.mxu2 %v346_v0  ;;  %v4995_v25 = vld [vmem:[#allocation5 + $0x48] sm:$0xff]  ;;  %v5006_v29 = vld [vmem:[#allocation5 + $0x40] sm:$0xff]  ;;  %v381_v33 = vld [vmem:[%s8138_s9 + $0x228] sm:$0xff] }
  0x6f   :  { %468 = vmatpush.msra.mxu1 %v328_v56  ;;  %506 = vmatpush.msra.mxu3 %v362_v1  ;;  %v408_v28 = vld [vmem:[%s8138_s9 + $0x300] sm:$0xff]  ;;  %v382_v30 = vld [vmem:[%s8138_s9 + $0x230] sm:$0xff]  ;;  %v397_v34 = vld [vmem:[%s8138_s9 + $0x2a8] sm:$0xff] }
  0x70   :  { %513 = vmatpush.msrb.mxu0 %v391_v57  ;;  %487 = vmatpush.msra.mxu2 %v345_v6  ;;  %v398_v31 = vld [vmem:[%s8138_s9 + $0x2b0] sm:$0xff]  ;;  %v380_v35 = vld [vmem:[%s8138_s9 + $0x220] sm:$0xff]  ;;  %v379_v37 = vld [vmem:[%s8138_s9 + $0x218] sm:$0xff] }
  0x71   :  { %533 = vmatpush.msrb.mxu1 %v407_v58  ;;  %507 = vmatpush.msra.mxu3 %v361_v7  ;;  %v423_v32 = vld.sshfl [vmem:[#allocation1 + $0x30] sm:$0xff pattern:$0x73625140]  ;;  %v396_v36 = vld [vmem:[%s8138_s9 + $0x2a0] sm:$0xff]  ;;  %v395_v38 = vld [vmem:[%s8138_s9 + $0x298] sm:$0xff] }
  0x72   :  { %514 = vmatpush.msrb.mxu0 %v390_v61  ;;  %488 = vmatpush.msra.mxu2 %v344_v10  ;;  %v378_v39 = vld [vmem:[%s8138_s9 + $0x210] sm:$0xff]  ;;  %v377_v41 = vld [vmem:[%s8138_s9 + $0x208] sm:$0xff]  ;;  %v376_v43 = vld [vmem:[%s8138_s9 + $0x200] sm:$0xff] }
  0x73   :  { %534 = vmatpush.msrb.mxu1 %v406_v63  ;;  %508 = vmatpush.msra.mxu3 %v360_v11  ;;  %v394_v40 = vld [vmem:[%s8138_s9 + $0x290] sm:$0xff]  ;;  %v393_v42 = vld [vmem:[%s8138_s9 + $0x288] sm:$0xff]  ;;  %v392_v44 = vld [vmem:[%s8138_s9 + $0x280] sm:$0xff] }
  0x74   :  { %515 = vmatpush.msrb.mxu0 %v389_v62  ;;  %489 = vmatmul.f32.vlgmr.msra.gmra.mxu2 %v419_v12  ;;  %v421_v45 = vld.sshfl [vmem:[#allocation1 + $0x20] sm:$0xff pattern:$0x73625140]  ;;  %v422_v46 = vld.sshfl [vmem:[#allocation1 + $0x28] sm:$0xff pattern:$0x73625140] }
  0x75   :  { %535 = vmatpush.msrb.mxu1 %v405_v4  ;;  %509 = vmatmul.f32.vlgmr.msra.gmra.mxu3 %v420_v13  ;;  %v5055_v47 = vld [vmem:[#allocation5 + $0x38] sm:$0xff]  ;;  %v5059_v48 = vld [vmem:[#allocation5 + $0x30] sm:$0xff]  ;;  %v5063_v49 = vld [vmem:[#allocation5 + $0x28] sm:$0xff] }
  0x76   :  { %516 = vmatpush.msrb.mxu0 %v388_v3  ;;  %565 = vmatpush.msrb.mxu2 %v411_v16  ;;  %v5065_v50 = vld [vmem:[#allocation5 + $0x20] sm:$0xff]  ;;  %v5071_v51 = vld [vmem:[#allocation5 + $0x18] sm:$0xff]  ;;  %v5075_v52 = vld [vmem:[#allocation5 + $0x10] sm:$0xff] }
  0x77   :  { %536 = vmatpush.msrb.mxu1 %v404_v5  ;;  %449 = vmatmul.f32.vlgmr.msra.gmra.mxu0 %v417_v17  ;;  %v5079_v53 = vld [vmem:[#allocation5 + $0x8] sm:$0xff]  ;;  %v5083_v54 = vld [vmem:[#allocation5] sm:$0xff]  ;;  %v652_v7 = vld [vmem:[%s8140_s11 + $0x48] sm:$0xff] }
  0x78   :  { %517 = vmatpush.msrb.mxu0 %v387_v8  ;;  %469 = vmatmul.f32.vlgmr.msra.gmra.mxu1 %v418_v20  ;;  %v685_v8 = vld [vmem:[%s8141_s12 + $0x48] sm:$0xff]  ;;  %v651_v10 = vld [vmem:[%s8140_s11 + $0x40] sm:$0xff]  ;;  %v650_v13 = vld [vmem:[%s8140_s11 + $0x38] sm:$0xff] }
  0x79   :  { %537 = vmatpush.msrb.mxu1 %v403_v9  ;;  %566 = vmatpush.msrb.mxu2 %v410_v21  ;;  %v715_v9 = vld [vmem:[#allocation11 + $0x48] sm:$0xff]  ;;  %v684_v11 = vld [vmem:[%s8141_s12 + $0x40] sm:$0xff]  ;;  %v649_v16 = vld [vmem:[%s8140_s11 + $0x30] sm:$0xff] }
  0x7a   :  { %518 = vmatpush.msrb.mxu0 %v386_v14  ;;  %583 = vmatpush.msrb.mxu3 %v4995_v25  ;;  %v714_v12 = vld [vmem:[#allocation11 + $0x40] sm:$0xff]  ;;  %v683_v14 = vld [vmem:[%s8141_s12 + $0x38] sm:$0xff]  ;;  %v682_v17 = vld [vmem:[%s8141_s12 + $0x30] sm:$0xff] }
  0x7b   :  { %538 = vmatpush.msrb.mxu1 %v402_v15  ;;  %567 = vmatpush.msrb.mxu2 %v409_v24  ;;  %v713_v15 = vld [vmem:[#allocation11 + $0x38] sm:$0xff]  ;;  %v681_v20 = vld [vmem:[%s8141_s12 + $0x28] sm:$0xff]  ;;  %v710_v24 = vld [vmem:[#allocation11 + $0x20] sm:$0xff] }
  0x7c   :  { %519 = vmatpush.msrb.mxu0 %v385_v18  ;;  %584 = vmatpush.msrb.mxu3 %v5006_v29  ;;  %v712_v18 = vld [vmem:[#allocation11 + $0x30] sm:$0xff]  ;;  %v711_v21 = vld [vmem:[#allocation11 + $0x28] sm:$0xff] }
  0x7d   :  { %539 = vmatpush.msrb.mxu1 %v401_v19  ;;  %568 = vmatpush.msrb.mxu2 %v408_v28  ;;  %v648_v19 = vld [vmem:[%s8140_s11 + $0x28] sm:$0xff]  ;;  %v709_v28 = vld [vmem:[#allocation11 + $0x18] sm:$0xff] }
  0x7e   :  { %520 = vmatpush.msrb.mxu0 %v384_v22  ;;  %3743 = vmatmul.msk.f32.vlgmr.msrb.gmra.mxu2 %vm430_vm0, %v423_v32  ;;  %v647_v22 = vld [vmem:[%s8140_s11 + $0x20] sm:$0xff]  ;;  %v708_v32 = vld [vmem:[#allocation11 + $0x10] sm:$0xff] }
  0x7f   :  { %540 = vmatpush.msrb.mxu1 %v400_v23  ;;  %608 = vmatpush.msra.mxu2 %v4995_v25  ;;  %v680_v23 = vld [vmem:[%s8141_s12 + $0x20] sm:$0xff] }
  0x80   :  { %521 = vmatpush.msrb.mxu0 %v383_v26  ;;  %585 = vmatpush.msrb.mxu3 %v5055_v47  ;;  %v646_v26 = vld [vmem:[%s8140_s11 + $0x18] sm:$0xff] }
  0x81   :  { %541 = vmatpush.msrb.mxu1 %v399_v27  ;;  %609 = vmatpush.msra.mxu2 %v5006_v29  ;;  %v679_v27 = vld [vmem:[%s8141_s12 + $0x18] sm:$0xff] }
  0x82   :  { %522 = vmatpush.msrb.mxu0 %v382_v30  ;;  %586 = vmatpush.msrb.mxu3 %v5059_v48  ;;  %v645_v30 = vld [vmem:[%s8140_s11 + $0x10] sm:$0xff] }
  0x83   :  { %542 = vmatpush.msrb.mxu1 %v398_v31  ;;  %610 = vmatpush.msra.mxu2 %v5055_v47  ;;  %v678_v31 = vld [vmem:[%s8141_s12 + $0x10] sm:$0xff] }
  0x84   :  { %523 = vmatpush.msrb.mxu0 %v381_v33  ;;  %587 = vmatpush.msrb.mxu3 %v5063_v49  ;;  %v644_v33 = vld [vmem:[%s8140_s11 + $0x8] sm:$0xff] }
  0x85   :  { %543 = vmatpush.msrb.mxu1 %v397_v34  ;;  %611 = vmatpush.msra.mxu2 %v5059_v48  ;;  %v677_v34 = vld [vmem:[%s8141_s12 + $0x8] sm:$0xff] }
  0x86   :  { %524 = vmatpush.msrb.mxu0 %v380_v35  ;;  %588 = vmatpush.msrb.mxu3 %v5065_v50  ;;  %v707_v35 = vld [vmem:[#allocation11 + $0x8] sm:$0xff] }
  0x87   :  { %544 = vmatpush.msrb.mxu1 %v396_v36  ;;  %612 = vmatpush.msra.mxu2 %v5063_v49  ;;  %v643_v36 = vld [vmem:[%s8140_s11] sm:$0xff] }
  0x88   :  { %525 = vmatpush.msrb.mxu0 %v379_v37  ;;  %589 = vmatpush.msrb.mxu3 %v5071_v51  ;;  %v676_v37 = vld [vmem:[%s8141_s12] sm:$0xff] }
  0x89   :  { %545 = vmatpush.msrb.mxu1 %v395_v38  ;;  %613 = vmatpush.msra.mxu2 %v5065_v50  ;;  %v706_v38 = vld [vmem:[#allocation11] sm:$0xff] }
  0x8a   :  { %526 = vmatpush.msrb.mxu0 %v378_v39  ;;  %590 = vmatpush.msrb.mxu3 %v5075_v52  ;;  %v311_v39 = vld [vmem:[#allocation7 + $0x48] sm:$0xff] }
  0x8b   :  { %546 = vmatpush.msrb.mxu1 %v394_v40  ;;  %614 = vmatpush.msra.mxu2 %v5071_v51  ;;  %v310_v40 = vld [vmem:[#allocation7 + $0x40] sm:$0xff] }
  0x8c   :  { %527 = vmatpush.msrb.mxu0 %v377_v41  ;;  %591 = vmatpush.msrb.mxu3 %v5079_v53  ;;  %v309_v41 = vld [vmem:[#allocation7 + $0x38] sm:$0xff] }
  0x8d   :  { %547 = vmatpush.msrb.mxu1 %v393_v42  ;;  %615 = vmatpush.msra.mxu2 %v5075_v52 }
  0x8e   :  { %528 = vmatpush.msrb.mxu0 %v376_v43  ;;  %592 = vmatpush.msrb.mxu3 %v5083_v54  ;;  %v308_v43 = vld [vmem:[#allocation7 + $0x30] sm:$0xff] }
  0x8f   :  { %548 = vmatpush.msrb.mxu1 %v392_v44  ;;  %529 = vmatmul.f32.vlgmr.msrb.gmra.mxu0 %v421_v45  ;;  %v307_v45 = vld [vmem:[#allocation7 + $0x28] sm:$0xff] }
  0x90   :  { %549 = vmatmul.f32.vlgmr.msrb.gmra.mxu1 %v422_v46  ;;  %616 = vmatpush.msra.mxu2 %v5079_v53  ;;  %v306_v46 = vld [vmem:[#allocation7 + $0x20] sm:$0xff] }
  0x91   :  { %662 = vmatpush.msra.mxu3 %v652_v7  ;;  %722 = vmatpush.msra.mxu0 %v715_v9  ;;  %v837_v9 = vld [vmem:[#allocation13 + $0x40] sm:$0xff] }
  0x92   :  { %617 = vmatpush.msra.mxu2 %v5083_v54  ;;  %745 = vmatpush.msra.mxu1 %v311_v39 }
  0x93   :  { %663 = vmatpush.msra.mxu3 %v651_v10  ;;  %723 = vmatpush.msra.mxu0 %v714_v12  ;;  %v836_v10 = vld [vmem:[#allocation13 + $0x38] sm:$0xff]  ;;  %v834_v12 = vld [vmem:[#allocation13 + $0x28] sm:$0xff] }
  0x94   :  { %692 = vmatpush.msrb.mxu2 %v685_v8  ;;  %746 = vmatpush.msra.mxu1 %v310_v40  ;;  %v302_v8 = vld [vmem:[#allocation7] sm:$0xff] }
  0x95   :  { %664 = vmatpush.msra.mxu3 %v650_v13  ;;  %724 = vmatpush.msra.mxu0 %v713_v15  ;;  %v833_v13 = vld [vmem:[#allocation13 + $0x20] sm:$0xff]  ;;  %v831_v15 = vld [vmem:[#allocation13 + $0x10] sm:$0xff] }
  0x96   :  { %693 = vmatpush.msrb.mxu2 %v684_v11  ;;  %747 = vmatpush.msra.mxu1 %v309_v41  ;;  %v835_v11 = vld [vmem:[#allocation13 + $0x30] sm:$0xff] }
  0x97   :  { %665 = vmatpush.msra.mxu3 %v649_v16  ;;  %725 = vmatpush.msra.mxu0 %v712_v18  ;;  %v830_v16 = vld [vmem:[#allocation13 + $0x8] sm:$0xff] }
  0x98   :  { %694 = vmatpush.msrb.mxu2 %v683_v14  ;;  %748 = vmatpush.msra.mxu1 %v308_v43  ;;  %v832_v14 = vld [vmem:[#allocation13 + $0x18] sm:$0xff] }
  0x99   :  { %666 = vmatpush.msra.mxu3 %v648_v19  ;;  %726 = vmatpush.msra.mxu0 %v711_v21 }
  0x9a   :  { %695 = vmatpush.msrb.mxu2 %v682_v17  ;;  %749 = vmatpush.msra.mxu1 %v307_v45  ;;  %v829_v17 = vld [vmem:[#allocation13] sm:$0xff] }
  0x9b   :  { %667 = vmatpush.msra.mxu3 %v647_v22  ;;  %727 = vmatpush.msra.mxu0 %v710_v24 }
  0x9c   :  { %696 = vmatpush.msrb.mxu2 %v681_v20  ;;  %750 = vmatpush.msra.mxu1 %v306_v46 }
  0x9d   :  { %668 = vmatpush.msra.mxu3 %v646_v26  ;;  %728 = vmatpush.msra.mxu0 %v709_v28 }
  0x9e   :  { %697 = vmatpush.msrb.mxu2 %v680_v23 }
  0x9f   :  { %669 = vmatpush.msra.mxu3 %v645_v30  ;;  %729 = vmatpush.msra.mxu0 %v708_v32 }
  0xa0   :  { %698 = vmatpush.msrb.mxu2 %v679_v27 }
  0xa1   :  { %670 = vmatpush.msra.mxu3 %v644_v33  ;;  %730 = vmatpush.msra.mxu0 %v707_v35 }
  0xa2   :  { %699 = vmatpush.msrb.mxu2 %v678_v31 }
  0xa3   :  { %671 = vmatpush.msra.mxu3 %v643_v36  ;;  %731 = vmatpush.msra.mxu0 %v706_v38 }
  0xa4   :  { %700 = vmatpush.msrb.mxu2 %v677_v34  ;;  %v4090_v34 = vld [vmem:[#allocation14] ss:$0 sm:$0xff] }
  0xa6   :  { %701 = vmatpush.msrb.mxu2 %v676_v37 }
  0xf4   :  { %v450_v55 = vpop.f32.mrf.mxu0 }
  0xf5   :  { %v470_v56 = vpop.f32.mrf.mxu1 }
  0xf6   :  { %v471_v57 = vadd.f32 %v470_v56, %v450_v55  ;;  %v305_v55 = vld [vmem:[#allocation7 + $0x18] sm:$0xff]  ;;  %v304_v56 = vld [vmem:[#allocation7 + $0x10] sm:$0xff] }
  0xf7   :  { %v490_v58 = vpop.f32.mrf.mxu2  ;;  %751 = vmatpush.msra.mxu1 %v305_v55 }
  0xf8   :  { %v491_v59 = vadd.f32 %v490_v58, %v471_v57  ;;  %v510_v60 = vpop.f32.mrf.mxu3 }
  0xf9   :  { %752 = vmatpush.msra.mxu1 %v304_v56 }
  0xfa   :  { %v511_v61 = vadd.f32 %v510_v60, %v491_v59  ;;  %v303_v59 = vld [vmem:[#allocation7 + $0x8] sm:$0xff] }
  0xfb   :  { %753 = vmatpush.msra.mxu1 %v303_v59 }
  0xfd   :  { %754 = vmatpush.msra.mxu1 %v302_v8 }
  0xff   :  { %876 = vmatpush.msrb.mxu1 %v4995_v25 }
 0x101   :  { %v570_v1 = vpop.f32.mrf.mxu2  ;;  %877 = vmatpush.msrb.mxu1 %v5006_v29 }
 0x103   :  { %878 = vmatpush.msrb.mxu1 %v5055_v47 }
 0x105   :  { %879 = vmatpush.msrb.mxu1 %v5059_v48 }
 0x107   :  { %880 = vmatpush.msrb.mxu1 %v5063_v49 }
 0x109   :  { %881 = vmatpush.msrb.mxu1 %v5065_v50 }
 0x10b   :  { %882 = vmatpush.msrb.mxu1 %v5071_v51 }
 0x10c   :  { %v530_v62 = vpop.f32.mrf.mxu0 }
 0x10d   :  { %v550_v63 = vpop.f32.mrf.mxu1  ;;  %v531_v0 = vadd.f32 %v530_v62, %v511_v61  ;;  %883 = vmatpush.msrb.mxu1 %v5075_v52 }
 0x10f   :  { %v551_v2 = vadd.f32 %v550_v63, %v531_v0  ;;  %v4088_v0 = vld [vmem:[#allocation16] ss:$0 sm:$0xff]  ;;  %884 = vmatpush.msrb.mxu1 %v5079_v53 }
 0x111   :  { %v5087_v3 = vadd.f32 %v570_v1, %v551_v2  ;;  %885 = vmatpush.msrb.mxu1 %v5083_v54 }
 0x113   :  { %3744 = vmatmul.msk.f32.vlgmr.msrb.gmra.mxu3 %vm573_vm1, %v5087_v3 }
 0x114   :  { %776 = vmatpush.msrb.mxu3 %v311_v39 }
 0x116   :  { %777 = vmatpush.msrb.mxu3 %v310_v40 }
 0x118   :  { %778 = vmatpush.msrb.mxu3 %v309_v41 }
 0x11a   :  { %779 = vmatpush.msrb.mxu3 %v308_v43 }
 0x11c   :  { %780 = vmatpush.msrb.mxu3 %v307_v45 }
 0x11e   :  { %781 = vmatpush.msrb.mxu3 %v306_v46 }
 0x120   :  { %782 = vmatpush.msrb.mxu3 %v305_v55 }
 0x122   :  { %783 = vmatpush.msrb.mxu3 %v304_v56 }
 0x124   :  { %784 = vmatpush.msrb.mxu3 %v303_v59 }
 0x126   :  { %785 = vmatpush.msrb.mxu3 %v302_v8 }
 0x196   :  { %v594_v4 = vpop.f32.mrf.mxu3 }
 0x197   :  { %v5092_v5 = vsub.f32 %v5087_v3, %v594_v4  ;;  %v4089_v4 = vld [vmem:[#allocation17] ss:$0 sm:$0xff] }
 0x199   :  { %v598_v6 = vmul.f32 %v5092_v5, %v5092_v5 }
 0x19b   :  { %3745 = vmatmul.msk.f32.vlgmr.msra.gmra.mxu2 %vm573_vm1, %v598_v6 }
 0x19c   :  { %814 = vmatpush.msra.mxu2 %v311_v39 }
 0x19e   :  { %815 = vmatpush.msra.mxu2 %v310_v40 }
 0x1a0   :  { %816 = vmatpush.msra.mxu2 %v309_v41  ;;  %v963_v41 = vld [vmem:[%s8149_s20 + $0xd8] sm:$0xff] }
 0x1a2   :  { %817 = vmatpush.msra.mxu2 %v308_v43  ;;  %v960_v43 = vld [vmem:[%s8149_s20 + $0xc0] sm:$0xff] }
 0x1a4   :  { %818 = vmatpush.msra.mxu2 %v307_v45  ;;  %v962_v45 = vld [vmem:[%s8149_s20 + $0xd0] sm:$0xff] }
 0x1a6   :  { %819 = vmatpush.msra.mxu2 %v306_v46  ;;  %v957_v46 = vld [vmem:[%s8149_s20 + $0xa8] sm:$0xff] }
 0x1a8   :  { %820 = vmatpush.msra.mxu2 %v305_v55  ;;  %v958_v55 = vld [vmem:[%s8149_s20 + $0xb0] sm:$0xff] }
 0x1aa   :  { %821 = vmatpush.msra.mxu2 %v304_v56  ;;  %v959_v56 = vld [vmem:[%s8149_s20 + $0xb8] sm:$0xff] }
 0x1ac   :  { %822 = vmatpush.msra.mxu2 %v303_v59  ;;  %v956_v59 = vld [vmem:[%s8149_s20 + $0xa0] sm:$0xff] }
 0x1ae   :  { %823 = vmatpush.msra.mxu2 %v302_v8  ;;  %v943_v8 = vld [vmem:[%s8149_s20 + $0x38] sm:$0xff] }
 0x21e   :  { %v619_v42 = vpop.f32.mrf.mxu2 }
 0x21f   :  { %v620_v44 = vadd.f32 1e-05, %v619_v42  ;;  %v965_v42 = vld [vmem:[%s8149_s20 + $0xe8] sm:$0xff] }
 0x221   :  { %4100 = vrsqrt.f32 %v620_v44  ;;  %vm628_vm3 = vweird.f32 %v620_v44 }
 0x227   :  { %v4101_v57 = vpop.eup %4100 }
 0x228   :  { %v623_v58 = vmul.f32 %v4101_v57, %v620_v44  ;;  %vm629_vm2 = vweird.f32 %v4101_v57  ;;  %v961_v44 = vld [vmem:[%s8149_s20 + $0xc8] sm:$0xff] }
 0x229   :  { %vm630_vm4 = vmor %vm628_vm3, %vm629_vm2 }
 0x22a   :  { %v624_v60 = vmul.f32 %v4101_v57, %v623_v58  ;;  %v955_v58 = vld [vmem:[%s8149_s20 + $0x98] sm:$0xff] }
 0x22c   :  { %v625_v61 = vmul.f32 0.5, %v624_v60  ;;  %v951_v60 = vld [vmem:[%s8149_s20 + $0x78] sm:$0xff] }
 0x22e   :  { %v626_v62 = vsub.f32 1.5, %v625_v61  ;;  %v952_v61 = vld [vmem:[%s8149_s20 + $0x80] sm:$0xff] }
 0x230   :  { %v627_v63 = vmul.f32 %v4101_v57, %v626_v62  ;;  %v953_v62 = vld [vmem:[%s8149_s20 + $0x88] sm:$0xff] }
 0x232   :  { %v631_v1 = vsel %vm630_vm4, %v4101_v57, %v627_v63  ;;  %v954_v57 = vld [vmem:[%s8149_s20 + $0x90] sm:$0xff]  ;;  %v948_v63 = vld [vmem:[%s8149_s20 + $0x60] sm:$0xff] }
 0x233   :  { %v632_v2 = vmul.f32 %v631_v1, %v5092_v5  ;;  %v950_v1 = vld [vmem:[%s8149_s20 + $0x70] sm:$0xff] }
 0x235   :  { %v637_v6 = vmul.f32 %v4088_v0, %v632_v2  ;;  %v949_v0 = vld [vmem:[%s8149_s20 + $0x68] sm:$0xff] }
 0x236   :  { %v945_v2 = vld [vmem:[%s8149_s20 + $0x48] sm:$0xff] }
 0x237   :  { %v642_v7 = vadd.f32 %v4089_v4, %v637_v6  ;;  %v946_v4 = vld [vmem:[%s8149_s20 + $0x50] sm:$0xff]  ;;  %v947_v6 = vld [vmem:[%s8149_s20 + $0x58] sm:$0xff] }
 0x239   :  { %3746 = vmatmul.msk.f32.vlgmr.msra.gmra.mxu3 %vm573_vm1, %v642_v7  ;;  %3747 = vmatmul.msk.f32.vlgmr.msrb.gmra.mxu2 %vm573_vm1, %v642_v7 }
 0x23a   :  { %3748 = vmatmul.msk.f32.vlgmr.msra.gmra.mxu0 %vm573_vm1, %v642_v7  ;;  %901 = vmatpush.msra.mxu3 %v4995_v25  ;;  %v942_v7 = vld [vmem:[%s8149_s20 + $0x30] sm:$0xff] }
 0x23b   :  { %983 = vmatpush.msrb.mxu2 %v963_v41 }
 0x23c   :  { %902 = vmatpush.msra.mxu3 %v5006_v29 }
 0x23d   :  { %984 = vmatpush.msrb.mxu2 %v960_v43  ;;  %v1059_v43 = vld [vmem:[%s8151_s22 + $0x98] sm:$0xff] }
 0x23e   :  { %903 = vmatpush.msra.mxu3 %v5055_v47 }
 0x23f   :  { %985 = vmatpush.msrb.mxu2 %v957_v46 }
 0x240   :  { %904 = vmatpush.msra.mxu3 %v5059_v48 }
 0x241   :  { %986 = vmatpush.msrb.mxu2 %v954_v57 }
 0x242   :  { %905 = vmatpush.msra.mxu3 %v5063_v49 }
 0x243   :  { %987 = vmatpush.msrb.mxu2 %v951_v60  ;;  %v1044_v60 = vld [vmem:[%s8151_s22 + $0x20] sm:$0xff] }
 0x244   :  { %906 = vmatpush.msra.mxu3 %v5065_v50 }
 0x245   :  { %988 = vmatpush.msrb.mxu2 %v948_v63  ;;  %v1043_v63 = vld [vmem:[%s8151_s22 + $0x18] sm:$0xff] }
 0x246   :  { %907 = vmatpush.msra.mxu3 %v5071_v51 }
 0x247   :  { %989 = vmatpush.msrb.mxu2 %v945_v2  ;;  %v1042_v2 = vld [vmem:[%s8151_s22 + $0x10] sm:$0xff] }
 0x248   :  { %908 = vmatpush.msra.mxu3 %v5075_v52 }
 0x249   :  { %990 = vmatpush.msrb.mxu2 %v942_v7  ;;  %v1212_v7 = vld [vmem:[%s8139_s10 + $0x1f8] sm:$0xff] }
 0x24a   :  { %909 = vmatpush.msra.mxu3 %v5079_v53 }
 0x24c   :  { %910 = vmatpush.msra.mxu3 %v5083_v54  ;;  %v838_v54 = vld [vmem:[#allocation13 + $0x48] sm:$0xff] }
 0x24d   :  { %852 = vmatpush.msrb.mxu0 %v838_v54  ;;  %v1054_v54 = vld [vmem:[%s8151_s22 + $0x70] sm:$0xff] }
 0x24f   :  { %853 = vmatpush.msrb.mxu0 %v837_v9  ;;  %v1069_v9 = vld [vmem:[%s8151_s22 + $0xe8] sm:$0xff] }
 0x251   :  { %854 = vmatpush.msrb.mxu0 %v836_v10  ;;  %v1053_v10 = vld [vmem:[%s8151_s22 + $0x68] sm:$0xff] }
 0x253   :  { %855 = vmatpush.msrb.mxu0 %v835_v11 }
 0x255   :  { %856 = vmatpush.msrb.mxu0 %v834_v12  ;;  %v1068_v12 = vld [vmem:[%s8151_s22 + $0xe0] sm:$0xff] }
 0x257   :  { %857 = vmatpush.msrb.mxu0 %v833_v13 }
 0x259   :  { %858 = vmatpush.msrb.mxu0 %v832_v14  ;;  %v1052_v14 = vld [vmem:[%s8151_s22 + $0x60] sm:$0xff] }
 0x25b   :  { %859 = vmatpush.msrb.mxu0 %v831_v15  ;;  %v1079_v15 = vld [vmem:[%s8151_s22 + $0x138] sm:$0xff] }
 0x25d   :  { %860 = vmatpush.msrb.mxu0 %v830_v16  ;;  %v1067_v16 = vld [vmem:[%s8151_s22 + $0xd8] sm:$0xff] }
 0x25f   :  { %861 = vmatpush.msrb.mxu0 %v829_v17  ;;  %v1078_v17 = vld [vmem:[%s8151_s22 + $0x130] sm:$0xff] }
 0x2b7   :  { %v733_v25 = vpop.f32.mrf.mxu0 }
 0x2b8   :  { %3751 = vmatmul.msk.f32.vlgmr.msra.gmra.mxu2 %vm573_vm1, %v733_v25  ;;  %v944_v25 = vld [vmem:[%s8149_s20 + $0x40] sm:$0xff] }
 0x2bc   :  { %v673_v29 = vpop.f32.mrf.mxu3  ;;  %v703_v47 = vpop.f32.mrf.mxu2 }
 0x2bd   :  { %3749 = vmatmul.msk.f32.vlgmr.msra.gmra.mxu1 %vm573_vm1, %v673_v29  ;;  %v939_v29 = vld [vmem:[%s8149_s20 + $0x18] sm:$0xff] }
 0x2be   :  { %1023 = vmatpush.msra.mxu1 %v965_v42  ;;  %991 = vmatpush.msrb.mxu2 %v939_v29  ;;  %v1198_v29 = vld [vmem:[%s8139_s10 + $0x188] sm:$0xff] }
 0x2c0   :  { %1024 = vmatpush.msra.mxu1 %v962_v45 }
 0x2c2   :  { %1025 = vmatpush.msra.mxu1 %v959_v56 }
 0x2c4   :  { %1026 = vmatpush.msra.mxu1 %v956_v59  ;;  %v1058_v59 = vld [vmem:[%s8151_s22 + $0x90] sm:$0xff] }
 0x2c6   :  { %1027 = vmatpush.msra.mxu1 %v953_v62  ;;  %v1073_v62 = vld [vmem:[%s8151_s22 + $0x108] sm:$0xff] }
 0x2c8   :  { %1028 = vmatpush.msra.mxu1 %v950_v1  ;;  %v1072_v1 = vld [vmem:[%s8151_s22 + $0x100] sm:$0xff] }
 0x2ca   :  { %1029 = vmatpush.msra.mxu1 %v947_v6  ;;  %v1040_v6 = vld [vmem:[%s8151_s22] sm:$0xff] }
 0x2cc   :  { %1030 = vmatpush.msra.mxu1 %v944_v25  ;;  %v1213_v25 = vld [vmem:[%s8139_s10 + $0x200] sm:$0xff] }
 0x33a   :  { %v756_v48 = vpop.f32.mrf.mxu1 }
 0x33b   :  { %v759_v49 = vmul.f32 %v756_v48, %v703_v47  ;;  %v825_v32 = vpop.f32.mrf.mxu2  ;;  %v940_v47 = vld [vmem:[%s8149_s20 + $0x20] sm:$0xff]  ;;  %v941_v48 = vld [vmem:[%s8149_s20 + $0x28] sm:$0xff] }
 0x33c   :  { %1031 = vmatpush.msra.mxu1 %v941_v48  ;;  %v1199_v48 = vld [vmem:[%s8139_s10 + $0x190] sm:$0xff] }
 0x33d   :  { %v761_v50 = vsel %vm760_vm5, %v759_v49, -inf }
 0x33e   :  { %762 = vmax.xlane.f32.xlu0 %v761_v50  ;;  %v937_v50 = vld [vmem:[%s8149_s20 + $0x8] sm:$0xff] }
 0x3b1   :  { %v763_v51 = vpop.xlane.xlu0 %762 }
 0x3b2   :  { %v764_v52 = vsub.f32 %v759_v49, %v763_v51  ;;  %v936_v49 = vld [vmem:[%s8149_s20] sm:$0xff]  ;;  %v938_v51 = vld [vmem:[%s8149_s20 + $0x10] sm:$0xff] }
 0x3b3   :  { %992 = vmatpush.msrb.mxu2 %v936_v49  ;;  %1032 = vmatpush.msra.mxu1 %v938_v51  ;;  %v1191_v49 = vld [vmem:[%s8139_s10 + $0x150] sm:$0xff]  ;;  %v1184_v51 = vld [vmem:[%s8139_s10 + $0x118] sm:$0xff] }
 0x3b4   :  { %v765_v53 = vmul.f32 1.442695, %v764_v52  ;;  %v1071_v52 = vld [vmem:[%s8151_s22 + $0xf8] sm:$0xff] }
 0x3b5   :  { %1108 = vmatpush.msra.mxu2 %v1071_v52  ;;  %v1185_v52 = vld [vmem:[%s8139_s10 + $0x120] sm:$0xff] }
 0x3b6   :  { %4102 = vpow2.f32 %v765_v53  ;;  %v1070_v53 = vld [vmem:[%s8151_s22 + $0xf0] sm:$0xff] }
 0x3b7   :  { %1109 = vmatpush.msra.mxu2 %v1070_v53  ;;  %v1177_v53 = vld [vmem:[%s8139_s10 + $0xe0] sm:$0xff] }
 0x3b9   :  { %1110 = vmatpush.msra.mxu2 %v1069_v9  ;;  %v1156_v9 = vld [vmem:[%s8139_s10 + $0x38] sm:$0xff] }
 0x3bb   :  { %1111 = vmatpush.msra.mxu2 %v1068_v12 }
 0x3bc   :  { %v4103_v5 = vpop.eup %4102 }
 0x3bd   :  { %3750 = vmatmul.msk.f32.vlgmr.msrb.gmra.mxu3 %vm573_vm1, %v4103_v5  ;;  %1112 = vmatpush.msra.mxu2 %v1067_v16 }
 0x440   :  { %v787_v18 = vpop.f32.mrf.mxu3 }
 0x441   :  { %4104 = vrcp.f32 %v787_v18  ;;  %v801_v22 = vand.u32 2147483648, %v787_v18  ;;  %v799_v24 = vand.u32 2147483647, %v787_v18  ;;  %vm795_vm7 = vweird.f32 %v787_v18 }
 0x443   :  { %v802_v27 = vor.u32 1.1754944e-38, %v801_v22  ;;  %vm800_vm9 = vcmp.eq.f32.partialorder %v799_v24, 8.507059e+37  ;;  %v1076_v22 = vld [vmem:[%s8151_s22 + $0x120] sm:$0xff]  ;;  %v1049_v24 = vld [vmem:[%s8151_s22 + $0x48] sm:$0xff] }
 0x447   :  { %v4105_v19 = vpop.eup %4104 }
 0x448   :  { %v791_v20 = vmul.f32 %v4105_v19, %v787_v18  ;;  %vm796_vm6 = vweird.f32 %v4105_v19  ;;  %v1051_v18 = vld [vmem:[%s8151_s22 + $0x58] sm:$0xff] }
 0x449   :  { %vm797_vm8 = vmor %vm795_vm7, %vm796_vm6 }
 0x44a   :  { %v792_v21 = vsub.f32 1.0, %v791_v20  ;;  %v1066_v20 = vld [vmem:[%s8151_s22 + $0xd0] sm:$0xff] }
 0x44b   :  { %1113 = vmatpush.msra.mxu2 %v1066_v20 }
 0x44c   :  { %v793_v23 = vmul.f32 %v4105_v19, %v792_v21  ;;  %v1050_v21 = vld [vmem:[%s8151_s22 + $0x50] sm:$0xff] }
 0x44e   :  { %v794_v26 = vadd.f32 %v4105_v19, %v793_v23  ;;  %v1065_v23 = vld [vmem:[%s8151_s22 + $0xc8] sm:$0xff] }
 0x44f   :  { %1114 = vmatpush.msra.mxu2 %v1065_v23  ;;  %v1149_v23 = vld [vmem:[%s8139_s10] sm:$0xff] }
 0x450   :  { %v798_v28 = vsel %vm797_vm8, %v4105_v19, %v794_v26  ;;  %v1077_v19 = vld [vmem:[%s8151_s22 + $0x128] sm:$0xff]  ;;  %v1075_v26 = vld [vmem:[%s8151_s22 + $0x118] sm:$0xff] }
 0x451   :  { %v803_v30 = vsel %vm800_vm9, %v802_v27, %v798_v28  ;;  %v1064_v27 = vld [vmem:[%s8151_s22 + $0xc0] sm:$0xff] }
 0x452   :  { %v804_v31 = vmul.f32 %v4103_v5, %v803_v30  ;;  %v1055_v5 = vld [vmem:[%s8151_s22 + $0x78] sm:$0xff]  ;;  %v1048_v30 = vld [vmem:[%s8151_s22 + $0x40] sm:$0xff]  ;;  %1115 = vmatpush.msra.mxu2 %v1064_v27  ;;  %v1215_v27 = vld [vmem:[%s8139_s10 + $0x210] sm:$0xff] }
 0x453   :  { %1088 = vmatpush.msrb.mxu3 %v1055_v5  ;;  %v1170_v5 = vld [vmem:[%s8139_s10 + $0xa8] sm:$0xff] }
 0x454   :  { %v828_v33 = vmul.f32 %v825_v32, %v804_v31  ;;  %v1063_v32 = vld [vmem:[%s8151_s22 + $0xb8] sm:$0xff] }
 0x455   :  { %1089 = vmatpush.msrb.mxu3 %v1054_v54  ;;  %1116 = vmatpush.msra.mxu2 %v1063_v32  ;;  %v1163_v54 = vld [vmem:[%s8139_s10 + $0x70] sm:$0xff]  ;;  %v1208_v32 = vld [vmem:[%s8139_s10 + $0x1d8] sm:$0xff] }
 0x456   :  { %3752 = vmatmul.msk.f32.vlgmr.msrb.gmra.mxu0 %vm573_vm1, %v828_v33  ;;  %v1047_v33 = vld [vmem:[%s8151_s22 + $0x38] sm:$0xff] }
 0x457   :  { %1090 = vmatpush.msrb.mxu3 %v1053_v10  ;;  %v966_v10 = vld [vmem:[#allocation22] sm:$0x7] }
 0x458   :  { %v970_v12 = vperm.slane %v966_v10, 2 }
 0x459   :  { %1091 = vmatpush.msrb.mxu3 %v1052_v14 }
 0x45b   :  { %1092 = vmatpush.msrb.mxu3 %v1051_v18  ;;  %v968_v18 = vperm.slane %v966_v10, 0 }
 0x45d   :  { %1093 = vmatpush.msrb.mxu3 %v1050_v21 }
 0x45f   :  { %1094 = vmatpush.msrb.mxu3 %v1049_v24  ;;  %v1178_v24 = vld [vmem:[%s8139_s10 + $0xe8] sm:$0xff] }
 0x461   :  { %1095 = vmatpush.msrb.mxu3 %v1048_v30  ;;  %v1171_v30 = vld [vmem:[%s8139_s10 + $0xb0] sm:$0xff] }
 0x463   :  { %1096 = vmatpush.msrb.mxu3 %v1047_v33  ;;  %v1209_v33 = vld [vmem:[%s8139_s10 + $0x1e0] sm:$0xff] }
 0x4d3   :  { %v863_v35 = vpop.f32.mrf.mxu0 }
 0x4d4   :  { %v864_v36 = vadd.f32 %v4090_v34, %v863_v35  ;;  %v1062_v35 = vld [vmem:[%s8151_s22 + $0xb0] sm:$0xff] }
 0x4d5   :  { %1117 = vmatpush.msra.mxu2 %v1062_v35  ;;  %v1200_v35 = vld [vmem:[%s8139_s10 + $0x198] sm:$0xff] }
 0x4d6   :  { %v5187_v37 = vadd.f32 %v864_v36, %v5087_v3  ;;  %v964_v3 = vld [vmem:[%s8149_s20 + $0xe0] sm:$0xff]  ;;  %v1046_v36 = vld [vmem:[%s8151_s22 + $0x30] sm:$0xff] }
 0x4d7   :  { %1003 = vmatpush.msra.mxu0 %v964_v3  ;;  %v1060_v3 = vld [vmem:[%s8151_s22 + $0xa0] sm:$0xff]  ;;  %1097 = vmatpush.msrb.mxu3 %v1046_v36 }
 0x4d8   :  { %3753 = vmatmul.msk.f32.vlgmr.msrb.gmra.mxu1 %vm573_vm1, %v5187_v37  ;;  %v1201_v36 = vld [vmem:[%s8139_s10 + $0x1a0] sm:$0xff] }
 0x4d9   :  { %1004 = vmatpush.msra.mxu0 %v961_v44  ;;  %v4091_v44 = vld [vmem:[#allocation19] ss:$0 sm:$0xff]  ;;  %1228 = vmatpush.msrb.mxu1 %v1212_v7  ;;  %v1160_v7 = vld [vmem:[%s8139_s10 + $0x58] sm:$0xff] }
 0x4db   :  { %1005 = vmatpush.msra.mxu0 %v958_v55  ;;  %v4092_v55 = vld [vmem:[#allocation20] ss:$0 sm:$0xff] }
 0x4dd   :  { %1006 = vmatpush.msra.mxu0 %v955_v58  ;;  %v1045_v58 = vld [vmem:[%s8151_s22 + $0x28] sm:$0xff] }
 0x4de   :  { %1098 = vmatpush.msrb.mxu3 %v1045_v58  ;;  %v1181_v58 = vld [vmem:[%s8139_s10 + $0x100] sm:$0xff] }
 0x4df   :  { %1007 = vmatpush.msra.mxu0 %v952_v61  ;;  %v1057_v61 = vld [vmem:[%s8151_s22 + $0x88] sm:$0xff] }
 0x4e0   :  { %1099 = vmatpush.msrb.mxu3 %v1044_v60  ;;  %v1173_v60 = vld [vmem:[%s8139_s10 + $0xc0] sm:$0xff] }
 0x4e1   :  { %1008 = vmatpush.msra.mxu0 %v949_v0  ;;  %v1056_v0 = vld [vmem:[%s8151_s22 + $0x80] sm:$0xff] }
 0x4e2   :  { %1100 = vmatpush.msrb.mxu3 %v1043_v63  ;;  %v1165_v63 = vld [vmem:[%s8139_s10 + $0x80] sm:$0xff] }
 0x4e3   :  { %1009 = vmatpush.msra.mxu0 %v946_v4  ;;  %v1041_v4 = vld [vmem:[%s8151_s22 + $0x8] sm:$0xff] }
 0x4e4   :  { %1101 = vmatpush.msrb.mxu3 %v1042_v2  ;;  %v1196_v2 = vld [vmem:[%s8139_s10 + $0x178] sm:$0xff] }
 0x4e5   :  { %1010 = vmatpush.msra.mxu0 %v943_v8  ;;  %v1205_v8 = vld [vmem:[%s8139_s10 + $0x1c0] sm:$0xff] }
 0x4e6   :  { %1102 = vmatpush.msrb.mxu3 %v1041_v4  ;;  %1229 = vmatpush.msrb.mxu1 %v1205_v8  ;;  %v1158_v4 = vld [vmem:[%s8139_s10 + $0x48] sm:$0xff]  ;;  %v1189_v8 = vld [vmem:[%s8139_s10 + $0x140] sm:$0xff] }
 0x4e7   :  { %1011 = vmatpush.msra.mxu0 %v940_v47  ;;  %v1206_v47 = vld [vmem:[%s8139_s10 + $0x1c8] sm:$0xff] }
 0x4e8   :  { %1103 = vmatpush.msrb.mxu3 %v1040_v6  ;;  %1230 = vmatpush.msrb.mxu1 %v1198_v29  ;;  %v1159_v6 = vld [vmem:[%s8139_s10 + $0x50] sm:$0xff]  ;;  %v1152_v29 = vld [vmem:[%s8139_s10 + $0x18] sm:$0xff] }
 0x4e9   :  { %1012 = vmatpush.msra.mxu0 %v937_v50  ;;  %v1192_v50 = vld [vmem:[%s8139_s10 + $0x158] sm:$0xff] }
 0x4ea   :  { %1231 = vmatpush.msrb.mxu1 %v1191_v49  ;;  %v1175_v49 = vld [vmem:[%s8139_s10 + $0xd0] sm:$0xff] }
 0x4eb   :  { %1136 = vmatpush.msrb.mxu0 %v1079_v15 }
 0x4ec   :  { %1232 = vmatpush.msrb.mxu1 %v1184_v51  ;;  %v1161_v51 = vld [vmem:[%s8139_s10 + $0x60] sm:$0xff] }
 0x4ed   :  { %1137 = vmatpush.msrb.mxu0 %v1078_v17 }
 0x4ee   :  { %1233 = vmatpush.msrb.mxu1 %v1177_v53  ;;  %v4093_v53 = vld [vmem:[#allocation23] ss:$0 sm:$0xff] }
 0x4ef   :  { %1138 = vmatpush.msrb.mxu0 %v1077_v19 }
 0x4f0   :  { %1234 = vmatpush.msrb.mxu1 %v1170_v5  ;;  %v3781_v5 = vld [vmem:[%s8138_s9 + $0x398] sm:$0xff] }
 0x4f1   :  { %1139 = vmatpush.msrb.mxu0 %v1076_v22 }
 0x4f2   :  { %1235 = vmatpush.msrb.mxu1 %v1163_v54  ;;  %v3797_v54 = vld [vmem:[%s8138_s9 + $0x418] sm:$0xff] }
 0x4f3   :  { %1140 = vmatpush.msrb.mxu0 %v1075_v26  ;;  %v1214_v26 = vld [vmem:[%s8139_s10 + $0x208] sm:$0xff] }
 0x4f4   :  { %1236 = vmatpush.msrb.mxu1 %v1156_v9  ;;  %v3780_v9 = vld [vmem:[%s8138_s9 + $0x390] sm:$0xff] }
 0x4f6   :  { %1237 = vmatpush.msrb.mxu1 %v1149_v23 }
 0x555   :  { %v887_v38 = vpop.f32.mrf.mxu1 }
 0x556   :  { %v5192_v39 = vsub.f32 %v5187_v37, %v887_v38 }
 0x558   :  { %v891_v40 = vmul.f32 %v5192_v39, %v5192_v39 }
 0x55a   :  { %3754 = vmatmul.msk.f32.vlgmr.msra.gmra.mxu3 %vm573_vm1, %v891_v40  ;;  %v1061_v40 = vld [vmem:[%s8151_s22 + $0xa8] sm:$0xff] }
 0x55b   :  { %1118 = vmatpush.msra.mxu2 %v1061_v40  ;;  %1288 = vmatpush.msra.mxu3 %v1215_v27  ;;  %v1157_v40 = vld [vmem:[%s8139_s10 + $0x40] sm:$0xff]  ;;  %v3813_v27 = vld [vmem:[%s8138_s9 + $0x498] sm:$0xff] }
 0x55d   :  { %1119 = vmatpush.msra.mxu2 %v1060_v3  ;;  %1289 = vmatpush.msra.mxu3 %v1208_v32  ;;  %v1194_v3 = vld [vmem:[%s8139_s10 + $0x168] sm:$0xff]  ;;  %v3812_v32 = vld [vmem:[%s8138_s9 + $0x490] sm:$0xff] }
 0x55f   :  { %1120 = vmatpush.msra.mxu2 %v1059_v43  ;;  %1290 = vmatpush.msra.mxu3 %v1201_v36  ;;  %v1150_v43 = vld [vmem:[%s8139_s10 + $0x8] sm:$0xff] }
 0x560   :  { %v3811_v36 = vld [vmem:[%s8138_s9 + $0x488] sm:$0xff] }
 0x561   :  { %1121 = vmatpush.msra.mxu2 %v1058_v59  ;;  %1291 = vmatpush.msra.mxu3 %v1194_v3  ;;  %v1210_v59 = vld [vmem:[%s8139_s10 + $0x1e8] sm:$0xff]  ;;  %v3789_v3 = vld [vmem:[%s8138_s9 + $0x3d8] sm:$0xff] }
 0x563   :  { %1122 = vmatpush.msra.mxu2 %v1057_v61  ;;  %v1174_v61 = vld [vmem:[%s8139_s10 + $0xc8] sm:$0xff] }
 0x565   :  { %1123 = vmatpush.msra.mxu2 %v1056_v0  ;;  %v1166_v0 = vld [vmem:[%s8139_s10 + $0x88] sm:$0xff] }
 0x5dd   :  { %v912_v11 = vpop.f32.mrf.mxu3 }
 0x5de   :  { %v913_v13 = vadd.f32 1e-05, %v912_v11  ;;  %v969_v11 = vperm.slane %v966_v10, 1  ;;  %v3796_v10 = vld [vmem:[%s8138_s9 + $0x410] sm:$0xff] }
 0x5e0   :  { %4106 = vrsqrt.f32 %v913_v13  ;;  %vm921_vm11 = vweird.f32 %v913_v13 }
 0x5e6   :  { %v4107_v28 = vpop.eup %4106 }
 0x5e7   :  { %v916_v31 = vmul.f32 %v4107_v28, %v913_v13  ;;  %vm922_vm10 = vweird.f32 %v4107_v28 }
 0x5e8   :  { %vm923_vm12 = vmor %vm921_vm11, %vm922_vm10 }
 0x5e9   :  { %v917_v34 = vmul.f32 %v4107_v28, %v916_v31  ;;  %v1207_v31 = vld [vmem:[%s8139_s10 + $0x1d0] sm:$0xff] }
 0x5eb   :  { %v918_v38 = vmul.f32 0.5, %v917_v34  ;;  %v1164_v34 = vld [vmem:[%s8139_s10 + $0x78] sm:$0xff] }
 0x5ed   :  { %v919_v41 = vsub.f32 1.5, %v918_v38  ;;  %v1202_v38 = vld [vmem:[%s8139_s10 + $0x1a8] sm:$0xff] }
 0x5ef   :  { %v920_v42 = vmul.f32 %v4107_v28, %v919_v41  ;;  %v1193_v41 = vld [vmem:[%s8139_s10 + $0x160] sm:$0xff] }
 0x5f1   :  { %v924_v45 = vsel %vm923_vm12, %v4107_v28, %v920_v42  ;;  %v1216_v28 = vld [vmem:[%s8139_s10 + $0x218] sm:$0xff]  ;;  %v1195_v42 = vld [vmem:[%s8139_s10 + $0x170] sm:$0xff] }
 0x5f2   :  { %v925_v46 = vmul.f32 %v924_v45, %v5192_v39  ;;  %v1074_v39 = vld [vmem:[%s8151_s22 + $0x110] sm:$0xff] }
 0x5f3   :  { %1141 = vmatpush.msrb.mxu0 %v1074_v39  ;;  %v1187_v45 = vld [vmem:[%s8139_s10 + $0x130] sm:$0xff]  ;;  %v1172_v39 = vld [vmem:[%s8139_s10 + $0xb8] sm:$0xff] }
 0x5f4   :  { %v930_v56 = vmul.f32 %v4091_v44, %v925_v46  ;;  %v1186_v44 = vld [vmem:[%s8139_s10 + $0x128] sm:$0xff]  ;;  %v1188_v46 = vld [vmem:[%s8139_s10 + $0x138] sm:$0xff]  ;;  %1292 = vmatpush.msra.mxu3 %v1187_v45  ;;  %v3788_v45 = vld [vmem:[%s8138_s9 + $0x3d0] sm:$0xff] }
 0x5f5   :  { %1142 = vmatpush.msrb.mxu0 %v1073_v62  ;;  %v1203_v62 = vld [vmem:[%s8139_s10 + $0x1b0] sm:$0xff] }
 0x5f6   :  { %v935_v57 = vadd.f32 %v4092_v55, %v930_v56  ;;  %v1217_v55 = vld [vmem:[%s8139_s10 + $0x220] sm:$0xff]  ;;  %v1179_v56 = vld [vmem:[%s8139_s10 + $0xf0] sm:$0xff] }
 0x5f7   :  { %1143 = vmatpush.msrb.mxu0 %v1072_v1  ;;  %v1167_v1 = vld [vmem:[%s8139_s10 + $0x90] sm:$0xff] }
 0x5f8   :  { %3755 = vmatmul.msk.f32.vlgmr.msrb.gmra.mxu2 %vm573_vm1, %v935_v57  ;;  %3756 = vmatmul.msk.f32.vlgmr.msra.gmra.mxu0 %vm573_vm1, %v935_v57 }
 0x5f9   :  { %3757 = vmatmul.msk.f32.vlgmr.msra.gmra.mxu1 %vm573_vm1, %v935_v57  ;;  %1248 = vmatpush.msra.mxu0 %v1213_v25  ;;  %v1180_v57 = vld [vmem:[%s8139_s10 + $0xf8] sm:$0xff]  ;;  %v1151_v25 = vld [vmem:[%s8139_s10 + $0x10] sm:$0xff] }
 0x5fa   :  { %1268 = vmatpush.msra.mxu1 %v1214_v26  ;;  %1308 = vmatpush.msrb.mxu2 %v1216_v28  ;;  %v3776_v26 = vld [vmem:[%s8138_s9 + $0x370] sm:$0xff] }
 0x5fb   :  { %1249 = vmatpush.msra.mxu0 %v1206_v47  ;;  %1293 = vmatpush.msra.mxu3 %v1180_v57  ;;  %v1153_v47 = vld [vmem:[%s8139_s10 + $0x20] sm:$0xff]  ;;  %v1211_v28 = vld [vmem:[%s8139_s10 + $0x1f0] sm:$0xff]  ;;  %v3787_v57 = vld [vmem:[%s8138_s9 + $0x3c8] sm:$0xff] }
 0x5fc   :  { %1269 = vmatpush.msra.mxu1 %v1207_v31  ;;  %1309 = vmatpush.msrb.mxu2 %v1209_v33  ;;  %v3791_v31 = vld [vmem:[%s8138_s9 + $0x3e8] sm:$0xff]  ;;  %v1204_v33 = vld [vmem:[%s8139_s10 + $0x1b8] sm:$0xff] }
 0x5fd   :  { %1250 = vmatpush.msra.mxu0 %v1199_v48  ;;  %1294 = vmatpush.msra.mxu3 %v1173_v60  ;;  %v1182_v48 = vld [vmem:[%s8139_s10 + $0x108] sm:$0xff]  ;;  %v3786_v60 = vld [vmem:[%s8138_s9 + $0x3c0] sm:$0xff] }
 0x5fe   :  { %1270 = vmatpush.msra.mxu1 %v1200_v35  ;;  %1310 = vmatpush.msrb.mxu2 %v1202_v38  ;;  %v3790_v35 = vld [vmem:[%s8138_s9 + $0x3e0] sm:$0xff] }
 0x5ff   :  { %1251 = vmatpush.msra.mxu0 %v1192_v50  ;;  %1295 = vmatpush.msra.mxu3 %v1166_v0  ;;  %v1168_v50 = vld [vmem:[%s8139_s10 + $0x98] sm:$0xff]  ;;  %v1197_v38 = vld [vmem:[%s8139_s10 + $0x180] sm:$0xff] }
 0x600   :  { %1271 = vmatpush.msra.mxu1 %v1193_v41  ;;  %1311 = vmatpush.msrb.mxu2 %v1195_v42  ;;  %v1190_v41 = vld [vmem:[%s8139_s10 + $0x148] sm:$0xff]  ;;  %v3772_v42 = vld [vmem:[%s8138_s9 + $0x350] sm:$0xff]  ;;  %v3785_v0 = vld [vmem:[%s8138_s9 + $0x3b8] sm:$0xff] }
 0x601   :  { %1252 = vmatpush.msra.mxu0 %v1185_v52  ;;  %1296 = vmatpush.msra.mxu3 %v1159_v6  ;;  %v1154_v52 = vld [vmem:[%s8139_s10 + $0x28] sm:$0xff]  ;;  %v3784_v6 = vld [vmem:[%s8138_s9 + $0x3b0] sm:$0xff] }
 0x602   :  { %1272 = vmatpush.msra.mxu1 %v1186_v44  ;;  %1312 = vmatpush.msrb.mxu2 %v1188_v46  ;;  %v1183_v44 = vld [vmem:[%s8139_s10 + $0x110] sm:$0xff]  ;;  %v3771_v46 = vld [vmem:[%s8138_s9 + $0x348] sm:$0xff] }
 0x603   :  { %1253 = vmatpush.msra.mxu0 %v1178_v24  ;;  %1297 = vmatpush.msra.mxu3 %v1152_v29  ;;  %v1218_v24 = vld [vmem:[%s8139_s10 + $0x228] sm:$0xff]  ;;  %v3766_v29 = vld [vmem:[%s8138_s9 + $0x320] sm:$0xff] }
 0x604   :  { %1273 = vmatpush.msra.mxu1 %v1179_v56  ;;  %1313 = vmatpush.msrb.mxu2 %v1181_v58  ;;  %v1176_v56 = vld [vmem:[%s8139_s10 + $0xd8] sm:$0xff]  ;;  %v3770_v58 = vld [vmem:[%s8138_s9 + $0x340] sm:$0xff] }
 0x605   :  { %1254 = vmatpush.msra.mxu0 %v1171_v30  ;;  %v3775_v30 = vld [vmem:[%s8138_s9 + $0x368] sm:$0xff] }
 0x606   :  { %1274 = vmatpush.msra.mxu1 %v1172_v39  ;;  %1314 = vmatpush.msrb.mxu2 %v1174_v61  ;;  %v1169_v39 = vld [vmem:[%s8139_s10 + $0xa0] sm:$0xff]  ;;  %v3769_v61 = vld [vmem:[%s8138_s9 + $0x338] sm:$0xff] }
 0x607   :  { %1255 = vmatpush.msra.mxu0 %v1164_v34  ;;  %v3774_v34 = vld [vmem:[%s8138_s9 + $0x360] sm:$0xff] }
 0x608   :  { %1275 = vmatpush.msra.mxu1 %v1165_v63  ;;  %1315 = vmatpush.msrb.mxu2 %v1167_v1  ;;  %v1162_v63 = vld [vmem:[%s8139_s10 + $0x68] sm:$0xff]  ;;  %v3768_v1 = vld [vmem:[%s8138_s9 + $0x330] sm:$0xff] }
 0x609   :  { %1256 = vmatpush.msra.mxu0 %v1157_v40  ;;  %v3773_v40 = vld [vmem:[%s8138_s9 + $0x358] sm:$0xff] }
 0x60a   :  { %1276 = vmatpush.msra.mxu1 %v1158_v4  ;;  %1316 = vmatpush.msrb.mxu2 %v1160_v7  ;;  %v1155_v4 = vld [vmem:[%s8139_s10 + $0x30] sm:$0xff]  ;;  %v3767_v7 = vld [vmem:[%s8138_s9 + $0x328] sm:$0xff] }
 0x60b   :  { %1257 = vmatpush.msra.mxu0 %v1150_v43  ;;  %v3810_v43 = vld [vmem:[%s8138_s9 + $0x480] sm:$0xff] }
 0x60c   :  { %1277 = vmatpush.msra.mxu1 %v1151_v25  ;;  %1317 = vmatpush.msrb.mxu2 %v1153_v47  ;;  %v3829_v25 = vld [vmem:[%s8138_s9 + $0x518] sm:$0xff] }
 0x60d   :  { %v3805_v47 = vld [vmem:[%s8138_s9 + $0x458] sm:$0xff] }
 0x675   :  { %v1014_v13 = vpop.f32.mrf.mxu0 }
 0x676   :  { %v1015_v14 = vadd.f32 %v1014_v13, %v969_v11  ;;  %v1034_v15 = vpop.f32.mrf.mxu1  ;;  %v3795_v13 = vld [vmem:[%s8138_s9 + $0x408] sm:$0xff] }
 0x677   :  { %v1035_v16 = vadd.f32 %v1034_v15, %v970_v12  ;;  %v3779_v12 = vld [vmem:[%s8138_s9 + $0x388] sm:$0xff] }
 0x678   :  { %v1038_v17 = vmax.f32 %v1015_v14, 0.0 }
 0x679   :  { %v1039_v19 = vmax.f32 %v1035_v16, 0.0  ;;  %v3778_v16 = vld [vmem:[%s8138_s9 + $0x380] sm:$0xff] }
 0x67a   :  { %1124 = vmatmul.f32.vlgmr.msra.gmra.mxu2 %v1038_v17  ;;  %v3794_v17 = vld [vmem:[%s8138_s9 + $0x400] sm:$0xff] }
 0x67b   :  { %3758 = vmatmul.msk.f32.vlgmr.msrb.gmra.mxu0 %vm1084_vm13, %v1039_v19  ;;  %v994_v20 = vpop.f32.mrf.mxu2  ;;  %1486 = vmatpush.msra.mxu2 %v3797_v54  ;;  %v3860_v54 = vld [vmem:[%s8138_s9 + $0x610] sm:$0xff] }
 0x67c   :  { %v995_v21 = vadd.f32 %v994_v20, %v968_v18  ;;  %1328 = vmatpush.msrb.mxu0 %v1217_v55  ;;  %v3777_v20 = vld [vmem:[%s8138_s9 + $0x378] sm:$0xff] }
 0x67d   :  { %1487 = vmatpush.msra.mxu2 %v3796_v10  ;;  %v3809_v55 = vld [vmem:[%s8138_s9 + $0x478] sm:$0xff]  ;;  %v3803_v10 = vld [vmem:[%s8138_s9 + $0x448] sm:$0xff] }
 0x67e   :  { %v1037_v22 = vmax.f32 %v995_v21, 0.0  ;;  %1329 = vmatpush.msrb.mxu0 %v1210_v59  ;;  %v3793_v21 = vld [vmem:[%s8138_s9 + $0x3f8] sm:$0xff]  ;;  %v3808_v59 = vld [vmem:[%s8138_s9 + $0x470] sm:$0xff] }
 0x67f   :  { %1488 = vmatpush.msra.mxu2 %v3795_v13  ;;  %v3825_v13 = vld [vmem:[%s8138_s9 + $0x4f8] sm:$0xff] }
 0x680   :  { %1104 = vmatmul.f32.vlgmr.msrb.gmra.mxu3 %v1037_v22  ;;  %1330 = vmatpush.msrb.mxu0 %v1203_v62  ;;  %v3807_v62 = vld [vmem:[%s8138_s9 + $0x468] sm:$0xff] }
 0x681   :  { %1466 = vmatpush.msrb.mxu3 %v3781_v5  ;;  %1489 = vmatpush.msra.mxu2 %v3794_v17  ;;  %v3844_v5 = vld [vmem:[%s8138_s9 + $0x590] sm:$0xff]  ;;  %v3841_v17 = vld [vmem:[%s8138_s9 + $0x578] sm:$0xff] }
 0x682   :  { %1331 = vmatpush.msrb.mxu0 %v1196_v2  ;;  %v3806_v2 = vld [vmem:[%s8138_s9 + $0x460] sm:$0xff] }
 0x683   :  { %1467 = vmatpush.msrb.mxu3 %v3780_v9  ;;  %1490 = vmatpush.msra.mxu2 %v3793_v21  ;;  %v3826_v9 = vld [vmem:[%s8138_s9 + $0x500] sm:$0xff]  ;;  %v3856_v21 = vld [vmem:[%s8138_s9 + $0x5f0] sm:$0xff] }
 0x684   :  { %1332 = vmatpush.msrb.mxu0 %v1189_v8  ;;  %v3783_v8 = vld [vmem:[%s8138_s9 + $0x3a8] sm:$0xff] }
 0x685   :  { %1468 = vmatpush.msrb.mxu3 %v3779_v12  ;;  %v3859_v12 = vld [vmem:[%s8138_s9 + $0x608] sm:$0xff] }
 0x686   :  { %1333 = vmatpush.msrb.mxu0 %v1182_v48  ;;  %v3782_v48 = vld [vmem:[%s8138_s9 + $0x3a0] sm:$0xff] }
 0x687   :  { %1469 = vmatpush.msrb.mxu3 %v3778_v16  ;;  %v3824_v16 = vld [vmem:[%s8138_s9 + $0x4f0] sm:$0xff] }
 0x688   :  { %1334 = vmatpush.msrb.mxu0 %v1175_v49  ;;  %v3828_v49 = vld [vmem:[%s8138_s9 + $0x510] sm:$0xff] }
 0x689   :  { %1470 = vmatpush.msrb.mxu3 %v3777_v20  ;;  %v3840_v20 = vld [vmem:[%s8138_s9 + $0x570] sm:$0xff] }
 0x68a   :  { %1335 = vmatpush.msrb.mxu0 %v1168_v50  ;;  %v3845_v50 = vld [vmem:[%s8138_s9 + $0x598] sm:$0xff] }
 0x68b   :  { %1471 = vmatpush.msrb.mxu3 %v3776_v26  ;;  %v3821_v26 = vld [vmem:[%s8138_s9 + $0x4d8] sm:$0xff] }
 0x68c   :  { %1336 = vmatpush.msrb.mxu0 %v1161_v51  ;;  %v3861_v51 = vld [vmem:[%s8138_s9 + $0x618] sm:$0xff] }
 0x68d   :  { %1472 = vmatpush.msrb.mxu3 %v3775_v30  ;;  %v3837_v30 = vld [vmem:[%s8138_s9 + $0x558] sm:$0xff] }
 0x68e   :  { %1337 = vmatpush.msrb.mxu0 %v1154_v52  ;;  %v3827_v52 = vld [vmem:[%s8138_s9 + $0x508] sm:$0xff] }
 0x68f   :  { %1473 = vmatpush.msrb.mxu3 %v3774_v34  ;;  %v3852_v34 = vld [vmem:[%s8138_s9 + $0x5d0] sm:$0xff] }
 0x691   :  { %1474 = vmatpush.msrb.mxu3 %v3773_v40  ;;  %v3802_v40 = vld [vmem:[%s8138_s9 + $0x440] sm:$0xff] }
 0x693   :  { %1475 = vmatpush.msrb.mxu3 %v3772_v42  ;;  %v3850_v42 = vld [vmem:[%s8138_s9 + $0x5c0] sm:$0xff] }
 0x695   :  { %1476 = vmatpush.msrb.mxu3 %v3771_v46  ;;  %v3849_v46 = vld [vmem:[%s8138_s9 + $0x5b8] sm:$0xff] }
 0x697   :  { %1477 = vmatpush.msrb.mxu3 %v3770_v58  ;;  %v3848_v58 = vld [vmem:[%s8138_s9 + $0x5b0] sm:$0xff] }
 0x699   :  { %1478 = vmatpush.msrb.mxu3 %v3769_v61  ;;  %v3847_v61 = vld [vmem:[%s8138_s9 + $0x5a8] sm:$0xff] }
 0x69b   :  { %1479 = vmatpush.msrb.mxu3 %v3768_v1  ;;  %v5927_v1 = vld [vmem:[#allocation5 + $0x48] sm:$0xff] }
 0x69d   :  { %1480 = vmatpush.msrb.mxu3 %v3767_v7  ;;  %v5942_v7 = vld [vmem:[#allocation5 + $0x28] sm:$0xff] }
 0x69f   :  { %1481 = vmatpush.msrb.mxu3 %v3766_v29  ;;  %v5954_v29 = vld [vmem:[#allocation5 + $0x10] sm:$0xff] }
 0x6f8   :  { %v1145_v19 = vpop.f32.mrf.mxu0 }
 0x6fd   :  { %v1125_v15 = vpop.f32.mrf.mxu2 }
 0x703   :  { %v1105_v11 = vpop.f32.mrf.mxu3 }
 0x704   :  { %v1106_v14 = vadd.f32 %v4093_v53, %v1105_v11  ;;  %v3804_v53 = vld [vmem:[%s8138_s9 + $0x450] sm:$0xff]  ;;  %v3843_v11 = vld [vmem:[%s8138_s9 + $0x588] sm:$0xff] }
 0x706   :  { %v1126_v18 = vadd.f32 %v1125_v15, %v1106_v14  ;;  %v3842_v14 = vld [vmem:[%s8138_s9 + $0x580] sm:$0xff] }
 0x707   :  { %v3858_v15 = vld [vmem:[%s8138_s9 + $0x600] sm:$0xff] }
 0x708   :  { %v1146_v22 = vadd.f32 %v1145_v19, %v1126_v18  ;;  %v3857_v18 = vld [vmem:[%s8138_s9 + $0x5f8] sm:$0xff]  ;;  %v3823_v19 = vld [vmem:[%s8138_s9 + $0x4e8] sm:$0xff] }
 0x70a   :  { %v5623_v23 = vadd.f32 %v1146_v22, %v5187_v37  ;;  %v3792_v37 = vld [vmem:[%s8138_s9 + $0x3f0] sm:$0xff]  ;;  %v3822_v22 = vld [vmem:[%s8138_s9 + $0x4e0] sm:$0xff] }
 0x70b   :  { %1491 = vmatpush.msra.mxu2 %v3792_v37  ;;  %v3838_v37 = vld [vmem:[%s8138_s9 + $0x560] sm:$0xff] }
 0x70c   :  { %3759 = vmatmul.msk.f32.vlgmr.msrb.gmra.mxu1 %vm573_vm1, %v5623_v23  ;;  %3760 = vmatmul.msk.f32.vlgmr.msra.gmra.mxu0 %vm573_vm1, %v5623_v23 }
 0x70d   :  { %3762 = vmatmul.msk.f32.vlgmr.msra.gmra.mxu3 %vm573_vm1, %v5623_v23  ;;  %3763 = vmatmul.msk.f32.vlgmr.msrb.gmra.mxu2 %vm573_vm1, %v5623_v23 }
 0x70e   :  { %1348 = vmatpush.msrb.mxu1 %v1218_v24  ;;  %1506 = vmatpush.msra.mxu0 %v3813_v27  ;;  %v3855_v24 = vld [vmem:[%s8138_s9 + $0x5e8] sm:$0xff]  ;;  %v3854_v27 = vld [vmem:[%s8138_s9 + $0x5e0] sm:$0xff] }
 0x70f   :  { %1492 = vmatpush.msra.mxu2 %v3791_v31  ;;  %1546 = vmatpush.msra.mxu3 %v3845_v50  ;;  %v3853_v31 = vld [vmem:[%s8138_s9 + $0x5d8] sm:$0xff] }
 0x710   :  { %1349 = vmatpush.msrb.mxu1 %v1211_v28  ;;  %1507 = vmatpush.msra.mxu0 %v3812_v32  ;;  %v3820_v28 = vld [vmem:[%s8138_s9 + $0x4d0] sm:$0xff]  ;;  %v3819_v32 = vld [vmem:[%s8138_s9 + $0x4c8] sm:$0xff] }
 0x711   :  { %1493 = vmatpush.msra.mxu2 %v3790_v35  ;;  %1547 = vmatpush.msra.mxu3 %v3844_v5  ;;  %v3818_v35 = vld [vmem:[%s8138_s9 + $0x4c0] sm:$0xff] }
 0x712   :  { %1350 = vmatpush.msrb.mxu1 %v1204_v33  ;;  %1508 = vmatpush.msra.mxu0 %v3811_v36  ;;  %v3836_v33 = vld [vmem:[%s8138_s9 + $0x550] sm:$0xff]  ;;  %v3835_v36 = vld [vmem:[%s8138_s9 + $0x548] sm:$0xff]  ;;  %v3862_v5 = vld [vmem:[%s8138_s9 + $0x620] sm:$0xff] }
 0x713   :  { %1494 = vmatpush.msra.mxu2 %v3789_v3  ;;  %1548 = vmatpush.msra.mxu3 %v3843_v11  ;;  %v3834_v3 = vld [vmem:[%s8138_s9 + $0x540] sm:$0xff] }
 0x714   :  { %1351 = vmatpush.msrb.mxu1 %v1197_v38  ;;  %3764 = vmatmul.msk.f32.vlgmr.msrb.gmra.mxu0 %vm573_vm1, %v5623_v23  ;;  %v3851_v38 = vld [vmem:[%s8138_s9 + $0x5c8] sm:$0xff] }
 0x715   :  { %3761 = vmatmul.msk.f32.vlgmr.msra.gmra.mxu1 %vm573_vm1, %v5623_v23  ;;  %1509 = vmatpush.msra.mxu0 %v3810_v43  ;;  %v3801_v43 = vld [vmem:[%s8138_s9 + $0x438] sm:$0xff] }
 0x716   :  { %1352 = vmatpush.msrb.mxu1 %v1190_v41  ;;  %1495 = vmatpush.msra.mxu2 %v3788_v45  ;;  %v3817_v41 = vld [vmem:[%s8138_s9 + $0x4b8] sm:$0xff] }
 0x717   :  { %1510 = vmatpush.msra.mxu0 %v3809_v55  ;;  %1549 = vmatpush.msra.mxu3 %v3842_v14  ;;  %v3833_v45 = vld [vmem:[%s8138_s9 + $0x538] sm:$0xff]  ;;  %v3800_v55 = vld [vmem:[%s8138_s9 + $0x430] sm:$0xff] }
 0x718   :  { %1353 = vmatpush.msrb.mxu1 %v1183_v44  ;;  %1496 = vmatpush.msra.mxu2 %v3787_v57  ;;  %v3816_v44 = vld [vmem:[%s8138_s9 + $0x4b0] sm:$0xff]  ;;  %v5985_v14 = vld [vmem:[#allocation7 + $0x38] sm:$0xff] }
 0x719   :  { %1511 = vmatpush.msra.mxu0 %v3808_v59  ;;  %1550 = vmatpush.msra.mxu3 %v3841_v17  ;;  %v3832_v57 = vld [vmem:[%s8138_s9 + $0x530] sm:$0xff]  ;;  %v3799_v59 = vld [vmem:[%s8138_s9 + $0x428] sm:$0xff] }
 0x71a   :  { %1354 = vmatpush.msrb.mxu1 %v1176_v56  ;;  %1497 = vmatpush.msra.mxu2 %v3786_v60  ;;  %v3815_v56 = vld [vmem:[%s8138_s9 + $0x4a8] sm:$0xff] }
 0x71b   :  { %1512 = vmatpush.msra.mxu0 %v3807_v62  ;;  %1551 = vmatpush.msra.mxu3 %v3840_v20  ;;  %v3831_v60 = vld [vmem:[%s8138_s9 + $0x528] sm:$0xff]  ;;  %v3798_v62 = vld [vmem:[%s8138_s9 + $0x420] sm:$0xff]  ;;  %v6001_v20 = vld [vmem:[#allocation7 + $0x10] sm:$0xff] }
 0x71c   :  { %1355 = vmatpush.msrb.mxu1 %v1169_v39  ;;  %1498 = vmatpush.msra.mxu2 %v3785_v0  ;;  %v3814_v39 = vld [vmem:[%s8138_s9 + $0x4a0] sm:$0xff] }
 0x71d   :  { %1513 = vmatpush.msra.mxu0 %v3806_v2  ;;  %v3846_v0 = vld [vmem:[%s8138_s9 + $0x5a0] sm:$0xff]  ;;  %v5930_v2 = vld [vmem:[#allocation5 + $0x40] sm:$0xff] }
 0x71e   :  { %1356 = vmatpush.msrb.mxu1 %v1162_v63  ;;  %1499 = vmatpush.msra.mxu2 %v3784_v6  ;;  %v3830_v63 = vld [vmem:[%s8138_s9 + $0x520] sm:$0xff] }
 0x71f   :  { %1514 = vmatpush.msra.mxu0 %v3805_v47  ;;  %v5938_v6 = vld [vmem:[#allocation5 + $0x30] sm:$0xff]  ;;  %v5958_v47 = vld [vmem:[#allocation5 + $0x8] sm:$0xff] }
 0x720   :  { %1357 = vmatpush.msrb.mxu1 %v1155_v4  ;;  %1500 = vmatpush.msra.mxu2 %v3783_v8  ;;  %v5934_v4 = vld [vmem:[#allocation5 + $0x38] sm:$0xff]  ;;  %v5946_v8 = vld [vmem:[#allocation5 + $0x20] sm:$0xff] }
 0x721   :  { %3765 = vmatmul.msk.f32.vlgmr.msrb.gmra.mxu1 %vm573_vm1, %v5623_v23  ;;  %1515 = vmatpush.msra.mxu0 %v3804_v53  ;;  %v3839_v23 = vld [vmem:[%s8138_s9 + $0x568] sm:$0xff] }
 0x722   :  { %1526 = vmatpush.msra.mxu1 %v3829_v25  ;;  %1501 = vmatpush.msra.mxu2 %v3782_v48  ;;  %v5950_v25 = vld [vmem:[#allocation5 + $0x18] sm:$0xff]  ;;  %v5962_v48 = vld [vmem:[#allocation5] sm:$0xff] }
 0x723   :  { %1516 = vmatpush.msra.mxu0 %v3803_v10  ;;  %1552 = vmatpush.msra.mxu3 %v3839_v23  ;;  %v3863_v53 = vld [vmem:[%s8138_s9 + $0x628] sm:$0xff] }
 0x724   :  { %1527 = vmatpush.msra.mxu1 %v3828_v49  ;;  %1566 = vmatpush.msrb.mxu2 %v3861_v51  ;;  %v3865_v49 = vld [vmem:[%s8138_s9 + $0x638] sm:$0xff] }
 0x725   :  { %1553 = vmatpush.msra.mxu3 %v3838_v37  ;;  %1517 = vmatpush.msra.mxu0 %v3802_v40 }
 0x726   :  { %1528 = vmatpush.msra.mxu1 %v3827_v52  ;;  %1567 = vmatpush.msrb.mxu2 %v3860_v54  ;;  %v3864_v52 = vld [vmem:[%s8138_s9 + $0x630] sm:$0xff] }
 0x727   :  { %1554 = vmatpush.msra.mxu3 %v3837_v30  ;;  %1518 = vmatpush.msra.mxu0 %v3801_v43  ;;  %v1752_v43 = vld [vmem:[#allocation11 + $0x98] sm:$0xff] }
 0x728   :  { %1529 = vmatpush.msra.mxu1 %v3826_v9  ;;  %1568 = vmatpush.msrb.mxu2 %v3859_v12  ;;  %v5979_v12 = vld [vmem:[#allocation7 + $0x48] sm:$0xff] }
 0x729   :  { %1555 = vmatpush.msra.mxu3 %v3836_v33  ;;  %1519 = vmatpush.msra.mxu0 %v3800_v55  ;;  %v3876_v55 = vld [vmem:[%s8140_s11 + $0x88] sm:$0xff] }
 0x72a   :  { %1530 = vmatpush.msra.mxu1 %v3825_v13  ;;  %1569 = vmatpush.msrb.mxu2 %v3858_v15  ;;  %v5982_v13 = vld [vmem:[#allocation7 + $0x40] sm:$0xff]  ;;  %v5988_v15 = vld [vmem:[#allocation7 + $0x30] sm:$0xff] }
 0x72b   :  { %1556 = vmatpush.msra.mxu3 %v3835_v36  ;;  %1520 = vmatpush.msra.mxu0 %v3799_v59  ;;  %v3886_v59 = vld [vmem:[%s8141_s12 + $0x80] sm:$0xff] }
 0x72c   :  { %1531 = vmatpush.msra.mxu1 %v3824_v16  ;;  %1570 = vmatpush.msrb.mxu2 %v3857_v18  ;;  %v5991_v16 = vld [vmem:[#allocation7 + $0x28] sm:$0xff]  ;;  %v5994_v18 = vld [vmem:[#allocation7 + $0x20] sm:$0xff] }
 0x72d   :  { %1557 = vmatpush.msra.mxu3 %v3834_v3  ;;  %1521 = vmatpush.msra.mxu0 %v3798_v62  ;;  %v3878_v3 = vld [vmem:[%s8140_s11 + $0x98] sm:$0xff] }
 0x72e   :  { %1532 = vmatpush.msra.mxu1 %v3823_v19  ;;  %1571 = vmatpush.msrb.mxu2 %v3856_v21  ;;  %v5998_v19 = vld [vmem:[#allocation7 + $0x18] sm:$0xff]  ;;  %v6004_v21 = vld [vmem:[#allocation7 + $0x8] sm:$0xff] }
 0x72f   :  { %1558 = vmatpush.msra.mxu3 %v3833_v45  ;;  %1640 = vmatpush.msrb.mxu0 %v5927_v1  ;;  %v3888_v45 = vld [vmem:[%s8141_s12 + $0x90] sm:$0xff]  ;;  %v1748_v62 = vld [vmem:[#allocation11 + $0x78] sm:$0xff] }
 0x730   :  { %1533 = vmatpush.msra.mxu1 %v3822_v22  ;;  %1572 = vmatpush.msrb.mxu2 %v3855_v24  ;;  %v6007_v22 = vld [vmem:[#allocation7] sm:$0xff] }
 0x731   :  { %1559 = vmatpush.msra.mxu3 %v3832_v57  ;;  %1641 = vmatpush.msrb.mxu0 %v5930_v2  ;;  %v1750_v57 = vld [vmem:[#allocation11 + $0x88] sm:$0xff] }
 0x732   :  { %1534 = vmatpush.msra.mxu1 %v3821_v26  ;;  %1573 = vmatpush.msrb.mxu2 %v3854_v27 }
 0x733   :  { %1560 = vmatpush.msra.mxu3 %v3831_v60  ;;  %1642 = vmatpush.msrb.mxu0 %v5934_v4  ;;  %v3874_v60 = vld [vmem:[%s8140_s11 + $0x78] sm:$0xff] }
 0x734   :  { %1535 = vmatpush.msra.mxu1 %v3820_v28  ;;  %1574 = vmatpush.msrb.mxu2 %v3853_v31 }
 0x735   :  { %1561 = vmatpush.msra.mxu3 %v3830_v63  ;;  %1643 = vmatpush.msrb.mxu0 %v5938_v6  ;;  %v3873_v63 = vld [vmem:[%s8140_s11 + $0x70] sm:$0xff] }
 0x736   :  { %1536 = vmatpush.msra.mxu1 %v3819_v32  ;;  %1575 = vmatpush.msrb.mxu2 %v3852_v34 }
 0x737   :  { %1644 = vmatpush.msrb.mxu0 %v5942_v7 }
 0x738   :  { %1537 = vmatpush.msra.mxu1 %v3818_v35  ;;  %1576 = vmatpush.msrb.mxu2 %v3851_v38 }
 0x739   :  { %1645 = vmatpush.msrb.mxu0 %v5946_v8 }
 0x73a   :  { %1538 = vmatpush.msra.mxu1 %v3817_v41  ;;  %1577 = vmatpush.msrb.mxu2 %v3850_v42  ;;  %v3889_v42 = vld [vmem:[%s8141_s12 + $0x98] sm:$0xff] }
 0x73b   :  { %1646 = vmatpush.msrb.mxu0 %v5950_v25 }
 0x73c   :  { %1539 = vmatpush.msra.mxu1 %v3816_v44  ;;  %1578 = vmatpush.msrb.mxu2 %v3849_v46  ;;  %v3877_v44 = vld [vmem:[%s8140_s11 + $0x90] sm:$0xff] }
 0x73d   :  { %1647 = vmatpush.msrb.mxu0 %v5954_v29  ;;  %v1751_v46 = vld [vmem:[#allocation11 + $0x90] sm:$0xff] }
 0x73e   :  { %1540 = vmatpush.msra.mxu1 %v3815_v56  ;;  %1579 = vmatpush.msrb.mxu2 %v3848_v58  ;;  %v3887_v56 = vld [vmem:[%s8141_s12 + $0x88] sm:$0xff]  ;;  %v3875_v58 = vld [vmem:[%s8140_s11 + $0x80] sm:$0xff] }
 0x73f   :  { %1648 = vmatpush.msrb.mxu0 %v5958_v47 }
 0x740   :  { %1541 = vmatpush.msra.mxu1 %v3814_v39  ;;  %1580 = vmatpush.msrb.mxu2 %v3847_v61  ;;  %v1749_v39 = vld [vmem:[#allocation11 + $0x80] sm:$0xff]  ;;  %v3885_v61 = vld [vmem:[%s8141_s12 + $0x78] sm:$0xff] }
 0x741   :  { %1649 = vmatpush.msrb.mxu0 %v5962_v48 }
 0x742   :  { %1615 = vmatpush.msrb.mxu1 %v5927_v1  ;;  %1581 = vmatpush.msrb.mxu2 %v3846_v0  ;;  %v3884_v0 = vld [vmem:[%s8141_s12 + $0x70] sm:$0xff] }
 0x744   :  { %1616 = vmatpush.msrb.mxu1 %v5930_v2 }
 0x746   :  { %1617 = vmatpush.msrb.mxu1 %v5934_v4 }
 0x748   :  { %1618 = vmatpush.msrb.mxu1 %v5938_v6 }
 0x74a   :  { %1619 = vmatpush.msrb.mxu1 %v5942_v7 }
 0x74c   :  { %1620 = vmatpush.msrb.mxu1 %v5946_v8 }
 0x74e   :  { %1621 = vmatpush.msrb.mxu1 %v5950_v25 }
 0x750   :  { %1622 = vmatpush.msrb.mxu1 %v5954_v29 }
 0x752   :  { %1623 = vmatpush.msrb.mxu1 %v5958_v47 }
 0x754   :  { %1624 = vmatpush.msrb.mxu1 %v5962_v48 }
 0x789   :  { %v1239_v50 = vpop.f32.mrf.mxu1  ;;  %v1259_v51 = vpop.f32.mrf.mxu0 }
 0x78a   :  { %1482 = vmatmul.f32.vlgmr.msrb.gmra.mxu3 %v1239_v50  ;;  %1502 = vmatmul.f32.vlgmr.msra.gmra.mxu2 %v1259_v51  ;;  %v3872_v50 = vld [vmem:[%s8140_s11 + $0x68] sm:$0xff] }
 0x78b   :  { %1598 = vmatpush.msrb.mxu3 %v3865_v49  ;;  %1759 = vmatpush.msra.mxu2 %v1752_v43  ;;  %v1747_v49 = vld [vmem:[#allocation11 + $0x70] sm:$0xff]  ;;  %v3883_v51 = vld [vmem:[%s8141_s12 + $0x68] sm:$0xff] }
 0x78d   :  { %1599 = vmatpush.msrb.mxu3 %v3864_v52  ;;  %1760 = vmatpush.msra.mxu2 %v1751_v46  ;;  %v1746_v52 = vld [vmem:[#allocation11 + $0x68] sm:$0xff] }
 0x78f   :  { %1600 = vmatpush.msrb.mxu3 %v3863_v53  ;;  %1761 = vmatpush.msra.mxu2 %v1750_v57  ;;  %v3871_v53 = vld [vmem:[%s8140_s11 + $0x60] sm:$0xff] }
 0x790   :  { %v1299_v54 = vpop.f32.mrf.mxu3  ;;  %v1319_v9 = vpop.f32.mrf.mxu2 }
 0x791   :  { %1542 = vmatmul.f32.vlgmr.msra.gmra.mxu1 %v1299_v54  ;;  %v1339_v10 = vpop.f32.mrf.mxu0  ;;  %1601 = vmatpush.msrb.mxu3 %v3862_v5  ;;  %v3882_v5 = vld [vmem:[%s8141_s12 + $0x60] sm:$0xff] }
 0x792   :  { %v1279_v11 = vpop.f32.mrf.mxu1  ;;  %1562 = vmatmul.f32.vlgmr.msra.gmra.mxu3 %v1319_v9  ;;  %1582 = vmatmul.f32.vlgmr.msrb.gmra.mxu2 %v1339_v10  ;;  %v1745_v54 = vld [vmem:[#allocation11 + $0x60] sm:$0xff]  ;;  %v3870_v9 = vld [vmem:[%s8140_s11 + $0x58] sm:$0xff] }
 0x793   :  { %1522 = vmatmul.f32.vlgmr.msra.gmra.mxu0 %v1279_v11  ;;  %1697 = vmatpush.msra.mxu3 %v3878_v3  ;;  %v3881_v10 = vld [vmem:[%s8141_s12 + $0x58] sm:$0xff]  ;;  %v1866_v3 = vld [vmem:[#allocation13 + $0x50] sm:$0xff] }
 0x794   :  { %1782 = vmatpush.msra.mxu0 %v5979_v12  ;;  %1728 = vmatpush.msra.mxu1 %v3889_v42  ;;  %v1744_v11 = vld [vmem:[#allocation11 + $0x58] sm:$0xff] }
 0x795   :  { %1698 = vmatpush.msra.mxu3 %v3877_v44  ;;  %1762 = vmatpush.msra.mxu2 %v1749_v39 }
 0x796   :  { %1783 = vmatpush.msra.mxu0 %v5982_v13  ;;  %1729 = vmatpush.msra.mxu1 %v3888_v45 }
 0x797   :  { %1699 = vmatpush.msra.mxu3 %v3876_v55  ;;  %1763 = vmatpush.msra.mxu2 %v1748_v62 }
 0x798   :  { %1784 = vmatpush.msra.mxu0 %v5985_v14  ;;  %1730 = vmatpush.msra.mxu1 %v3887_v56 }
 0x799   :  { %1700 = vmatpush.msra.mxu3 %v3875_v58  ;;  %1764 = vmatpush.msra.mxu2 %v1747_v49 }
 0x79a   :  { %1785 = vmatpush.msra.mxu0 %v5988_v15  ;;  %1731 = vmatpush.msra.mxu1 %v3886_v59 }
 0x79b   :  { %1701 = vmatpush.msra.mxu3 %v3874_v60  ;;  %1765 = vmatpush.msra.mxu2 %v1746_v52 }
 0x79c   :  { %1786 = vmatpush.msra.mxu0 %v5991_v16  ;;  %1732 = vmatpush.msra.mxu1 %v3885_v61 }
 0x79d   :  { %1702 = vmatpush.msra.mxu3 %v3873_v63  ;;  %1766 = vmatpush.msra.mxu2 %v1745_v54  ;;  %v4096_v63 = vld [vmem:[#allocation14 + $0x1] ss:$0 sm:$0xff]  ;;  %v3927_v54 = vld [vmem:[%s8149_s20 + $0x1d8] sm:$0xff] }
 0x79e   :  { %v1359_v17 = vpop.f32.mrf.mxu1  ;;  %1787 = vmatpush.msra.mxu0 %v5994_v18  ;;  %1733 = vmatpush.msra.mxu1 %v3884_v0 }
 0x79f   :  { %3866 = vmatmul.msk.f32.vlgmr.msrb.gmra.mxu3 %vm430_vm0, %v1359_v17  ;;  %v3869_v17 = vld [vmem:[%s8140_s11 + $0x50] sm:$0xff]  ;;  %1767 = vmatpush.msra.mxu2 %v1744_v11  ;;  %v3924_v11 = vld [vmem:[%s8149_s20 + $0x1c0] sm:$0xff] }
 0x7a0   :  { %1788 = vmatpush.msra.mxu0 %v5998_v19  ;;  %1703 = vmatpush.msra.mxu3 %v3872_v50 }
 0x7a1   :  { %1734 = vmatpush.msra.mxu1 %v3883_v51 }
 0x7a2   :  { %1789 = vmatpush.msra.mxu0 %v6001_v20  ;;  %1704 = vmatpush.msra.mxu3 %v3871_v53 }
 0x7a3   :  { %1735 = vmatpush.msra.mxu1 %v3882_v5  ;;  %v3925_v5 = vld [vmem:[%s8149_s20 + $0x1c8] sm:$0xff] }
 0x7a4   :  { %1790 = vmatpush.msra.mxu0 %v6004_v21  ;;  %1705 = vmatpush.msra.mxu3 %v3870_v9  ;;  %v3922_v9 = vld [vmem:[%s8149_s20 + $0x1b0] sm:$0xff] }
 0x7a5   :  { %1736 = vmatpush.msra.mxu1 %v3881_v10  ;;  %v3923_v10 = vld [vmem:[%s8149_s20 + $0x1b8] sm:$0xff] }
 0x7a6   :  { %1791 = vmatpush.msra.mxu0 %v6007_v22  ;;  %1706 = vmatpush.msra.mxu3 %v3869_v17  ;;  %v3919_v17 = vld [vmem:[%s8149_s20 + $0x198] sm:$0xff] }
 0x7a8   :  { %1812 = vmatpush.msrb.mxu3 %v5979_v12 }
 0x7aa   :  { %1813 = vmatpush.msrb.mxu3 %v5982_v13 }
 0x7ac   :  { %1814 = vmatpush.msrb.mxu3 %v5985_v14 }
 0x7ae   :  { %1815 = vmatpush.msrb.mxu3 %v5988_v15 }
 0x7b0   :  { %1816 = vmatpush.msrb.mxu3 %v5991_v16 }
 0x7b2   :  { %1817 = vmatpush.msrb.mxu3 %v5994_v18 }
 0x7b4   :  { %1818 = vmatpush.msrb.mxu3 %v5998_v19 }
 0x7b6   :  { %1819 = vmatpush.msrb.mxu3 %v6001_v20 }
 0x7b8   :  { %1820 = vmatpush.msrb.mxu3 %v6004_v21 }
 0x7ba   :  { %1821 = vmatpush.msrb.mxu3 %v6007_v22 }
 0x80d   :  { %v1483_v23 = vpop.f32.mrf.mxu3  ;;  %v1503_v24 = vpop.f32.mrf.mxu2 }
 0x80e   :  { %v1504_v26 = vadd.f32 %v1503_v24, %v1483_v23  ;;  %v1543_v28 = vpop.f32.mrf.mxu1  ;;  %v3880_v23 = vld [vmem:[%s8141_s12 + $0x50] sm:$0xff] }
 0x80f   :  { %v1743_v24 = vld [vmem:[#allocation11 + $0x50] sm:$0xff]  ;;  %1737 = vmatpush.msra.mxu1 %v3880_v23  ;;  %v3920_v23 = vld [vmem:[%s8149_s20 + $0x1a0] sm:$0xff] }
 0x810   :  { %v1523_v37 = vpop.f32.mrf.mxu0  ;;  %1768 = vmatpush.msra.mxu2 %v1743_v24  ;;  %v3921_v24 = vld [vmem:[%s8149_s20 + $0x1a8] sm:$0xff] }
 0x811   :  { %v1524_v27 = vadd.f32 %v1523_v37, %v1504_v26 }
 0x813   :  { %v1544_v31 = vadd.f32 %v1543_v28, %v1524_v27 }
 0x815   :  { %v1563_v30 = vpop.f32.mrf.mxu3  ;;  %v1583_v33 = vpop.f32.mrf.mxu2 }
 0x816   :  { %v1564_v32 = vadd.f32 %v1563_v30, %v1544_v31 }
 0x818   :  { %v1584_v34 = vadd.f32 %v1583_v33, %v1564_v32  ;;  %v1873_v32 = vld [vmem:[#allocation13 + $0x88] sm:$0xff]  ;;  %v1872_v33 = vld [vmem:[#allocation13 + $0x80] sm:$0xff] }
 0x822   :  { %v1603_v35 = vpop.f32.mrf.mxu3 }
 0x823   :  { %v6010_v36 = vadd.f32 %v1603_v35, %v1584_v34  ;;  %v1871_v34 = vld [vmem:[#allocation13 + $0x78] sm:$0xff]  ;;  %v1870_v35 = vld [vmem:[#allocation13 + $0x70] sm:$0xff] }
 0x825   :  { %3867 = vmatmul.msk.f32.vlgmr.msrb.gmra.mxu1 %vm573_vm1, %v6010_v36 }
 0x826   :  { %1850 = vmatpush.msrb.mxu1 %v5979_v12 }
 0x828   :  { %1851 = vmatpush.msrb.mxu1 %v5982_v13 }
 0x82a   :  { %1852 = vmatpush.msrb.mxu1 %v5985_v14 }
 0x82c   :  { %1853 = vmatpush.msrb.mxu1 %v5988_v15 }
 0x82e   :  { %1854 = vmatpush.msrb.mxu1 %v5991_v16 }
 0x830   :  { %1855 = vmatpush.msrb.mxu1 %v5994_v18 }
 0x832   :  { %1856 = vmatpush.msrb.mxu1 %v5998_v19  ;;  %v4094_v19 = vld [vmem:[#allocation16 + $0x1] ss:$0 sm:$0xff] }
 0x834   :  { %1857 = vmatpush.msrb.mxu1 %v6001_v20  ;;  %v4095_v20 = vld [vmem:[#allocation17 + $0x1] ss:$0 sm:$0xff] }
 0x836   :  { %1858 = vmatpush.msrb.mxu1 %v6004_v21 }
 0x838   :  { %1859 = vmatpush.msrb.mxu1 %v6007_v22 }
 0x8a2   :  { %v1626_v38 = vpop.f32.mrf.mxu1 }
 0x8a3   :  { %v6015_v40 = vsub.f32 %v6010_v36, %v1626_v38  ;;  %v1869_v38 = vld [vmem:[#allocation13 + $0x68] sm:$0xff] }
 0x8a5   :  { %v1630_v41 = vmul.f32 %v6015_v40, %v6015_v40 }
 0x8a7   :  { %3868 = vmatmul.msk.f32.vlgmr.msrb.gmra.mxu0 %vm573_vm1, %v1630_v41  ;;  %v1867_v41 = vld [vmem:[#allocation13 + $0x58] sm:$0xff] }
 0x8a8   :  { %1914 = vmatpush.msrb.mxu0 %v5927_v1 }
 0x8aa   :  { %1915 = vmatpush.msrb.mxu0 %v5930_v2 }
 0x8ac   :  { %1916 = vmatpush.msrb.mxu0 %v5934_v4 }
 0x8ae   :  { %1917 = vmatpush.msrb.mxu0 %v5938_v6 }
 0x8b0   :  { %1918 = vmatpush.msrb.mxu0 %v5942_v7 }
 0x8b2   :  { %1919 = vmatpush.msrb.mxu0 %v5946_v8 }
 0x8b4   :  { %1920 = vmatpush.msrb.mxu0 %v5950_v25 }
 0x8b6   :  { %1921 = vmatpush.msrb.mxu0 %v5954_v29 }
 0x8b8   :  { %1922 = vmatpush.msrb.mxu0 %v5958_v47 }
 0x8ba   :  { %1923 = vmatpush.msrb.mxu0 %v5962_v48 }
 0x924   :  { %v1651_v26 = vpop.f32.mrf.mxu0 }
 0x925   :  { %v1652_v37 = vadd.f32 1e-05, %v1651_v26  ;;  %v3916_v26 = vld [vmem:[%s8149_s20 + $0x180] sm:$0xff] }
 0x927   :  { %4108 = vrsqrt.f32 %v1652_v37  ;;  %vm1660_vm15 = vweird.f32 %v1652_v37 }
 0x92d   :  { %v4109_v12 = vpop.eup %4108 }
 0x92e   :  { %v1655_v13 = vmul.f32 %v4109_v12, %v1652_v37  ;;  %vm1661_vm14 = vweird.f32 %v4109_v12  ;;  %v3917_v37 = vld [vmem:[%s8149_s20 + $0x188] sm:$0xff] }
 0x92f   :  { %vm1662_vm2 = vmor %vm1660_vm15, %vm1661_vm14 }
 0x930   :  { %v1656_v14 = vmul.f32 %v4109_v12, %v1655_v13  ;;  %v3913_v13 = vld [vmem:[%s8149_s20 + $0x168] sm:$0xff] }
 0x932   :  { %v1657_v15 = vmul.f32 0.5, %v1656_v14  ;;  %v3914_v14 = vld [vmem:[%s8149_s20 + $0x170] sm:$0xff] }
 0x934   :  { %v1658_v16 = vsub.f32 1.5, %v1657_v15  ;;  %v3915_v15 = vld [vmem:[%s8149_s20 + $0x178] sm:$0xff] }
 0x936   :  { %v1659_v18 = vmul.f32 %v4109_v12, %v1658_v16  ;;  %v3910_v16 = vld [vmem:[%s8149_s20 + $0x150] sm:$0xff] }
 0x938   :  { %v1663_v27 = vsel %vm1662_vm2, %v4109_v12, %v1659_v18  ;;  %v3918_v12 = vld [vmem:[%s8149_s20 + $0x190] sm:$0xff]  ;;  %v3911_v18 = vld [vmem:[%s8149_s20 + $0x158] sm:$0xff] }
 0x939   :  { %v1664_v28 = vmul.f32 %v1663_v27, %v6015_v40  ;;  %v1868_v40 = vld [vmem:[#allocation13 + $0x60] sm:$0xff]  ;;  %v3907_v27 = vld [vmem:[%s8149_s20 + $0x138] sm:$0xff] }
 0x93b   :  { %v1670_v30 = vmul.f32 %v4094_v19, %v1664_v28  ;;  %v3912_v19 = vld [vmem:[%s8149_s20 + $0x160] sm:$0xff] }
 0x93c   :  { %v3908_v28 = vld [vmem:[%s8149_s20 + $0x140] sm:$0xff] }
 0x93d   :  { %v1676_v31 = vadd.f32 %v4095_v20, %v1670_v30  ;;  %v3909_v20 = vld [vmem:[%s8149_s20 + $0x148] sm:$0xff]  ;;  %v3904_v30 = vld [vmem:[%s8149_s20 + $0x120] sm:$0xff] }
 0x93f   :  { %3879 = vmatmul.msk.f32.vlgmr.msra.gmra.mxu3 %vm573_vm1, %v1676_v31  ;;  %3890 = vmatmul.msk.f32.vlgmr.msra.gmra.mxu1 %vm573_vm1, %v1676_v31 }
 0x940   :  { %3891 = vmatmul.msk.f32.vlgmr.msra.gmra.mxu2 %vm573_vm1, %v1676_v31  ;;  %1939 = vmatpush.msra.mxu3 %v5927_v1  ;;  %v3905_v31 = vld [vmem:[%s8149_s20 + $0x128] sm:$0xff] }
 0x941   :  { %2025 = vmatpush.msra.mxu1 %v3925_v5 }
 0x942   :  { %1940 = vmatpush.msra.mxu3 %v5930_v2 }
 0x943   :  { %2026 = vmatpush.msra.mxu1 %v3922_v9  ;;  %v3934_v9 = vld [vmem:[%s8151_s22 + $0x158] sm:$0xff] }
 0x944   :  { %1941 = vmatpush.msra.mxu3 %v5934_v4 }
 0x945   :  { %2027 = vmatpush.msra.mxu1 %v3919_v17 }
 0x946   :  { %1942 = vmatpush.msra.mxu3 %v5938_v6 }
 0x947   :  { %2028 = vmatpush.msra.mxu1 %v3916_v26 }
 0x948   :  { %1943 = vmatpush.msra.mxu3 %v5942_v7 }
 0x949   :  { %2029 = vmatpush.msra.mxu1 %v3913_v13  ;;  %v3932_v13 = vld [vmem:[%s8151_s22 + $0x148] sm:$0xff] }
 0x94a   :  { %1944 = vmatpush.msra.mxu3 %v5946_v8 }
 0x94b   :  { %2030 = vmatpush.msra.mxu1 %v3910_v16  ;;  %v3931_v16 = vld [vmem:[%s8151_s22 + $0x140] sm:$0xff] }
 0x94c   :  { %1945 = vmatpush.msra.mxu3 %v5950_v25 }
 0x94d   :  { %2031 = vmatpush.msra.mxu1 %v3907_v27  ;;  %v3949_v27 = vld [vmem:[%s8151_s22 + $0x1d0] sm:$0xff] }
 0x94e   :  { %1946 = vmatpush.msra.mxu3 %v5954_v29 }
 0x94f   :  { %2032 = vmatpush.msra.mxu1 %v3904_v30  ;;  %v4035_v30 = vld [vmem:[%s8139_s10 + $0x428] sm:$0xff] }
 0x950   :  { %1947 = vmatpush.msra.mxu3 %v5958_v47  ;;  %v1875_v47 = vld [vmem:[#allocation13 + $0x98] sm:$0xff] }
 0x951   :  { %1890 = vmatpush.msrb.mxu2 %v1875_v47  ;;  %v3944_v47 = vld [vmem:[%s8151_s22 + $0x1a8] sm:$0xff] }
 0x952   :  { %1948 = vmatpush.msra.mxu3 %v5962_v48  ;;  %v1874_v48 = vld [vmem:[#allocation13 + $0x90] sm:$0xff] }
 0x953   :  { %1891 = vmatpush.msrb.mxu2 %v1874_v48  ;;  %v3961_v48 = vld [vmem:[%s8151_s22 + $0x230] sm:$0xff] }
 0x955   :  { %1892 = vmatpush.msrb.mxu2 %v1873_v32  ;;  %v3960_v32 = vld [vmem:[%s8151_s22 + $0x228] sm:$0xff] }
 0x957   :  { %1893 = vmatpush.msrb.mxu2 %v1872_v33 }
 0x959   :  { %1894 = vmatpush.msrb.mxu2 %v1871_v34  ;;  %v3943_v34 = vld [vmem:[%s8151_s22 + $0x1a0] sm:$0xff] }
 0x95b   :  { %1895 = vmatpush.msrb.mxu2 %v1870_v35 }
 0x95d   :  { %1896 = vmatpush.msrb.mxu2 %v1869_v38  ;;  %v3959_v38 = vld [vmem:[%s8151_s22 + $0x220] sm:$0xff] }
 0x95f   :  { %1897 = vmatpush.msrb.mxu2 %v1868_v40  ;;  %v3970_v40 = vld [vmem:[%s8151_s22 + $0x278] sm:$0xff] }
 0x961   :  { %1898 = vmatpush.msrb.mxu2 %v1867_v41  ;;  %v3942_v41 = vld [vmem:[%s8151_s22 + $0x198] sm:$0xff] }
 0x963   :  { %1899 = vmatpush.msrb.mxu2 %v1866_v3  ;;  %v3969_v3 = vld [vmem:[%s8151_s22 + $0x270] sm:$0xff] }
 0x9bc   :  { %v1739_v2 = vpop.f32.mrf.mxu1 }
 0x9c2   :  { %v1708_v21 = vpop.f32.mrf.mxu3 }
 0x9c3   :  { %v1770_v1 = vpop.f32.mrf.mxu2  ;;  %3892 = vmatmul.msk.f32.vlgmr.msra.gmra.mxu0 %vm573_vm1, %v1708_v21  ;;  %v3906_v21 = vld [vmem:[%s8149_s20 + $0x130] sm:$0xff] }
 0x9c4   :  { %3894 = vmatmul.msk.f32.vlgmr.msrb.gmra.mxu1 %vm573_vm1, %v1770_v1  ;;  %2065 = vmatpush.msra.mxu0 %v3927_v54  ;;  %v3901_v1 = vld [vmem:[%s8149_s20 + $0x108] sm:$0xff] }
 0x9c5   :  { %2033 = vmatpush.msra.mxu1 %v3901_v1  ;;  %v4021_v1 = vld [vmem:[%s8139_s10 + $0x3b8] sm:$0xff] }
 0x9c6   :  { %2066 = vmatpush.msra.mxu0 %v3924_v11 }
 0x9c8   :  { %2067 = vmatpush.msra.mxu0 %v3921_v24 }
 0x9ca   :  { %2068 = vmatpush.msra.mxu0 %v3918_v12  ;;  %v3952_v12 = vld [vmem:[%s8151_s22 + $0x1e8] sm:$0xff] }
 0x9cc   :  { %2069 = vmatpush.msra.mxu0 %v3915_v15  ;;  %v3964_v15 = vld [vmem:[%s8151_s22 + $0x248] sm:$0xff] }
 0x9ce   :  { %2070 = vmatpush.msra.mxu0 %v3912_v19  ;;  %v3963_v19 = vld [vmem:[%s8151_s22 + $0x240] sm:$0xff] }
 0x9d0   :  { %2071 = vmatpush.msra.mxu0 %v3909_v20  ;;  %v3947_v20 = vld [vmem:[%s8151_s22 + $0x1c0] sm:$0xff] }
 0x9d2   :  { %2072 = vmatpush.msra.mxu0 %v3906_v21  ;;  %v4036_v21 = vld [vmem:[%s8139_s10 + $0x430] sm:$0xff] }
 0xa40   :  { %v1793_v4 = vpop.f32.mrf.mxu0 }
 0xa41   :  { %v1796_v6 = vmul.f32 %v1793_v4, %v1739_v2  ;;  %v1861_v61 = vpop.f32.mrf.mxu1  ;;  %v3902_v2 = vld [vmem:[%s8149_s20 + $0x110] sm:$0xff]  ;;  %v3903_v4 = vld [vmem:[%s8149_s20 + $0x118] sm:$0xff] }
 0xa42   :  { %2073 = vmatpush.msra.mxu0 %v3903_v4  ;;  %v4022_v4 = vld [vmem:[%s8139_s10 + $0x3c0] sm:$0xff] }
 0xa43   :  { %v1797_v7 = vsel %vm760_vm5, %v1796_v6, -inf }
 0xa44   :  { %1798 = vmax.xlane.f32.xlu0 %v1797_v7  ;;  %v3899_v7 = vld [vmem:[%s8149_s20 + $0xf8] sm:$0xff] }
 0xab7   :  { %v1799_v8 = vpop.xlane.xlu0 %1798 }
 0xab8   :  { %v1800_v25 = vsub.f32 %v1796_v6, %v1799_v8  ;;  %v3898_v6 = vld [vmem:[%s8149_s20 + $0xf0] sm:$0xff]  ;;  %v3900_v8 = vld [vmem:[%s8149_s20 + $0x100] sm:$0xff] }
 0xab9   :  { %2034 = vmatpush.msra.mxu1 %v3898_v6  ;;  %2074 = vmatpush.msra.mxu0 %v3900_v8  ;;  %v4014_v6 = vld [vmem:[%s8139_s10 + $0x380] sm:$0xff] }
 0xaba   :  { %v1801_v22 = vmul.f32 1.442695, %v1800_v25  ;;  %v3946_v25 = vld [vmem:[%s8151_s22 + $0x1b8] sm:$0xff]  ;;  %v4038_v8 = vld [vmem:[%s8139_s10 + $0x440] sm:$0xff] }
 0xabc   :  { %4110 = vpow2.f32 %v1801_v22  ;;  %v3945_v22 = vld [vmem:[%s8151_s22 + $0x1b0] sm:$0xff] }
 0xac2   :  { %v4111_v29 = vpop.eup %4110 }
 0xac3   :  { %3893 = vmatmul.msk.f32.vlgmr.msrb.gmra.mxu3 %vm573_vm1, %v4111_v29 }
 0xac4   :  { %2131 = vmatpush.msrb.mxu3 %v3946_v25  ;;  %v4007_v25 = vld [vmem:[%s8139_s10 + $0x348] sm:$0xff] }
 0xac6   :  { %2132 = vmatpush.msrb.mxu3 %v3945_v22  ;;  %v4039_v22 = vld [vmem:[%s8139_s10 + $0x448] sm:$0xff] }
 0xac8   :  { %2133 = vmatpush.msrb.mxu3 %v3944_v47  ;;  %v4031_v47 = vld [vmem:[%s8139_s10 + $0x408] sm:$0xff] }
 0xaca   :  { %2134 = vmatpush.msrb.mxu3 %v3943_v34  ;;  %v4025_v34 = vld [vmem:[%s8139_s10 + $0x3d8] sm:$0xff] }
 0xacc   :  { %2135 = vmatpush.msrb.mxu3 %v3942_v41  ;;  %v4018_v41 = vld [vmem:[%s8139_s10 + $0x3a0] sm:$0xff] }
 0xb46   :  { %v1823_v42 = vpop.f32.mrf.mxu3 }
 0xb47   :  { %4112 = vrcp.f32 %v1823_v42  ;;  %v1837_v46 = vand.u32 2147483648, %v1823_v42  ;;  %v1835_v56 = vand.u32 2147483647, %v1823_v42  ;;  %vm1831_vm4 = vweird.f32 %v1823_v42 }
 0xb49   :  { %v1838_v58 = vor.u32 1.1754944e-38, %v1837_v46  ;;  %vm1836_vm6 = vcmp.eq.f32.partialorder %v1835_v56, 8.507059e+37  ;;  %v3967_v46 = vld [vmem:[%s8151_s22 + $0x260] sm:$0xff]  ;;  %v3956_v56 = vld [vmem:[%s8151_s22 + $0x208] sm:$0xff] }
 0xb4d   :  { %v4113_v43 = vpop.eup %4112 }
 0xb4e   :  { %v1827_v44 = vmul.f32 %v4113_v43, %v1823_v42  ;;  %vm1832_vm3 = vweird.f32 %v4113_v43  ;;  %v3958_v42 = vld [vmem:[%s8151_s22 + $0x218] sm:$0xff] }
 0xb4f   :  { %vm1833_vm5 = vmor %vm1831_vm4, %vm1832_vm3 }
 0xb50   :  { %v1828_v45 = vsub.f32 1.0, %v1827_v44  ;;  %v3941_v44 = vld [vmem:[%s8151_s22 + $0x190] sm:$0xff] }
 0xb51   :  { %2136 = vmatpush.msrb.mxu3 %v3941_v44  ;;  %v4011_v44 = vld [vmem:[%s8139_s10 + $0x368] sm:$0xff] }
 0xb52   :  { %v1829_v55 = vmul.f32 %v4113_v43, %v1828_v45  ;;  %v3957_v45 = vld [vmem:[%s8151_s22 + $0x210] sm:$0xff] }
 0xb54   :  { %v1830_v57 = vadd.f32 %v4113_v43, %v1829_v55  ;;  %v3940_v55 = vld [vmem:[%s8151_s22 + $0x188] sm:$0xff] }
 0xb55   :  { %2137 = vmatpush.msrb.mxu3 %v3940_v55  ;;  %v2008_v55 = vld [vmem:[#allocation22 + $0x3] sm:$0x7] }
 0xb56   :  { %v1834_v59 = vsel %vm1833_vm5, %v4113_v43, %v1830_v57  ;;  %v3968_v43 = vld [vmem:[%s8151_s22 + $0x268] sm:$0xff]  ;;  %v3966_v57 = vld [vmem:[%s8151_s22 + $0x258] sm:$0xff] }
 0xb57   :  { %v1839_v39 = vsel %vm1836_vm6, %v1838_v58, %v1834_v59  ;;  %v3939_v58 = vld [vmem:[%s8151_s22 + $0x180] sm:$0xff] }
 0xb58   :  { %v1840_v60 = vmul.f32 %v4111_v29, %v1839_v39  ;;  %v3962_v29 = vld [vmem:[%s8151_s22 + $0x238] sm:$0xff]  ;;  %v3955_v39 = vld [vmem:[%s8151_s22 + $0x200] sm:$0xff]  ;;  %2138 = vmatpush.msrb.mxu3 %v3939_v58 }
 0xb59   :  { %2151 = vmatpush.msrb.mxu1 %v3962_v29  ;;  %v4008_v29 = vld [vmem:[%s8139_s10 + $0x350] sm:$0xff]  ;;  %v4037_v58 = vld [vmem:[%s8139_s10 + $0x438] sm:$0xff] }
 0xb5a   :  { %v1864_v62 = vmul.f32 %v1861_v61, %v1840_v60  ;;  %v3938_v61 = vld [vmem:[%s8151_s22 + $0x178] sm:$0xff] }
 0xb5b   :  { %2152 = vmatpush.msrb.mxu1 %v3961_v48  ;;  %2139 = vmatpush.msrb.mxu3 %v3938_v61  ;;  %v4032_v48 = vld [vmem:[%s8139_s10 + $0x410] sm:$0xff]  ;;  %v4030_v61 = vld [vmem:[%s8139_s10 + $0x400] sm:$0xff] }
 0xb5c   :  { %3895 = vmatmul.msk.f32.vlgmr.msrb.gmra.mxu2 %vm573_vm1, %v1864_v62  ;;  %v3954_v62 = vld [vmem:[%s8151_s22 + $0x1f8] sm:$0xff] }
 0xb5d   :  { %2153 = vmatpush.msrb.mxu1 %v3960_v32  ;;  %v4000_v32 = vld [vmem:[%s8139_s10 + $0x310] sm:$0xff] }
 0xb5f   :  { %2154 = vmatpush.msrb.mxu1 %v3959_v38  ;;  %v4017_v38 = vld [vmem:[%s8139_s10 + $0x398] sm:$0xff] }
 0xb61   :  { %2155 = vmatpush.msrb.mxu1 %v3958_v42  ;;  %v4010_v42 = vld [vmem:[%s8139_s10 + $0x360] sm:$0xff] }
 0xb63   :  { %2156 = vmatpush.msrb.mxu1 %v3957_v45  ;;  %v3987_v45 = vld [vmem:[%s8139_s10 + $0x2a8] sm:$0xff] }
 0xb65   :  { %2157 = vmatpush.msrb.mxu1 %v3956_v56  ;;  %v3980_v56 = vld [vmem:[%s8139_s10 + $0x270] sm:$0xff] }
 0xb67   :  { %2158 = vmatpush.msrb.mxu1 %v3955_v39  ;;  %v2010_v39 = vperm.slane %v2008_v55, 0 }
 0xb69   :  { %2159 = vmatpush.msrb.mxu1 %v3954_v62 }
 0xbdf   :  { %v1901_v0 = vpop.f32.mrf.mxu2 }
 0xbe0   :  { %v1902_v49 = vadd.f32 %v4096_v63, %v1901_v0  ;;  %v3937_v0 = vld [vmem:[%s8151_s22 + $0x170] sm:$0xff] }
 0xbe1   :  { %2140 = vmatpush.msrb.mxu3 %v3937_v0 }
 0xbe2   :  { %v6130_v50 = vadd.f32 %v1902_v49, %v6010_v36  ;;  %v3926_v36 = vld [vmem:[%s8149_s20 + $0x1d0] sm:$0xff]  ;;  %s8300_s20 = sld [smem:[#allocation82_spill]] }
 0xbe3   :  { %2045 = vmatpush.msra.mxu2 %v3926_v36  ;;  %v3953_v49 = vld [vmem:[%s8151_s22 + $0x1f0] sm:$0xff]  ;;  %v3935_v36 = vld [vmem:[%s8151_s22 + $0x160] sm:$0xff] }
 0xbe4   :  { %3896 = vmatmul.msk.f32.vlgmr.msrb.gmra.mxu0 %vm573_vm1, %v6130_v50  ;;  %2160 = vmatpush.msrb.mxu1 %v3953_v49 }
 0xbe5   :  { %2046 = vmatpush.msra.mxu2 %v3923_v10  ;;  %v4097_v10 = vld [vmem:[#allocation19 + $0x1] ss:$0 sm:$0xff]  ;;  %2272 = vmatpush.msrb.mxu0 %v4035_v30  ;;  %v3983_v30 = vld [vmem:[%s8139_s10 + $0x288] sm:$0xff] }
 0xbe6   :  { %2161 = vmatpush.msrb.mxu1 %v3952_v12  ;;  %v4033_v12 = vld [vmem:[%s8139_s10 + $0x418] sm:$0xff] }
 0xbe7   :  { %2047 = vmatpush.msra.mxu2 %v3920_v23  ;;  %v4098_v23 = vld [vmem:[#allocation20 + $0x1] ss:$0 sm:$0xff] }
 0xbe9   :  { %2048 = vmatpush.msra.mxu2 %v3917_v37  ;;  %v3933_v37 = vld [vmem:[%s8151_s22 + $0x150] sm:$0xff] }
 0xbeb   :  { %2049 = vmatpush.msra.mxu2 %v3914_v14  ;;  %v3951_v14 = vld [vmem:[%s8151_s22 + $0x1e0] sm:$0xff] }
 0xbec   :  { %2162 = vmatpush.msrb.mxu1 %v3951_v14  ;;  %v3997_v14 = vld [vmem:[%s8139_s10 + $0x2f8] sm:$0xff] }
 0xbed   :  { %2050 = vmatpush.msra.mxu2 %v3911_v18  ;;  %v3950_v18 = vld [vmem:[%s8151_s22 + $0x1d8] sm:$0xff] }
 0xbee   :  { %2163 = vmatpush.msrb.mxu1 %v3950_v18  ;;  %v3989_v18 = vld [vmem:[%s8139_s10 + $0x2b8] sm:$0xff] }
 0xbef   :  { %2051 = vmatpush.msra.mxu2 %v3908_v28  ;;  %v3948_v28 = vld [vmem:[%s8151_s22 + $0x1c8] sm:$0xff] }
 0xbf0   :  { %2164 = vmatpush.msrb.mxu1 %v3949_v27  ;;  %v4019_v27 = vld [vmem:[%s8139_s10 + $0x3a8] sm:$0xff] }
 0xbf1   :  { %2052 = vmatpush.msra.mxu2 %v3905_v31  ;;  %v4028_v31 = vld [vmem:[%s8139_s10 + $0x3f0] sm:$0xff] }
 0xbf2   :  { %2165 = vmatpush.msrb.mxu1 %v3948_v28  ;;  %2273 = vmatpush.msrb.mxu0 %v4028_v31  ;;  %v3981_v28 = vld [vmem:[%s8139_s10 + $0x278] sm:$0xff]  ;;  %v4012_v31 = vld [vmem:[%s8139_s10 + $0x370] sm:$0xff] }
 0xbf3   :  { %2053 = vmatpush.msra.mxu2 %v3902_v2  ;;  %v4029_v2 = vld [vmem:[%s8139_s10 + $0x3f8] sm:$0xff] }
 0xbf4   :  { %2166 = vmatpush.msrb.mxu1 %v3947_v20  ;;  %2274 = vmatpush.msrb.mxu0 %v4021_v1  ;;  %v3982_v20 = vld [vmem:[%s8139_s10 + $0x280] sm:$0xff]  ;;  %v3975_v1 = vld [vmem:[%s8139_s10 + $0x248] sm:$0xff] }
 0xbf5   :  { %2054 = vmatpush.msra.mxu2 %v3899_v7  ;;  %v4015_v7 = vld [vmem:[%s8139_s10 + $0x388] sm:$0xff] }
 0xbf6   :  { %2275 = vmatpush.msrb.mxu0 %v4014_v6  ;;  %v3998_v6 = vld [vmem:[%s8139_s10 + $0x300] sm:$0xff] }
 0xbf7   :  { %2179 = vmatpush.msrb.mxu2 %v3970_v40  ;;  %v3993_v40 = vld [vmem:[%s8139_s10 + $0x2d8] sm:$0xff] }
 0xbf8   :  { %2276 = vmatpush.msrb.mxu0 %v4007_v25  ;;  %v3977_v25 = vld [vmem:[%s8139_s10 + $0x258] sm:$0xff] }
 0xbf9   :  { %2180 = vmatpush.msrb.mxu2 %v3969_v3  ;;  %v3994_v3 = vld [vmem:[%s8139_s10 + $0x2e0] sm:$0xff] }
 0xbfa   :  { %2277 = vmatpush.msrb.mxu0 %v4000_v32 }
 0xbfb   :  { %2181 = vmatpush.msrb.mxu2 %v3968_v43  ;;  %v3986_v43 = vld [vmem:[%s8139_s10 + $0x2a0] sm:$0xff] }
 0xbfc   :  { %2278 = vmatpush.msrb.mxu0 %v3993_v40 }
 0xbfd   :  { %2182 = vmatpush.msrb.mxu2 %v3967_v46  ;;  %v3979_v46 = vld [vmem:[%s8139_s10 + $0x268] sm:$0xff] }
 0xbfe   :  { %2279 = vmatpush.msrb.mxu0 %v3986_v43 }
 0xbff   :  { %2183 = vmatpush.msrb.mxu2 %v3966_v57  ;;  %v3972_v57 = vld [vmem:[%s8139_s10 + $0x230] sm:$0xff] }
 0xc00   :  { %2280 = vmatpush.msrb.mxu0 %v3979_v46  ;;  %v6590_v46 = vld [vmem:[%s8213_s30 + $0xd8] sm:$0xff] }
 0xc02   :  { %2281 = vmatpush.msrb.mxu0 %v3972_v57  ;;  %v6603_v57 = vld [vmem:[%s8213_s30 + $0x50] sm:$0xff] }
 0xc61   :  { %v1925_v51 = vpop.f32.mrf.mxu0 }
 0xc62   :  { %v6135_v52 = vsub.f32 %v6130_v50, %v1925_v51 }
 0xc64   :  { %v1929_v53 = vmul.f32 %v6135_v52, %v6135_v52 }
 0xc66   :  { %3897 = vmatmul.msk.f32.vlgmr.msra.gmra.mxu3 %vm573_vm1, %v1929_v53  ;;  %v3936_v53 = vld [vmem:[%s8151_s22 + $0x168] sm:$0xff] }
 0xc67   :  { %2141 = vmatpush.msrb.mxu3 %v3936_v53  ;;  %v4016_v53 = vld [vmem:[%s8139_s10 + $0x390] sm:$0xff] }
 0xc69   :  { %2142 = vmatpush.msrb.mxu3 %v3935_v36  ;;  %v2011_v36 = vperm.slane %v2008_v55, 1 }
 0xc6b   :  { %2143 = vmatpush.msrb.mxu3 %v3934_v9  ;;  %v4009_v9 = vld [vmem:[%s8139_s10 + $0x358] sm:$0xff] }
 0xc6d   :  { %2144 = vmatpush.msrb.mxu3 %v3933_v37  ;;  %v4004_v37 = vld [vmem:[%s8139_s10 + $0x330] sm:$0xff] }
 0xc6f   :  { %2145 = vmatpush.msrb.mxu3 %v3932_v13  ;;  %v3996_v13 = vld [vmem:[%s8139_s10 + $0x2f0] sm:$0xff] }
 0xc71   :  { %2146 = vmatpush.msrb.mxu3 %v3931_v16  ;;  %v3988_v16 = vld [vmem:[%s8139_s10 + $0x2b0] sm:$0xff] }
 0xc73   :  { %2332 = vmatpush.msra.mxu3 %v4038_v8  ;;  %v3984_v8 = vld [vmem:[%s8139_s10 + $0x290] sm:$0xff] }
 0xc75   :  { %2333 = vmatpush.msra.mxu3 %v4031_v47  ;;  %v6543_v47 = vld [vmem:[%s8213_s30 + $0x70] sm:$0xff] }
 0xce9   :  { %v1950_v33 = vpop.f32.mrf.mxu3 }
 0xcea   :  { %v1951_v35 = vadd.f32 1e-05, %v1950_v33  ;;  %v4024_v33 = vld [vmem:[%s8139_s10 + $0x3d0] sm:$0xff] }
 0xceb   :  { %2334 = vmatpush.msra.mxu3 %v4024_v33  ;;  %v6554_v33 = vld [vmem:[%s8213_s30 + $0x68] sm:$0xff] }
 0xcec   :  { %4114 = vrsqrt.f32 %v1951_v35  ;;  %vm1959_vm8 = vweird.f32 %v1951_v35 }
 0xced   :  { %2335 = vmatpush.msra.mxu3 %v4017_v38  ;;  %v6566_v38 = vld [vmem:[%s8213_s30 + $0xe8] sm:$0xff] }
 0xcef   :  { %2336 = vmatpush.msra.mxu3 %v4010_v42  ;;  %v6578_v42 = vld [vmem:[%s8213_s30 + $0xe0] sm:$0xff] }
 0xcf2   :  { %v4115_v59 = vpop.eup %4114 }
 0xcf3   :  { %v1954_v60 = vmul.f32 %v4115_v59, %v1951_v35  ;;  %vm1960_vm7 = vweird.f32 %v4115_v59  ;;  %v4001_v35 = vld [vmem:[%s8139_s10 + $0x318] sm:$0xff] }
 0xcf4   :  { %vm1961_vm9 = vmor %vm1959_vm8, %vm1960_vm7 }
 0xcf5   :  { %v1955_v63 = vmul.f32 %v4115_v59, %v1954_v60  ;;  %v2012_v60 = vperm.slane %v2008_v55, 2 }
 0xcf7   :  { %v1956_v51 = vmul.f32 0.5, %v1955_v63  ;;  %v4023_v63 = vld [vmem:[%s8139_s10 + $0x3c8] sm:$0xff] }
 0xcf9   :  { %v1957_v5 = vsub.f32 1.5, %v1956_v51 }
 0xcfb   :  { %v1958_v54 = vmul.f32 %v4115_v59, %v1957_v5 }
 0xcfd   :  { %v1962_v11 = vsel %vm1961_vm9, %v4115_v59, %v1958_v54  ;;  %v3973_v59 = vld [vmem:[%s8139_s10 + $0x238] sm:$0xff] }
 0xcfe   :  { %v1963_v17 = vmul.f32 %v1962_v11, %v6135_v52  ;;  %v3965_v52 = vld [vmem:[%s8151_s22 + $0x250] sm:$0xff] }
 0xcff   :  { %2184 = vmatpush.msrb.mxu2 %v3965_v52  ;;  %v3995_v52 = vld [vmem:[%s8139_s10 + $0x2e8] sm:$0xff] }
 0xd00   :  { %v1969_v24 = vmul.f32 %v4097_v10, %v1963_v17  ;;  %v4040_v10 = vld [vmem:[%s8139_s10 + $0x450] sm:$0xff] }
 0xd01   :  { %2185 = vmatpush.msrb.mxu2 %v3964_v15  ;;  %v4026_v15 = vld [vmem:[%s8139_s10 + $0x3e0] sm:$0xff] }
 0xd02   :  { %v1975_v26 = vadd.f32 %v4098_v23, %v1969_v24  ;;  %v4002_v24 = vld [vmem:[%s8139_s10 + $0x320] sm:$0xff] }
 0xd03   :  { %2186 = vmatpush.msrb.mxu2 %v3963_v19  ;;  %v3990_v19 = vld [vmem:[%s8139_s10 + $0x2c0] sm:$0xff] }
 0xd04   :  { %3928 = vmatmul.msk.f32.vlgmr.msra.gmra.mxu1 %vm573_vm1, %v1975_v26  ;;  %3929 = vmatmul.msk.f32.vlgmr.msra.gmra.mxu2 %vm573_vm1, %v1975_v26 }
 0xd05   :  { %3930 = vmatmul.msk.f32.vlgmr.msra.gmra.mxu0 %vm573_vm1, %v1975_v26  ;;  %2292 = vmatpush.msra.mxu2 %v4036_v21  ;;  %v4003_v26 = vld [vmem:[%s8139_s10 + $0x328] sm:$0xff]  ;;  %v3974_v21 = vld [vmem:[%s8139_s10 + $0x240] sm:$0xff] }
 0xd06   :  { %2352 = vmatpush.msra.mxu1 %v4039_v22  ;;  %2312 = vmatpush.msra.mxu0 %v4037_v58  ;;  %v4099_v22 = vld [vmem:[#allocation23 + $0x1] ss:$0 sm:$0xff]  ;;  %v6618_v58 = vld [vmem:[%s8213_s30 + $0x178] sm:$0xff] }
 0xd07   :  { %2293 = vmatpush.msra.mxu2 %v4029_v2  ;;  %2337 = vmatpush.msra.mxu3 %v4003_v26  ;;  %v3976_v2 = vld [vmem:[%s8139_s10 + $0x250] sm:$0xff]  ;;  %v6726_v26 = vld [vmem:[%s8213_s30 + $0xa8] sm:$0xff] }
 0xd08   :  { %2353 = vmatpush.msra.mxu1 %v4032_v48  ;;  %2313 = vmatpush.msra.mxu0 %v4030_v61  ;;  %v6549_v48 = vld [vmem:[%s8213_s30 + $0xf8] sm:$0xff]  ;;  %v6641_v61 = vld [vmem:[%s8213_s30 + $0x170] sm:$0xff] }
 0xd09   :  { %2294 = vmatpush.msra.mxu2 %v4022_v4  ;;  %2338 = vmatpush.msra.mxu3 %v3996_v13  ;;  %v4005_v4 = vld [vmem:[%s8139_s10 + $0x338] sm:$0xff]  ;;  %v6747_v13 = vld [vmem:[%s8213_s30 + $0xa0] sm:$0xff] }
 0xd0a   :  { %2354 = vmatpush.msra.mxu1 %v4025_v34  ;;  %2314 = vmatpush.msra.mxu0 %v4023_v63  ;;  %v6560_v34 = vld [vmem:[%s8213_s30 + $0xf0] sm:$0xff]  ;;  %v6649_v63 = vld [vmem:[%s8213_s30 + $0x40] sm:$0xff] }
 0xd0b   :  { %2295 = vmatpush.msra.mxu2 %v4015_v7  ;;  %2339 = vmatpush.msra.mxu3 %v3989_v18  ;;  %v3991_v7 = vld [vmem:[%s8139_s10 + $0x2c8] sm:$0xff]  ;;  %v6768_v18 = vld [vmem:[%s8213_s30 + $0x98] sm:$0xff] }
 0xd0c   :  { %2355 = vmatpush.msra.mxu1 %v4018_v41  ;;  %2315 = vmatpush.msra.mxu0 %v4016_v53  ;;  %v6571_v41 = vld [vmem:[%s8213_s30 + $0x60] sm:$0xff]  ;;  %v6673_v53 = vld [vmem:[%s8213_s30 + $0x38] sm:$0xff] }
 0xd0d   :  { %2296 = vmatpush.msra.mxu2 %v4008_v29  ;;  %2340 = vmatpush.msra.mxu3 %v3982_v20  ;;  %v6538_v29 = vld [vmem:[%s8213_s30 + $0x78] sm:$0xff]  ;;  %v6789_v20 = vld [vmem:[%s8213_s30 + $0x90] sm:$0xff] }
 0xd0e   :  { %2356 = vmatpush.msra.mxu1 %v4011_v44  ;;  %2316 = vmatpush.msra.mxu0 %v4009_v9  ;;  %v6583_v44 = vld [vmem:[%s8213_s30 + $0x58] sm:$0xff]  ;;  %v6695_v9 = vld [vmem:[%s8213_s30 + $0x160] sm:$0xff] }
 0xd0f   :  { %2297 = vmatpush.msra.mxu2 %v4001_v35  ;;  %2341 = vmatpush.msra.mxu3 %v3975_v1  ;;  %8215 = vst [vmem:[#allocation36_spill] sm:$0xff] %v6695_v9  ;;  %v6813_v1 = vld [vmem:[%s8213_s30] sm:$0xff] }
 0xd10   :  { %2317 = vmatpush.msra.mxu0 %v4002_v24  ;;  %2357 = vmatpush.msra.mxu1 %v4004_v37  ;;  %v3999_v24 = vld [vmem:[%s8139_s10 + $0x308] sm:$0xff]  ;;  %v6732_v37 = vld [vmem:[%s8213_s30 + $0x20] sm:$0xff] }
 0xd11   :  { %2298 = vmatpush.msra.mxu2 %v3994_v3 }
 0xd12   :  { %2318 = vmatpush.msra.mxu0 %v3995_v52  ;;  %2358 = vmatpush.msra.mxu1 %v3997_v14  ;;  %v3992_v52 = vld [vmem:[%s8139_s10 + $0x2d0] sm:$0xff]  ;;  %v6753_v14 = vld [vmem:[%s8213_s30 + $0x18] sm:$0xff] }
 0xd13   :  { %2299 = vmatpush.msra.mxu2 %v3987_v45 }
 0xd14   :  { %2319 = vmatpush.msra.mxu0 %v3988_v16  ;;  %2359 = vmatpush.msra.mxu1 %v3990_v19  ;;  %v3985_v16 = vld [vmem:[%s8139_s10 + $0x298] sm:$0xff]  ;;  %v6774_v19 = vld [vmem:[%s8213_s30 + $0x10] sm:$0xff] }
 0xd15   :  { %2300 = vmatpush.msra.mxu2 %v3980_v56  ;;  %v4041_v56 = vld [vmem:[%s8139_s10 + $0x458] sm:$0xff] }
 0xd16   :  { %2320 = vmatpush.msra.mxu0 %v3981_v28  ;;  %2360 = vmatpush.msra.mxu1 %v3983_v30  ;;  %v3978_v28 = vld [vmem:[%s8139_s10 + $0x260] sm:$0xff]  ;;  %v6795_v30 = vld [vmem:[%s8213_s30 + $0x8] sm:$0xff] }
 0xd17   :  { %2301 = vmatpush.msra.mxu2 %v3973_v59  ;;  %v4034_v59 = vld [vmem:[%s8139_s10 + $0x420] sm:$0xff] }
 0xd18   :  { %2321 = vmatpush.msra.mxu0 %v3974_v21  ;;  %2361 = vmatpush.msra.mxu1 %v3976_v2  ;;  %v6807_v21 = vld [vmem:[%s8213_s30 + $0x88] sm:$0xff]  ;;  %v6819_v2 = vld [vmem:[%s8213_s30 + $0x138] sm:$0xff] }
 0xd19   :  { %8220 = vst [vmem:[#allocation41_spill] sm:$0xff] %v6819_v2 }
 0xd81   :  { %v2036_v62 = vpop.f32.mrf.mxu1 }
 0xd82   :  { %v2037_v0 = vadd.f32 %v2036_v62, %v2010_v39  ;;  %v2076_v49 = vpop.f32.mrf.mxu0  ;;  %v6630_v39 = vld [vmem:[%s8213_s30 + $0x48] sm:$0xff] }
 0xd83   :  { %v2077_v51 = vadd.f32 %v2076_v49, %v2012_v60  ;;  %v6636_v60 = vld [vmem:[%s8213_s30 + $0xc8] sm:$0xff] }
 0xd84   :  { %v2079_v5 = vmax.f32 %v2037_v0, 0.0  ;;  %v4027_v62 = vld [vmem:[%s8139_s10 + $0x3e8] sm:$0xff]  ;;  %v6657_v0 = vld [vmem:[%s8213_s30 + $0xc0] sm:$0xff] }
 0xd85   :  { %v2081_v54 = vmax.f32 %v2077_v51, 0.0  ;;  %v6662_v49 = vld [vmem:[%s8213_s30 + $0x168] sm:$0xff]  ;;  %v4020_v51 = vld [vmem:[%s8139_s10 + $0x3b0] sm:$0xff] }
 0xd86   :  { %2147 = vmatmul.f32.vlgmr.msrb.gmra.mxu3 %v2079_v5  ;;  %8214 = vst [vmem:[#allocation35_spill] sm:$0xff] %v6662_v49  ;;  %v4013_v5 = vld [vmem:[%s8139_s10 + $0x378] sm:$0xff] }
 0xd87   :  { %3971 = vmatmul.msk.f32.vlgmr.msrb.gmra.mxu2 %vm1084_vm13, %v2081_v54  ;;  %v2056_v11 = vpop.f32.mrf.mxu2  ;;  %2516 = vmatpush.msrb.mxu3 %v6538_v29  ;;  %v6690_v54 = vld [vmem:[%s8213_s30 + $0x30] sm:$0xff] }
 0xd88   :  { %v2057_v17 = vadd.f32 %v2056_v11, %v2011_v36  ;;  %2372 = vmatpush.msrb.mxu2 %v4040_v10  ;;  %v6682_v36 = vld [vmem:[%s8213_s30 + $0xb8] sm:$0xff]  ;;  %v4006_v10 = vld [vmem:[%s8139_s10 + $0x340] sm:$0xff]  ;;  %v6706_v11 = vld [vmem:[%s8213_s30 + $0xb0] sm:$0xff] }
 0xd89   :  { %2517 = vmatpush.msrb.mxu3 %v6543_v47 }
 0xd8a   :  { %v2080_v23 = vmax.f32 %v2057_v17, 0.0  ;;  %2373 = vmatpush.msrb.mxu2 %v4033_v12  ;;  %v6711_v17 = vld [vmem:[%s8213_s30 + $0x28] sm:$0xff]  ;;  %v6738_v12 = vld [vmem:[%s8213_s30 + $0x150] sm:$0xff] }
 0xd8b   :  { %2518 = vmatpush.msrb.mxu3 %v6554_v33  ;;  %8217 = vst [vmem:[#allocation38_spill] sm:$0xff] %v6738_v12 }
 0xd8c   :  { %2167 = vmatmul.f32.vlgmr.msrb.gmra.mxu1 %v2080_v23  ;;  %2374 = vmatpush.msrb.mxu2 %v4026_v15  ;;  %v6717_v23 = vld [vmem:[%s8213_s30 + $0x158] sm:$0xff]  ;;  %v6759_v15 = vld [vmem:[%s8213_s30 + $0x148] sm:$0xff] }
 0xd8d   :  { %2536 = vmatpush.msrb.mxu1 %v6549_v48  ;;  %2519 = vmatpush.msrb.mxu3 %v6571_v41  ;;  %8216 = vst [vmem:[#allocation37_spill] sm:$0xff] %v6717_v23 }
 0xd8e   :  { %2375 = vmatpush.msrb.mxu2 %v4019_v27  ;;  %8218 = vst [vmem:[#allocation39_spill] sm:$0xff] %v6759_v15  ;;  %v6780_v27 = vld [vmem:[%s8213_s30 + $0x140] sm:$0xff] }
 0xd8f   :  { %2537 = vmatpush.msrb.mxu1 %v6560_v34  ;;  %2520 = vmatpush.msrb.mxu3 %v6583_v44  ;;  %8219 = vst [vmem:[#allocation40_spill] sm:$0xff] %v6780_v27 }
 0xd90   :  { %2376 = vmatpush.msrb.mxu2 %v4012_v31  ;;  %v6802_v31 = vld [vmem:[%s8213_s30 + $0x1f8] sm:$0xff] }
 0xd91   :  { %2538 = vmatpush.msrb.mxu1 %v6566_v38  ;;  %2521 = vmatpush.msrb.mxu3 %v6603_v57 }
 0xd92   :  { %2377 = vmatpush.msrb.mxu2 %v4005_v4  ;;  %v6827_v4 = vld [vmem:[%s8213_s30 + $0x1f0] sm:$0xff] }
 0xd93   :  { %2539 = vmatpush.msrb.mxu1 %v6578_v42  ;;  %2522 = vmatpush.msrb.mxu3 %v6630_v39 }
 0xd94   :  { %2378 = vmatpush.msrb.mxu2 %v3998_v6  ;;  %v6832_v6 = vld [vmem:[%s8213_s30 + $0x278] sm:$0xff] }
 0xd95   :  { %2540 = vmatpush.msrb.mxu1 %v6590_v46  ;;  %2523 = vmatpush.msrb.mxu3 %v6649_v63 }
 0xd96   :  { %2379 = vmatpush.msrb.mxu2 %v3991_v7  ;;  %v6839_v7 = vld [vmem:[%s8213_s30 + $0x80] sm:$0xff] }
 0xd97   :  { %2524 = vmatpush.msrb.mxu3 %v6673_v53 }
 0xd98   :  { %2380 = vmatpush.msrb.mxu2 %v3984_v8  ;;  %v6844_v8 = vld [vmem:[%s8213_s30 + $0x130] sm:$0xff] }
 0xd99   :  { %2525 = vmatpush.msrb.mxu3 %v6690_v54  ;;  %8221 = vst [vmem:[#allocation42_spill] sm:$0xff] %v6844_v8 }
 0xd9a   :  { %2381 = vmatpush.msrb.mxu2 %v3977_v25  ;;  %v6850_v25 = vld [vmem:[%s8213_s30 + $0x1e8] sm:$0xff] }
 0xd9b   :  { %2526 = vmatpush.msrb.mxu3 %v6711_v17  ;;  %8222 = vst [vmem:[#allocation43_spill] sm:$0xff] %v6850_v25 }
 0xd9d   :  { %2527 = vmatpush.msrb.mxu3 %v6732_v37 }
 0xd9f   :  { %2528 = vmatpush.msrb.mxu3 %v6753_v14 }
 0xda1   :  { %2529 = vmatpush.msrb.mxu3 %v6774_v19 }
 0xda3   :  { %2530 = vmatpush.msrb.mxu3 %v6795_v30 }
 0xda5   :  { %2531 = vmatpush.msrb.mxu3 %v6813_v1 }
 0xe09   :  { %v2148_v32 = vpop.f32.mrf.mxu3  ;;  %v2168_v40 = vpop.f32.mrf.mxu1 }
 0xe0a   :  { %v2149_v35 = vadd.f32 %v4099_v22, %v2148_v32  ;;  %v2188_v43 = vpop.f32.mrf.mxu2  ;;  %v6855_v22 = vld [vmem:[%s8213_s30 + $0x270] sm:$0xff]  ;;  %v6863_v32 = vld [vmem:[%s8213_s30 + $0x2f8] sm:$0xff] }
 0xe0c   :  { %v2169_v3 = vadd.f32 %v2168_v40, %v2149_v35  ;;  %v6868_v35 = vld [vmem:[%s8213_s30 + $0x128] sm:$0xff]  ;;  %v6873_v40 = vld [vmem:[%s8213_s30 + $0x1e0] sm:$0xff] }
 0xe0d   :  { %8223 = vst [vmem:[#allocation44_spill] sm:$0xff] %v6868_v35 }
 0xe0e   :  { %v2189_v45 = vadd.f32 %v2188_v43, %v2169_v3  ;;  %8224 = vst [vmem:[#allocation45_spill] sm:$0xff] %v6873_v40  ;;  %v6878_v3 = vld [vmem:[%s8213_s30 + $0x268] sm:$0xff]  ;;  %v6887_v43 = vld [vmem:[%s8213_s30 + $0x2f0] sm:$0xff] }
 0xe10   :  { %v6594_v55 = vadd.f32 %v2189_v45, %v6130_v50  ;;  %v6613_v50 = vld [vmem:[%s8213_s30 + $0xd0] sm:$0xff]  ;;  %v6892_v45 = vld [vmem:[%s8213_s30 + $0x1d8] sm:$0xff] }
 0xe11   :  { %2541 = vmatpush.msrb.mxu1 %v6613_v50  ;;  %8225 = vst [vmem:[#allocation46_spill] sm:$0xff] %v6892_v45 }
 0xe12   :  { %4042 = vmatmul.msk.f32.vlgmr.msrb.gmra.mxu0 %vm573_vm1, %v6594_v55  ;;  %4043 = vmatmul.msk.f32.vlgmr.msra.gmra.mxu2 %vm573_vm1, %v6594_v55 }
 0xe13   :  { %4045 = vmatmul.msk.f32.vlgmr.msra.gmra.mxu3 %vm573_vm1, %v6594_v55  ;;  %4046 = vmatmul.msk.f32.vlgmr.msra.gmra.mxu1 %vm573_vm1, %v6594_v55 }
 0xe14   :  { %2392 = vmatpush.msrb.mxu0 %v4041_v56  ;;  %2556 = vmatpush.msra.mxu2 %v6618_v58  ;;  %v6906_v56 = vld [vmem:[%s8213_s30 + $0x2e8] sm:$0xff] }
 0xe15   :  { %2542 = vmatpush.msrb.mxu1 %v6636_v60  ;;  %2596 = vmatpush.msra.mxu3 %v6832_v6 }
 0xe16   :  { %2393 = vmatpush.msrb.mxu0 %v4034_v59  ;;  %2557 = vmatpush.msra.mxu2 %v6641_v61  ;;  %v6911_v59 = vld [vmem:[%s8213_s30 + $0x1d0] sm:$0xff] }
 0xe17   :  { %2543 = vmatpush.msrb.mxu1 %v6657_v0  ;;  %2597 = vmatpush.msra.mxu3 %v6855_v22  ;;  %8226 = vst [vmem:[#allocation47_spill] sm:$0xff] %v6911_v59 }
 0xe18   :  { %2394 = vmatpush.msrb.mxu0 %v4027_v62  ;;  %2558 = vmatpush.msra.mxu2 %v6662_v49  ;;  %v6916_v62 = vld [vmem:[%s8213_s30 + $0x258] sm:$0xff] }
 0xe19   :  { %2544 = vmatpush.msrb.mxu1 %v6682_v36  ;;  %2598 = vmatpush.msra.mxu3 %v6878_v3 }
 0xe1a   :  { %2395 = vmatpush.msrb.mxu0 %v4020_v51  ;;  %4047 = vmatmul.msk.f32.vlgmr.msrb.gmra.mxu2 %vm573_vm1, %v6594_v55  ;;  %v6924_v51 = vld [vmem:[%s8213_s30 + $0x2e0] sm:$0xff] }
 0xe1b   :  { %4044 = vmatmul.msk.f32.vlgmr.msra.gmra.mxu0 %vm573_vm1, %v6594_v55  ;;  %2559 = vmatpush.msra.mxu2 %v6695_v9  ;;  %v7090_v9 = vld [vmem:[%s8213_s30 + $0x2a8] sm:$0xff] }
 0xe1c   :  { %2396 = vmatpush.msrb.mxu0 %v4013_v5  ;;  %2545 = vmatpush.msrb.mxu1 %v6706_v11  ;;  %v6929_v5 = vld [vmem:[%s8213_s30 + $0x1c8] sm:$0xff]  ;;  %8244 = vst [vmem:[#allocation65_spill] sm:$0xff] %v7090_v9 }
 0xe1d   :  { %2560 = vmatpush.msra.mxu2 %v6717_v23  ;;  %8227 = vst [vmem:[#allocation48_spill] sm:$0xff] %v6929_v5  ;;  %v7073_v23 = vld [vmem:[%s8213_s30 + $0x110] sm:$0xff] }
 0xe1e   :  { %2397 = vmatpush.msrb.mxu0 %v4006_v10  ;;  %2546 = vmatpush.msrb.mxu1 %v6726_v26  ;;  %v6934_v10 = vld [vmem:[%s8213_s30 + $0x250] sm:$0xff]  ;;  %8242 = vst [vmem:[#allocation63_spill] sm:$0xff] %v7073_v23 }
 0xe1f   :  { %2561 = vmatpush.msra.mxu2 %v6738_v12  ;;  %v7019_v12 = vld [vmem:[%s8213_s30 + $0x228] sm:$0xff] }
 0xe20   :  { %2398 = vmatpush.msrb.mxu0 %v3999_v24  ;;  %2547 = vmatpush.msrb.mxu1 %v6747_v13  ;;  %v6942_v24 = vld [vmem:[%s8213_s30 + $0x2d8] sm:$0xff] }
 0xe21   :  { %2562 = vmatpush.msra.mxu2 %v6759_v15  ;;  %v7001_v15 = vld [vmem:[%s8213_s30 + $0x1a8] sm:$0xff] }
 0xe22   :  { %2399 = vmatpush.msrb.mxu0 %v3992_v52  ;;  %2548 = vmatpush.msrb.mxu1 %v6768_v18  ;;  %v6947_v52 = vld [vmem:[%s8213_s30 + $0x1c0] sm:$0xff]  ;;  %8234 = vst [vmem:[#allocation55_spill] sm:$0xff] %v7001_v15 }
 0xe23   :  { %2563 = vmatpush.msra.mxu2 %v6780_v27  ;;  %8228 = vst [vmem:[#allocation49_spill] sm:$0xff] %v6947_v52  ;;  %v6983_v27 = vld [vmem:[%s8213_s30 + $0x1b0] sm:$0xff] }
 0xe24   :  { %2400 = vmatpush.msrb.mxu0 %v3985_v16  ;;  %2549 = vmatpush.msrb.mxu1 %v6789_v20  ;;  %v6952_v16 = vld [vmem:[%s8213_s30 + $0x248] sm:$0xff]  ;;  %8232 = vst [vmem:[#allocation53_spill] sm:$0xff] %v6983_v27 }
 0xe25   :  { %2564 = vmatpush.msra.mxu2 %v6819_v2  ;;  %v6978_v2 = vld [vmem:[%s8213_s30 + $0x2c8] sm:$0xff] }
 0xe26   :  { %2401 = vmatpush.msrb.mxu0 %v3978_v28  ;;  %2550 = vmatpush.msrb.mxu1 %v6807_v21  ;;  %v6960_v28 = vld [vmem:[%s8213_s30 + $0x2d0] sm:$0xff]  ;;  %8231 = vst [vmem:[#allocation52_spill] sm:$0xff] %v6978_v2 }
 0xe27   :  { %4048 = vmatmul.msk.f32.vlgmr.msrb.gmra.mxu0 %vm573_vm1, %v6594_v55  ;;  %2565 = vmatpush.msra.mxu2 %v6844_v8  ;;  %v6897_v55 = vld [vmem:[%s8213_s30 + $0x260] sm:$0xff]  ;;  %8229 = vst [vmem:[#allocation50_spill] sm:$0xff] %v6960_v28  ;;  %vm2656_vm1 = vcmask 64512  }
 0xe28   :  { %2576 = vmatpush.msra.mxu0 %v6802_v31  ;;  %2551 = vmatpush.msrb.mxu1 %v6839_v7  ;;  %v6970_v8 = vld [vmem:[%s8213_s30 + $0x240] sm:$0xff] }
 0xe29   :  { %2566 = vmatpush.msra.mxu2 %v6868_v35  ;;  %2599 = vmatpush.msra.mxu3 %v6897_v55  ;;  %v6965_v35 = vld [vmem:[%s8213_s30 + $0x1b8] sm:$0xff] }
 0xe2a   :  { %2577 = vmatpush.msra.mxu0 %v6827_v4  ;;  %2616 = vmatpush.msra.mxu1 %v6863_v32  ;;  %8230 = vst [vmem:[#allocation51_spill] sm:$0xff] %v6965_v35 }
 0xe2b   :  { %2600 = vmatpush.msra.mxu3 %v6916_v62 }
 0xe2c   :  { %2578 = vmatpush.msra.mxu0 %v6850_v25  ;;  %2617 = vmatpush.msra.mxu1 %v6887_v43  ;;  %v7171_v25 = vld [vmem:[%s8213_s30 + $0x308] sm:$0xff] }
 0xe2d   :  { %2601 = vmatpush.msra.mxu3 %v6934_v10  ;;  %8254 = vst [vmem:[#allocation75_spill] sm:$0xff] %v7171_v25 }
 0xe2e   :  { %2579 = vmatpush.msra.mxu0 %v6873_v40  ;;  %2618 = vmatpush.msra.mxu1 %v6906_v56  ;;  %v7085_v40 = vld [vmem:[%s8213_s30 + $0x210] sm:$0xff] }
 0xe2f   :  { %2602 = vmatpush.msra.mxu3 %v6952_v16 }
 0xe30   :  { %2580 = vmatpush.msra.mxu0 %v6892_v45  ;;  %2619 = vmatpush.msra.mxu1 %v6924_v51  ;;  %v7056_v45 = vld [vmem:[%s8213_s30 + $0x190] sm:$0xff] }
 0xe31   :  { %2603 = vmatpush.msra.mxu3 %v6970_v8  ;;  %8240 = vst [vmem:[#allocation61_spill] sm:$0xff] %v7056_v45 }
 0xe32   :  { %2581 = vmatpush.msra.mxu0 %v6911_v59  ;;  %2620 = vmatpush.msra.mxu1 %v6942_v24  ;;  %v7006_v59 = vld [vmem:[%s8213_s30 + $0x230] sm:$0xff] }
 0xe34   :  { %2582 = vmatpush.msra.mxu0 %v6929_v5  ;;  %v6988_v5 = vld [vmem:[%s8213_s30 + $0x238] sm:$0xff]  ;;  %2621 = vmatpush.msra.mxu1 %v6960_v28  ;;  %v7153_v28 = vld [vmem:[%s8213_s30 + $0x288] sm:$0xff] }
 0xe35   :  { %2604 = vmatpush.msra.mxu3 %v6988_v5  ;;  %8252 = vst [vmem:[#allocation73_spill] sm:$0xff] %v7153_v28 }
 0xe36   :  { %2583 = vmatpush.msra.mxu0 %v6947_v52  ;;  %v6996_v52 = vld [vmem:[%s8213_s30 + $0x2c0] sm:$0xff]  ;;  %2622 = vmatpush.msra.mxu1 %v6978_v2  ;;  %v7034_v2 = vld [vmem:[%s8213_s30 + $0x198] sm:$0xff] }
 0xe37   :  { %8233 = vst [vmem:[#allocation54_spill] sm:$0xff] %v6996_v52  ;;  %2605 = vmatpush.msra.mxu3 %v7006_v59 }
 0xe38   :  { %2584 = vmatpush.msra.mxu0 %v6965_v35  ;;  %v7014_v35 = vld [vmem:[%s8213_s30 + $0x1a0] sm:$0xff]  ;;  %2623 = vmatpush.msra.mxu1 %v6996_v52  ;;  %8237 = vst [vmem:[#allocation58_spill] sm:$0xff] %v7034_v2  ;;  %v7051_v52 = vld [vmem:[%s8213_s30 + $0x118] sm:$0xff] }
 0xe39   :  { %8235 = vst [vmem:[#allocation56_spill] sm:$0xff] %v7014_v35  ;;  %2606 = vmatpush.msra.mxu3 %v7019_v12 }
 0xe3a   :  { %2585 = vmatpush.msra.mxu0 %v6983_v27  ;;  %v7029_v27 = vld [vmem:[%s8213_s30 + $0x120] sm:$0xff]  ;;  %8239 = vst [vmem:[#allocation60_spill] sm:$0xff] %v7051_v52 }
 0xe3b   :  { %8236 = vst [vmem:[#allocation57_spill] sm:$0xff] %v7029_v27  ;;  %2567 = vmatpush.msra.mxu2 %v7029_v27  ;;  %v7068_v27 = vld [vmem:[%s8213_s30 + $0x2b0] sm:$0xff] }
 0xe3c   :  { %2586 = vmatpush.msra.mxu0 %v7001_v15  ;;  %v7039_v15 = vld [vmem:[%s8213_s30 + $0x220] sm:$0xff]  ;;  %8241 = vst [vmem:[#allocation62_spill] sm:$0xff] %v7068_v27 }
 0xe3d   :  { %2607 = vmatpush.msra.mxu3 %v7039_v15  ;;  %2568 = vmatpush.msra.mxu2 %v7051_v52  ;;  %v7106_v52 = vld [vmem:[%s8213_s30 + $0x180] sm:$0xff] }
 0xe3e   :  { %2587 = vmatpush.msra.mxu0 %v7014_v35  ;;  %v7046_v35 = vld [vmem:[%s8213_s30 + $0x2b8] sm:$0xff]  ;;  %8246 = vst [vmem:[#allocation67_spill] sm:$0xff] %v7106_v52 }
 0xe3f   :  { %8238 = vst [vmem:[#allocation59_spill] sm:$0xff] %v7046_v35  ;;  %2624 = vmatpush.msra.mxu1 %v7046_v35  ;;  %v7080_v35 = vld [vmem:[%s8213_s30 + $0x188] sm:$0xff]  ;;  %2569 = vmatpush.msra.mxu2 %v7073_v23 }
 0xe40   :  { %2588 = vmatpush.msra.mxu0 %v7034_v2  ;;  %v7063_v2 = vld [vmem:[%s8213_s30 + $0x218] sm:$0xff]  ;;  %8243 = vst [vmem:[#allocation64_spill] sm:$0xff] %v7080_v35  ;;  %v7111_v23 = vld [vmem:[%s8213_s30 + $0x208] sm:$0xff] }
 0xe41   :  { %2608 = vmatpush.msra.mxu3 %v7063_v2  ;;  %2625 = vmatpush.msra.mxu1 %v7068_v27  ;;  %v7146_v27 = vld [vmem:[%s8213_s30 + $0x318] sm:$0xff] }
 0xe42   :  { %2589 = vmatpush.msra.mxu0 %v7056_v45  ;;  %v7101_v45 = vld [vmem:[%s8213_s30 + $0x108] sm:$0xff]  ;;  %8251 = vst [vmem:[#allocation72_spill] sm:$0xff] %v7146_v27 }
 0xe43   :  { %2609 = vmatpush.msra.mxu3 %v7085_v40  ;;  %2626 = vmatpush.msra.mxu1 %v7090_v9  ;;  %8245 = vst [vmem:[#allocation66_spill] sm:$0xff] %v7101_v45  ;;  %v7125_v9 = vld [vmem:[%s8213_s30 + $0x100] sm:$0xff] }
 0xe44   :  { %2590 = vmatpush.msra.mxu0 %v7080_v35  ;;  %2570 = vmatpush.msra.mxu2 %v7101_v45  ;;  %v7118_v35 = vld [vmem:[%s8213_s30 + $0x2a0] sm:$0xff]  ;;  %8248 = vst [vmem:[#allocation69_spill] sm:$0xff] %v7125_v9 }
 0xe45   :  { %8247 = vst [vmem:[#allocation68_spill] sm:$0xff] %v7118_v35  ;;  %2610 = vmatpush.msra.mxu3 %v7111_v23  ;;  %2627 = vmatpush.msra.mxu1 %v7118_v35  ;;  %v7130_v45 = vld [vmem:[%s8213_s30 + $0x200] sm:$0xff]  ;;  %v7141_v35 = vld [vmem:[%s8213_s30 + $0x290] sm:$0xff] }
 0xe46   :  { %2591 = vmatpush.msra.mxu0 %v7106_v52  ;;  %v7135_v52 = vld [vmem:[%s8213_s30 + $0x298] sm:$0xff]  ;;  %2571 = vmatpush.msra.mxu2 %v7125_v9  ;;  %8250 = vst [vmem:[#allocation71_spill] sm:$0xff] %v7141_v35  ;;  %v7160_v9 = vld [vmem:[%s8213_s30 + $0x280] sm:$0xff] }
 0xe47   :  { %8249 = vst [vmem:[#allocation70_spill] sm:$0xff] %v7135_v52  ;;  %2611 = vmatpush.msra.mxu3 %v7130_v45  ;;  %2628 = vmatpush.msra.mxu1 %v7135_v52  ;;  %v7166_v52 = vld [vmem:[%s8213_s30 + $0x310] sm:$0xff] }
 0xe48   :  { %2648 = vmatpush.msrb.mxu2 %v7146_v27  ;;  %8253 = vst [vmem:[#allocation74_spill] sm:$0xff] %v7166_v52  ;;  %v7179_v27 = vld [vmem:[%s8213_s30 + $0x300] sm:$0xff] }
 0xe49   :  { %2629 = vmatpush.msra.mxu1 %v7141_v35 }
 0xe4a   :  { %2649 = vmatpush.msrb.mxu2 %v7166_v52 }
 0xe4b   :  { %2630 = vmatpush.msra.mxu1 %v7153_v28 }
 0xe4c   :  { %2650 = vmatpush.msrb.mxu2 %v7171_v25 }
 0xe4d   :  { %2631 = vmatpush.msra.mxu1 %v7160_v9 }
 0xe4e   :  { %2651 = vmatpush.msrb.mxu2 %v7179_v27 }
 0xe8f   :  { %v7182_v28 = vpop.f32.mrf.mxu0 }
 0xe90   :  { %8255 = vst [vmem:[#allocation76_spill] sm:$0xff] %v7182_v28  ;;  %2532 = vmatmul.f32.vlgmr.msrb.gmra.mxu3 %v7182_v28  ;;  %v7190_v52 = vpop.f32.mrf.mxu1 }
 0xe95   :  { %v7185_v35 = vpop.f32.mrf.mxu2 }
 0xe96   :  { %v7187_v49 = vpop.f32.mrf.mxu3  ;;  %2552 = vmatmul.f32.vlgmr.msrb.gmra.mxu1 %v7185_v35 }
 0xe97   :  { %2592 = vmatmul.f32.vlgmr.msra.gmra.mxu0 %v7187_v49  ;;  %2817 = vmatpush.msrb.mxu1 %v6538_v29 }
 0xe98   :  { %v7194_v25 = vpop.f32.mrf.mxu0  ;;  %2612 = vmatmul.f32.vlgmr.msra.gmra.mxu3 %v7190_v52 }
 0xe99   :  { %2572 = vmatmul.f32.vlgmr.msra.gmra.mxu2 %v7194_v25  ;;  %2818 = vmatpush.msrb.mxu1 %v6543_v47  ;;  %v7239_v47 = vld [vmem:[%s8256_s26] sm:$0xff] }
 0xe9a   :  { %2675 = vmatpush.msrb.mxu0 %v7239_v47 }
 0xe9b   :  { %2819 = vmatpush.msrb.mxu1 %v6554_v33  ;;  %v7244_v33 = vld [vmem:[%s8256_s26 + $0x8] sm:$0xff] }
 0xe9c   :  { %2695 = vmatpush.msra.mxu2 %v7244_v33 }
 0xe9d   :  { %v7200_v28 = vpop.f32.mrf.mxu2  ;;  %2820 = vmatpush.msrb.mxu1 %v6571_v41  ;;  %v7249_v41 = vld [vmem:[%s8256_s26 + $0x20] sm:$0xff] }
 0xe9e   :  { %2632 = vmatmul.f32.vlgmr.msra.gmra.mxu1 %v7200_v28  ;;  %2755 = vmatpush.msrb.mxu3 %v7249_v41 }
 0xe9f   :  { %2821 = vmatpush.msrb.mxu1 %v6583_v44  ;;  %v7257_v44 = vld [vmem:[%s8256_s26 + $0x10] sm:$0xff] }
 0xea0   :  { %2837 = vmatpush.msra.mxu3 %v6549_v48  ;;  %2715 = vmatpush.msra.mxu0 %v7257_v44 }
 0xea1   :  { %2822 = vmatpush.msrb.mxu1 %v6603_v57  ;;  %v7262_v57 = vld [vmem:[%s8256_s26 + $0x18] sm:$0xff] }
 0xea2   :  { %2838 = vmatpush.msra.mxu3 %v6560_v34 }
 0xea3   :  { %2823 = vmatpush.msrb.mxu1 %v6630_v39 }
 0xea4   :  { %v7207_v29 = vpop.f32.mrf.mxu0  ;;  %2839 = vmatpush.msra.mxu3 %v6566_v38 }
 0xea5   :  { %4049 = vmatmul.msk.f32.vlgmr.msrb.gmra.mxu2 %vm430_vm0, %v7207_v29  ;;  %2824 = vmatpush.msrb.mxu1 %v6649_v63 }
 0xea6   :  { %2735 = vmatpush.msrb.mxu2 %v7262_v57  ;;  %2840 = vmatpush.msra.mxu3 %v6578_v42 }
 0xea7   :  { %2825 = vmatpush.msrb.mxu1 %v6673_v53 }
 0xea8   :  { %2841 = vmatpush.msra.mxu3 %v6590_v46 }
 0xea9   :  { %2826 = vmatpush.msrb.mxu1 %v6690_v54 }
 0xeaa   :  { %2842 = vmatpush.msra.mxu3 %v6613_v50 }
 0xeab   :  { %2827 = vmatpush.msrb.mxu1 %v6711_v17  ;;  %v7289_v17 = vld [vmem:[%s8256_s26 + $0x30] sm:$0xff] }
 0xeac   :  { %2843 = vmatpush.msra.mxu3 %v6636_v60 }
 0xead   :  { %2828 = vmatpush.msrb.mxu1 %v6732_v37  ;;  %v8259_v37 = vld [vmem:[#allocation50_spill] sm:$0xff] }
 0xeae   :  { %2844 = vmatpush.msra.mxu3 %v6657_v0 }
 0xeaf   :  { %2829 = vmatpush.msrb.mxu1 %v6753_v14  ;;  %v8264_v14 = vld [vmem:[#allocation52_spill] sm:$0xff] }
 0xeb0   :  { %2845 = vmatpush.msra.mxu3 %v6682_v36 }
 0xeb1   :  { %2830 = vmatpush.msrb.mxu1 %v6774_v19  ;;  %v8267_v19 = vld [vmem:[#allocation54_spill] sm:$0xff] }
 0xeb2   :  { %2846 = vmatpush.msra.mxu3 %v6706_v11  ;;  %v7284_v11 = vld [vmem:[%s8256_s26 + $0x28] sm:$0xff] }
 0xeb3   :  { %2831 = vmatpush.msrb.mxu1 %v6795_v30  ;;  %v8269_v30 = vld [vmem:[#allocation48_spill] sm:$0xff] }
 0xeb4   :  { %2847 = vmatpush.msra.mxu3 %v6726_v26  ;;  %v8258_v26 = vld [vmem:[#allocation43_spill] sm:$0xff] }
 0xeb5   :  { %2832 = vmatpush.msrb.mxu1 %v6813_v1  ;;  %v8272_v1 = vld [vmem:[#allocation49_spill] sm:$0xff] }
 0xeb6   :  { %2848 = vmatpush.msra.mxu3 %v6747_v13  ;;  %v8261_v13 = vld [vmem:[#allocation45_spill] sm:$0xff] }
 0xeb7   :  { %2897 = vmatpush.msra.mxu1 %v6832_v6  ;;  %v8275_v6 = vld [vmem:[#allocation51_spill] sm:$0xff] }
 0xeb8   :  { %2849 = vmatpush.msra.mxu3 %v6768_v18  ;;  %v8266_v18 = vld [vmem:[#allocation47_spill] sm:$0xff] }
 0xeb9   :  { %2898 = vmatpush.msra.mxu1 %v6855_v22  ;;  %v8278_v22 = vld [vmem:[#allocation53_spill] sm:$0xff] }
 0xeba   :  { %2850 = vmatpush.msra.mxu3 %v6789_v20  ;;  %v8268_v20 = vld [vmem:[#allocation39_spill] sm:$0xff] }
 0xebb   :  { %2899 = vmatpush.msra.mxu1 %v6878_v3  ;;  %v8281_v3 = vld [vmem:[#allocation55_spill] sm:$0xff] }
 0xebc   :  { %2851 = vmatpush.msra.mxu3 %v6807_v21  ;;  %v8271_v21 = vld [vmem:[#allocation40_spill] sm:$0xff] }
 0xebd   :  { %2900 = vmatpush.msra.mxu1 %v6897_v55  ;;  %v8284_v55 = vld [vmem:[#allocation56_spill] sm:$0xff] }
 0xebe   :  { %2852 = vmatpush.msra.mxu3 %v6839_v7  ;;  %v8276_v7 = vld [vmem:[#allocation65_spill] sm:$0xff] }
 0xebf   :  { %2901 = vmatpush.msra.mxu1 %v6916_v62  ;;  %v8287_v62 = vld [vmem:[#allocation58_spill] sm:$0xff] }
 0xec1   :  { %2902 = vmatpush.msra.mxu1 %v6934_v10  ;;  %v8290_v10 = vld [vmem:[#allocation61_spill] sm:$0xff] }
 0xec3   :  { %2903 = vmatpush.msra.mxu1 %v6952_v16  ;;  %v8292_v16 = vld [vmem:[#allocation64_spill] sm:$0xff] }
 0xec5   :  { %2904 = vmatpush.msra.mxu1 %v6970_v8  ;;  %v8277_v8 = vld [vmem:[#allocation42_spill] sm:$0xff] }
 0xec7   :  { %2905 = vmatpush.msra.mxu1 %v6988_v5  ;;  %v8289_v5 = vld [vmem:[#allocation63_spill] sm:$0xff] }
 0xec9   :  { %2906 = vmatpush.msra.mxu1 %v7006_v59  ;;  %v8286_v59 = vld [vmem:[#allocation60_spill] sm:$0xff] }
 0xecb   :  { %2907 = vmatpush.msra.mxu1 %v7019_v12  ;;  %v8260_v12 = vld [vmem:[#allocation36_spill] sm:$0xff] }
 0xecd   :  { %2908 = vmatpush.msra.mxu1 %v7039_v15  ;;  %v8265_v15 = vld [vmem:[#allocation38_spill] sm:$0xff] }
 0xecf   :  { %2909 = vmatpush.msra.mxu1 %v7063_v2  ;;  %v8273_v2 = vld [vmem:[#allocation62_spill] sm:$0xff] }
 0xed1   :  { %2910 = vmatpush.msra.mxu1 %v7085_v40  ;;  %v8280_v40 = vld [vmem:[#allocation44_spill] sm:$0xff] }
 0xed3   :  { %2911 = vmatpush.msra.mxu1 %v7111_v23  ;;  %v8257_v23 = vld [vmem:[#allocation35_spill] sm:$0xff] }
 0xed5   :  { %2912 = vmatpush.msra.mxu1 %v7130_v45  ;;  %v8283_v45 = vld [vmem:[#allocation57_spill] sm:$0xff] }
 0xf13   :  { %v2533_v39 = vpop.f32.mrf.mxu3  ;;  %v2553_v63 = vpop.f32.mrf.mxu1 }
 0xf14   :  { %v2554_v48 = vadd.f32 %v2553_v63, %v2533_v39  ;;  %v2593_v34 = vpop.f32.mrf.mxu0  ;;  %v8293_v39 = vld [vmem:[#allocation69_spill] sm:$0xff]  ;;  %v8294_v63 = vld [vmem:[#allocation67_spill] sm:$0xff] }
 0xf1b   :  { %v2613_v42 = vpop.f32.mrf.mxu3  ;;  %v2633_v50 = vpop.f32.mrf.mxu1 }
 0xf1c   :  { %v2573_v53 = vpop.f32.mrf.mxu2 }
 0xf1d   :  { %v2574_v54 = vadd.f32 %v2573_v53, %v2554_v48  ;;  %v8295_v48 = vld [vmem:[#allocation72_spill] sm:$0xff]  ;;  %v8296_v53 = vld [vmem:[#allocation74_spill] sm:$0xff] }
 0xf1f   :  { %v2594_v38 = vadd.f32 %v2593_v34, %v2574_v54  ;;  %v8297_v54 = vld [vmem:[#allocation75_spill] sm:$0xff] }
 0xf21   :  { %v2614_v46 = vadd.f32 %v2613_v42, %v2594_v38 }
 0xf23   :  { %v2634_v60 = vadd.f32 %v2633_v50, %v2614_v46 }
 0xf28   :  { %v2653_v0 = vpop.f32.mrf.mxu2 }
 0xf29   :  { %v2654_v36 = vadd.f32 %v2653_v0, %v2634_v60 }
 0xf2b   :  { %4050 = vmatmul.msk.f32.vlgmr.msrb.gmra.mxu0 %vm2656_vm1, %v2654_v36  ;;  %4051 = vmatmul.msk.f32.vlgmr.msra.gmra.mxu2 %vm2656_vm1, %v2654_v36 }
 0xf2c   :  { %4054 = vmatmul.msk.f32.vlgmr.msrb.gmra.mxu3 %vm2656_vm1, %v2654_v36  ;;  %2775 = vmatpush.msrb.mxu0 %v7284_v11 }
 0xf2d   :  { %2795 = vmatpush.msra.mxu2 %v7289_v17  ;;  %2917 = vmatpush.msrb.mxu3 %v6863_v32  ;;  %v8279_v32 = vld [vmem:[#allocation68_spill] sm:$0xff] }
 0xf2f   :  { %2918 = vmatpush.msrb.mxu3 %v6887_v43  ;;  %v8282_v43 = vld [vmem:[#allocation70_spill] sm:$0xff] }
 0xf31   :  { %2919 = vmatpush.msrb.mxu3 %v6906_v56  ;;  %v8285_v56 = vld [vmem:[#allocation71_spill] sm:$0xff] }
 0xf33   :  { %4052 = vmatmul.msk.f32.vlgmr.msra.gmra.mxu0 %vm2656_vm1, %v2654_v36  ;;  %4053 = vmatmul.msk.f32.vlgmr.msrb.gmra.mxu2 %vm2656_vm1, %v2654_v36 }
 0xf34   :  { %2857 = vmatpush.msra.mxu0 %v6618_v58  ;;  %2877 = vmatpush.msrb.mxu2 %v6802_v31  ;;  %v8262_v58 = vld [vmem:[#allocation37_spill] sm:$0xff]  ;;  %v8270_v31 = vld [vmem:[#allocation59_spill] sm:$0xff] }
 0xf35   :  { %2920 = vmatpush.msrb.mxu3 %v6924_v51  ;;  %v8288_v51 = vld [vmem:[#allocation73_spill] sm:$0xff] }
 0xf36   :  { %2858 = vmatpush.msra.mxu0 %v6641_v61  ;;  %2878 = vmatpush.msrb.mxu2 %v6827_v4  ;;  %v8263_v61 = vld [vmem:[#allocation46_spill] sm:$0xff]  ;;  %v8274_v4 = vld [vmem:[#allocation41_spill] sm:$0xff] }
 0xf37   :  { %2921 = vmatpush.msrb.mxu3 %v6942_v24  ;;  %v8291_v24 = vld [vmem:[#allocation66_spill] sm:$0xff] }
 0xf38   :  { %2859 = vmatpush.msra.mxu0 %v8257_v23  ;;  %2879 = vmatpush.msrb.mxu2 %v8258_v26 }
 0xf39   :  { %2922 = vmatpush.msrb.mxu3 %v8259_v37 }
 0xf3a   :  { %2860 = vmatpush.msra.mxu0 %v8260_v12  ;;  %2880 = vmatpush.msrb.mxu2 %v8261_v13 }
 0xf3b   :  { %4055 = vmatmul.msk.f32.vlgmr.msrb.gmra.mxu0 %vm2656_vm1, %v2654_v36  ;;  %4056 = vmatmul.msk.f32.vlgmr.msra.gmra.mxu2 %vm2656_vm1, %v2654_v36 }
 0xf3c   :  { %2861 = vmatpush.msra.mxu0 %v8262_v58  ;;  %2881 = vmatpush.msrb.mxu2 %v8263_v61 }
 0xf3d   :  { %2923 = vmatpush.msrb.mxu3 %v8264_v14 }
 0xf3e   :  { %2862 = vmatpush.msra.mxu0 %v8265_v15  ;;  %2882 = vmatpush.msrb.mxu2 %v8266_v18 }
 0xf3f   :  { %2924 = vmatpush.msrb.mxu3 %v8267_v19 }
 0xf40   :  { %2863 = vmatpush.msra.mxu0 %v8268_v20  ;;  %2883 = vmatpush.msrb.mxu2 %v8269_v30 }
 0xf41   :  { %2925 = vmatpush.msrb.mxu3 %v8270_v31  ;;  %v3251_v31 = vld [vmem:[%s8299_s21 + $0xe0] sm:$0xff] }
 0xf42   :  { %2864 = vmatpush.msra.mxu0 %v8271_v21  ;;  %2884 = vmatpush.msrb.mxu2 %v8272_v1  ;;  %v3281_v1 = vld [vmem:[%s8299_s21 + $0x1d0] sm:$0xff] }
 0xf43   :  { %2926 = vmatpush.msrb.mxu3 %v8273_v2 }
 0xf44   :  { %2865 = vmatpush.msra.mxu0 %v8274_v4  ;;  %2885 = vmatpush.msrb.mxu2 %v8275_v6  ;;  %v3249_v4 = vld [vmem:[%s8299_s21 + $0xd0] sm:$0xff] }
 0xf45   :  { %2927 = vmatpush.msrb.mxu3 %v8276_v7  ;;  %v3279_v7 = vld [vmem:[%s8299_s21 + $0x1c0] sm:$0xff] }
 0xf46   :  { %2866 = vmatpush.msra.mxu0 %v8277_v8  ;;  %2886 = vmatpush.msrb.mxu2 %v8278_v22 }
 0xf47   :  { %2928 = vmatpush.msrb.mxu3 %v8279_v32  ;;  %v3277_v32 = vld [vmem:[%s8299_s21 + $0x1b0] sm:$0xff] }
 0xf48   :  { %2867 = vmatpush.msra.mxu0 %v8280_v40  ;;  %2887 = vmatpush.msrb.mxu2 %v8281_v3  ;;  %v3247_v40 = vld [vmem:[%s8299_s21 + $0xc0] sm:$0xff] }
 0xf49   :  { %2929 = vmatpush.msrb.mxu3 %v8282_v43  ;;  %v3275_v3 = vld [vmem:[%s8299_s21 + $0x1a0] sm:$0xff]  ;;  %v3245_v43 = vld [vmem:[%s8299_s21 + $0xb0] sm:$0xff] }
 0xf4a   :  { %2868 = vmatpush.msra.mxu0 %v8283_v45  ;;  %2888 = vmatpush.msrb.mxu2 %v8284_v55  ;;  %v3273_v45 = vld [vmem:[%s8299_s21 + $0x190] sm:$0xff] }
 0xf4b   :  { %2930 = vmatpush.msrb.mxu3 %v8285_v56  ;;  %v3241_v55 = vld [vmem:[%s8299_s21 + $0x90] sm:$0xff] }
 0xf4c   :  { %2869 = vmatpush.msra.mxu0 %v8286_v59  ;;  %2889 = vmatpush.msrb.mxu2 %v8287_v62  ;;  %v3269_v56 = vld [vmem:[%s8299_s21 + $0x170] sm:$0xff]  ;;  %v3239_v59 = vld [vmem:[%s8299_s21 + $0x80] sm:$0xff] }
 0xf4d   :  { %2931 = vmatpush.msrb.mxu3 %v8288_v51  ;;  %v3267_v62 = vld [vmem:[%s8299_s21 + $0x160] sm:$0xff]  ;;  %v3237_v51 = vld [vmem:[%s8299_s21 + $0x70] sm:$0xff] }
 0xf4e   :  { %2870 = vmatpush.msra.mxu0 %v8289_v5  ;;  %2890 = vmatpush.msrb.mxu2 %v8290_v10  ;;  %v3349_v5 = vld [vmem:[%s8299_s21 + $0x3f0] sm:$0xff]  ;;  %v3263_v10 = vld [vmem:[%s8299_s21 + $0x140] sm:$0xff] }
 0xf4f   :  { %2932 = vmatpush.msrb.mxu3 %v7160_v9  ;;  %v8298_v9 = vld [vmem:[#allocation76_spill] sm:$0xff] }
 0xf50   :  { %2871 = vmatpush.msra.mxu0 %v8291_v24  ;;  %2891 = vmatpush.msrb.mxu2 %v8292_v16  ;;  %v3235_v24 = vld [vmem:[%s8299_s21 + $0x60] sm:$0xff] }
 0xf51   :  { %v3347_v16 = vld [vmem:[%s8299_s21 + $0x3e0] sm:$0xff] }
 0xf52   :  { %2872 = vmatpush.msra.mxu0 %v8293_v39  ;;  %2892 = vmatpush.msrb.mxu2 %v8294_v63  ;;  %v3261_v39 = vld [vmem:[%s8299_s21 + $0x130] sm:$0xff] }
 0xf53   :  { %v3233_v63 = vld [vmem:[%s8299_s21 + $0x50] sm:$0xff] }
 0xf54   :  { %2949 = vmatpush.msrb.mxu0 %v8295_v48  ;;  %2975 = vmatpush.msra.mxu2 %v7239_v47  ;;  %v3345_v48 = vld [vmem:[%s8299_s21 + $0x3d0] sm:$0xff] }
 0xf56   :  { %2950 = vmatpush.msrb.mxu0 %v8296_v53  ;;  %v3259_v53 = vld [vmem:[%s8299_s21 + $0x120] sm:$0xff] }
 0xf58   :  { %2951 = vmatpush.msrb.mxu0 %v8297_v54  ;;  %v3231_v54 = vld [vmem:[%s8299_s21 + $0x40] sm:$0xff] }
 0xf5a   :  { %2952 = vmatpush.msrb.mxu0 %v7179_v27 }
 0xfa8   :  { %v2677_v34 = vpop.f32.mrf.mxu0 }
 0xfa9   :  { %v7355_v38 = vsub.f32 %v8298_v9, %v2677_v34  ;;  %v3343_v34 = vld [vmem:[%s8299_s21 + $0x3c0] sm:$0xff]  ;;  %v3257_v9 = vld [vmem:[%s8299_s21 + $0x110] sm:$0xff] }
 0xfab   :  { %v2807_v42 = vmul.f32 %v7355_v38, %v7355_v38 }
 0xfad   :  { %2833 = vmatmul.f32.vlgmr.msrb.gmra.mxu1 %v2807_v42  ;;  %v3229_v42 = vld [vmem:[%s8299_s21 + $0x30] sm:$0xff] }
 0xfae   :  { %v2697_v46 = vpop.f32.mrf.mxu2 }
 0xfaf   :  { %v7360_v50 = vsub.f32 %v7185_v35, %v2697_v46  ;;  %v2757_v60 = vpop.f32.mrf.mxu3  ;;  %v3341_v46 = vld [vmem:[%s8299_s21 + $0x3b0] sm:$0xff] }
 0xfb0   :  { %v7363_v47 = vsub.f32 %v7190_v52, %v2757_v60  ;;  %v2717_v0 = vpop.f32.mrf.mxu0  ;;  %v3255_v60 = vld [vmem:[%s8299_s21 + $0x100] sm:$0xff] }
 0xfb1   :  { %v2808_v27 = vmul.f32 %v7360_v50, %v7360_v50  ;;  %v7368_v36 = vsub.f32 %v7194_v25, %v2717_v0  ;;  %v3413_v0 = vld [vmem:[%s8299_s21 + $0x5f0] sm:$0xff] }
 0xfb2   :  { %v2811_v23 = vmul.f32 %v7363_v47, %v7363_v47 }
 0xfb3   :  { %v2809_v26 = vmul.f32 %v7368_v36, %v7368_v36  ;;  %2853 = vmatmul.f32.vlgmr.msra.gmra.mxu3 %v2808_v27  ;;  %v3227_v27 = vld [vmem:[%s8299_s21 + $0x20] sm:$0xff] }
 0xfb5   :  { %2873 = vmatmul.f32.vlgmr.msra.gmra.mxu0 %v2809_v26  ;;  %2913 = vmatmul.f32.vlgmr.msra.gmra.mxu1 %v2811_v23  ;;  %v3339_v23 = vld [vmem:[%s8299_s21 + $0x3a0] sm:$0xff] }
 0xfb6   :  { %v2737_v35 = vpop.f32.mrf.mxu2  ;;  %2995 = vmatpush.msra.mxu0 %v7244_v33  ;;  %v3411_v26 = vld [vmem:[%s8299_s21 + $0x5e0] sm:$0xff] }
 0xfb7   :  { %v7376_v52 = vsub.f32 %v7187_v49, %v2737_v35  ;;  %v3225_v35 = vld [vmem:[%s8299_s21 + $0x10] sm:$0xff] }
 0xfb8   :  { %v2777_v37 = vpop.f32.mrf.mxu0 }
 0xfb9   :  { %v2810_v25 = vmul.f32 %v7376_v52, %v7376_v52  ;;  %v7381_v12 = vsub.f32 %v7200_v28, %v2777_v37  ;;  %v3337_v37 = vld [vmem:[%s8299_s21 + $0x390] sm:$0xff] }
 0xfbb   :  { %v2812_v13 = vmul.f32 %v7381_v12, %v7381_v12  ;;  %2893 = vmatmul.f32.vlgmr.msrb.gmra.mxu2 %v2810_v25  ;;  %v3335_v25 = vld [vmem:[%s8299_s21 + $0x380] sm:$0xff] }
 0xfbc   :  { %3015 = vmatpush.msrb.mxu2 %v7257_v44  ;;  %v3285_v44 = vld [vmem:[%s8299_s21 + $0x1f0] sm:$0xff] }
 0xfbd   :  { %2933 = vmatmul.f32.vlgmr.msrb.gmra.mxu3 %v2812_v13  ;;  %v3333_v13 = vld [vmem:[%s8299_s21 + $0x370] sm:$0xff] }
 0xfbe   :  { %v2797_v58 = vpop.f32.mrf.mxu2  ;;  %3452 = vmatpush.msra.mxu3 %v3285_v44  ;;  %v3407_v44 = vld [vmem:[%s8299_s21 + $0x5c0] sm:$0xff] }
 0xfbf   :  { %v7387_v33 = vsub.f32 %v7207_v29, %v2797_v58  ;;  %v3283_v29 = vld [vmem:[%s8299_s21 + $0x1e0] sm:$0xff] }
 0xfc0   :  { %3453 = vmatpush.msra.mxu3 %v3283_v29  ;;  %v3331_v58 = vld [vmem:[%s8299_s21 + $0x360] sm:$0xff]  ;;  %v3317_v29 = vld [vmem:[%s8299_s21 + $0x2f0] sm:$0xff] }
 0xfc1   :  { %v2813_v49 = vmul.f32 %v7387_v33, %v7387_v33 }
 0xfc2   :  { %3454 = vmatpush.msra.mxu3 %v3281_v1  ;;  %v3315_v1 = vld [vmem:[%s8299_s21 + $0x2e0] sm:$0xff] }
 0xfc3   :  { %4057 = vmatmul.msk.f32.vlgmr.msrb.gmra.mxu0 %vm430_vm0, %v2813_v49  ;;  %v3329_v49 = vld [vmem:[%s8299_s21 + $0x350] sm:$0xff] }
 0xfc4   :  { %3035 = vmatpush.msrb.mxu0 %v7262_v57  ;;  %v3253_v57 = vld [vmem:[%s8299_s21 + $0xf0] sm:$0xff]  ;;  %3455 = vmatpush.msra.mxu3 %v3279_v7 }
 0xfc5   :  { %3432 = vmatpush.msrb.mxu1 %v3253_v57  ;;  %v3379_v57 = vld [vmem:[%s8299_s21 + $0x4e0] sm:$0xff]  ;;  %v3313_v7 = vld [vmem:[%s8299_s21 + $0x2d0] sm:$0xff] }
 0xfc6   :  { %3456 = vmatpush.msra.mxu3 %v3277_v32  ;;  %v3250_v32 = vld [vmem:[%s8299_s21 + $0xd8] sm:$0xff] }
 0xfc7   :  { %3433 = vmatpush.msrb.mxu1 %v3251_v31  ;;  %v3405_v31 = vld [vmem:[%s8299_s21 + $0x5b0] sm:$0xff] }
 0xfc8   :  { %3457 = vmatpush.msra.mxu3 %v3275_v3  ;;  %v3373_v3 = vld [vmem:[%s8299_s21 + $0x4b0] sm:$0xff] }
 0xfc9   :  { %3434 = vmatpush.msrb.mxu1 %v3249_v4  ;;  %v3403_v4 = vld [vmem:[%s8299_s21 + $0x5a0] sm:$0xff] }
 0xfca   :  { %3458 = vmatpush.msra.mxu3 %v3273_v45  ;;  %v3248_v45 = vld [vmem:[%s8299_s21 + $0xc8] sm:$0xff] }
 0xfcb   :  { %3435 = vmatpush.msrb.mxu1 %v3247_v40  ;;  %v3311_v40 = vld [vmem:[%s8299_s21 + $0x2c0] sm:$0xff] }
 0xfcd   :  { %3436 = vmatpush.msrb.mxu1 %v3245_v43  ;;  %v3399_v43 = vld [vmem:[%s8299_s21 + $0x580] sm:$0xff] }
0x102a   :  { %v2834_v28 = vpop.f32.mrf.mxu1 }
0x1032   :  { %v2874_v15 = vpop.f32.mrf.mxu0  ;;  %v2914_v30 = vpop.f32.mrf.mxu1 }
0x1036   :  { %v2854_v61 = vpop.f32.mrf.mxu3 }
0x1037   :  { %v2855_v14 = vadd.f32 %v2854_v61, %v2834_v28  ;;  %v3327_v28 = vld [vmem:[%s8299_s21 + $0x340] sm:$0xff]  ;;  %v3325_v61 = vld [vmem:[%s8299_s21 + $0x330] sm:$0xff] }
0x1039   :  { %v2875_v18 = vadd.f32 %v2874_v15, %v2855_v14  ;;  %v3323_v14 = vld [vmem:[%s8299_s21 + $0x320] sm:$0xff]  ;;  %v3409_v15 = vld [vmem:[%s8299_s21 + $0x5d0] sm:$0xff] }
0x103e   :  { %v2894_v19 = vpop.f32.mrf.mxu2 }
0x103f   :  { %v2895_v20 = vadd.f32 %v2894_v19, %v2875_v18  ;;  %v3223_v18 = vld [vmem:[%s8299_s21] sm:$0xff]  ;;  %v3321_v19 = vld [vmem:[%s8299_s21 + $0x310] sm:$0xff] }
0x1040   :  { %v2934_v2 = vpop.f32.mrf.mxu3  ;;  %v2954_v8 = vpop.f32.mrf.mxu0 }
0x1041   :  { %v2915_v21 = vadd.f32 %v2914_v30, %v2895_v20  ;;  %v3381_v20 = vld [vmem:[%s8299_s21 + $0x4f0] sm:$0xff]  ;;  %v3319_v30 = vld [vmem:[%s8299_s21 + $0x300] sm:$0xff] }
0x1043   :  { %v2935_v6 = vadd.f32 %v2934_v2, %v2915_v21  ;;  %v3254_v21 = vld [vmem:[%s8299_s21 + $0xf8] sm:$0xff]  ;;  %v3377_v2 = vld [vmem:[%s8299_s21 + $0x4d0] sm:$0xff] }
0x1045   :  { %v7414_v22 = vadd.f32 %v2954_v8, %v2935_v6  ;;  %v3252_v6 = vld [vmem:[%s8299_s21 + $0xe8] sm:$0xff]  ;;  %v3375_v8 = vld [vmem:[%s8299_s21 + $0x4c0] sm:$0xff] }
0x1047   :  { %4058 = vmatmul.msk.f32.vlgmr.msra.gmra.mxu2 %vm2656_vm1, %v7414_v22  ;;  %4059 = vmatmul.msk.f32.vlgmr.msra.gmra.mxu0 %vm2656_vm1, %v7414_v22 }
0x1048   :  { %3055 = vmatpush.msra.mxu2 %v7249_v41  ;;  %3075 = vmatpush.msra.mxu0 %v7284_v11  ;;  %v3243_v41 = vld [vmem:[%s8299_s21 + $0xa0] sm:$0xff] }
0x1049   :  { %v3271_v11 = vld [vmem:[%s8299_s21 + $0x180] sm:$0xff]  ;;  %3437 = vmatpush.msrb.mxu1 %v3243_v41  ;;  %v3309_v41 = vld [vmem:[%s8299_s21 + $0x2b0] sm:$0xff] }
0x104a   :  { %3459 = vmatpush.msra.mxu3 %v3271_v11  ;;  %v3371_v11 = vld [vmem:[%s8299_s21 + $0x4a0] sm:$0xff] }
0x104b   :  { %3438 = vmatpush.msrb.mxu1 %v3241_v55  ;;  %v3397_v55 = vld [vmem:[%s8299_s21 + $0x570] sm:$0xff] }
0x104c   :  { %3460 = vmatpush.msra.mxu3 %v3269_v56  ;;  %v3246_v56 = vld [vmem:[%s8299_s21 + $0xb8] sm:$0xff] }
0x104d   :  { %3439 = vmatpush.msrb.mxu1 %v3239_v59  ;;  %v3307_v59 = vld [vmem:[%s8299_s21 + $0x2a0] sm:$0xff] }
0x104e   :  { %3461 = vmatpush.msra.mxu3 %v3267_v62  ;;  %v3369_v62 = vld [vmem:[%s8299_s21 + $0x490] sm:$0xff] }
0x104f   :  { %4060 = vmatmul.msk.f32.vlgmr.msrb.gmra.mxu2 %vm2656_vm1, %v7414_v22  ;;  %4061 = vmatmul.msk.f32.vlgmr.msrb.gmra.mxu0 %vm2656_vm1, %v7414_v22 }
0x1050   :  { %3095 = vmatpush.msrb.mxu2 %v7289_v17  ;;  %v3265_v17 = vld [vmem:[%s8299_s21 + $0x150] sm:$0xff]  ;;  %3440 = vmatpush.msrb.mxu1 %v3237_v51  ;;  %v3395_v51 = vld [vmem:[%s8299_s21 + $0x560] sm:$0xff] }
0x1051   :  { %3462 = vmatpush.msra.mxu3 %v3265_v17  ;;  %3472 = vmatpush.msrb.mxu0 %v3317_v29  ;;  %v3244_v17 = vld [vmem:[%s8299_s21 + $0xa8] sm:$0xff]  ;;  %v3351_v29 = vld [vmem:[%s8299_s21 + $0x400] sm:$0xff] }
0x1052   :  { %3441 = vmatpush.msrb.mxu1 %v3235_v24  ;;  %v3393_v24 = vld [vmem:[%s8299_s21 + $0x550] sm:$0xff] }
0x1053   :  { %3463 = vmatpush.msra.mxu3 %v3263_v10  ;;  %3473 = vmatpush.msrb.mxu0 %v3315_v1  ;;  %v3367_v10 = vld [vmem:[%s8299_s21 + $0x480] sm:$0xff]  ;;  %v3224_v1 = vld [vmem:[%s8299_s21 + $0x8] sm:$0xff] }
0x1054   :  { %3442 = vmatpush.msrb.mxu1 %v3233_v63  ;;  %v3365_v63 = vld [vmem:[%s8299_s21 + $0x470] sm:$0xff] }
0x1055   :  { %3464 = vmatpush.msra.mxu3 %v3261_v39  ;;  %3474 = vmatpush.msrb.mxu0 %v3313_v7  ;;  %v3303_v39 = vld [vmem:[%s8299_s21 + $0x280] sm:$0xff]  ;;  %v3417_v7 = vld [vmem:[%s8299_s21 + $0x610] sm:$0xff] }
0x1056   :  { %3443 = vmatpush.msrb.mxu1 %v3231_v54  ;;  %v3301_v54 = vld [vmem:[%s8299_s21 + $0x270] sm:$0xff] }
0x1057   :  { %4062 = vmatmul.msk.f32.vlgmr.msra.gmra.mxu2 %vm2656_vm1, %v7414_v22  ;;  %4063 = vmatmul.msk.f32.vlgmr.msra.gmra.mxu0 %vm2656_vm1, %v7414_v22 }
0x1058   :  { %3492 = vmatpush.msra.mxu2 %v3349_v5  ;;  %3465 = vmatpush.msra.mxu3 %v3259_v53  ;;  %v3305_v5 = vld [vmem:[%s8299_s21 + $0x290] sm:$0xff]  ;;  %v3240_v53 = vld [vmem:[%s8299_s21 + $0x88] sm:$0xff] }
0x1059   :  { %3444 = vmatpush.msrb.mxu1 %v3229_v42  ;;  %3475 = vmatpush.msrb.mxu0 %v3311_v40  ;;  %v3238_v42 = vld [vmem:[%s8299_s21 + $0x78] sm:$0xff]  ;;  %v3415_v40 = vld [vmem:[%s8299_s21 + $0x600] sm:$0xff] }
0x105a   :  { %3493 = vmatpush.msra.mxu2 %v3347_v16  ;;  %3466 = vmatpush.msra.mxu3 %v3257_v9  ;;  %v3242_v16 = vld [vmem:[%s8299_s21 + $0x98] sm:$0xff]  ;;  %v3389_v9 = vld [vmem:[%s8299_s21 + $0x530] sm:$0xff] }
0x105b   :  { %3445 = vmatpush.msrb.mxu1 %v3227_v27  ;;  %3476 = vmatpush.msrb.mxu0 %v3309_v41  ;;  %v3236_v27 = vld [vmem:[%s8299_s21 + $0x68] sm:$0xff] }
0x105c   :  { %3494 = vmatpush.msra.mxu2 %v3345_v48  ;;  %3467 = vmatpush.msra.mxu3 %v3255_v60  ;;  %v3391_v48 = vld [vmem:[%s8299_s21 + $0x540] sm:$0xff]  ;;  %v3361_v60 = vld [vmem:[%s8299_s21 + $0x450] sm:$0xff] }
0x105d   :  { %3446 = vmatpush.msrb.mxu1 %v3225_v35  ;;  %3477 = vmatpush.msrb.mxu0 %v3307_v59  ;;  %v3385_v35 = vld [vmem:[%s8299_s21 + $0x510] sm:$0xff] }
0x105e   :  { %3495 = vmatpush.msra.mxu2 %v3343_v34  ;;  %3532 = vmatpush.msrb.mxu3 %v3413_v0  ;;  %v3363_v34 = vld [vmem:[%s8299_s21 + $0x460] sm:$0xff] }
0x105f   :  { %4064 = vmatmul.msk.f32.vlgmr.msrb.gmra.mxu2 %vm2656_vm1, %v7414_v22  ;;  %3447 = vmatpush.msrb.mxu1 %v3223_v18  ;;  %v3401_v22 = vld [vmem:[%s8299_s21 + $0x590] sm:$0xff]  ;;  %v3387_v0 = vld [vmem:[%s8299_s21 + $0x520] sm:$0xff] }
0x1060   :  { %3496 = vmatpush.msra.mxu2 %v3341_v46  ;;  %3533 = vmatpush.msrb.mxu3 %v3411_v26  ;;  %v3299_v46 = vld [vmem:[%s8299_s21 + $0x260] sm:$0xff]  ;;  %v3353_v18 = vld [vmem:[%s8299_s21 + $0x410] sm:$0xff] }
0x1061   :  { %3512 = vmatpush.msra.mxu1 %v3381_v20  ;;  %3478 = vmatpush.msrb.mxu0 %v3305_v5  ;;  %v3359_v26 = vld [vmem:[%s8299_s21 + $0x440] sm:$0xff]  ;;  %v3289_v20 = vld [vmem:[%s8299_s21 + $0x210] sm:$0xff] }
0x1062   :  { %3497 = vmatpush.msra.mxu2 %v3339_v23  ;;  %3534 = vmatpush.msrb.mxu3 %v3409_v15  ;;  %v3297_v23 = vld [vmem:[%s8299_s21 + $0x250] sm:$0xff]  ;;  %v3291_v15 = vld [vmem:[%s8299_s21 + $0x220] sm:$0xff] }
0x1063   :  { %3513 = vmatpush.msra.mxu1 %v3379_v57  ;;  %3479 = vmatpush.msrb.mxu0 %v3303_v39  ;;  %v7770_v39 = vld [vmem:[#allocation8] sm:$0x7f] }
0x1064   :  { %3498 = vmatpush.msra.mxu2 %v3337_v37  ;;  %3535 = vmatpush.msrb.mxu3 %v3407_v44  ;;  %v3234_v37 = vld [vmem:[%s8299_s21 + $0x58] sm:$0xff] }
0x1065   :  { %3514 = vmatpush.msra.mxu1 %v3377_v2  ;;  %3480 = vmatpush.msrb.mxu0 %v3301_v54  ;;  %v3419_v2 = vld [vmem:[%s8299_s21 + $0x620] sm:$0xff] }
0x1066   :  { %3499 = vmatpush.msra.mxu2 %v3335_v25  ;;  %3536 = vmatpush.msrb.mxu3 %v3405_v31  ;;  %v3295_v25 = vld [vmem:[%s8299_s21 + $0x240] sm:$0xff] }
0x1067   :  { %3515 = vmatpush.msra.mxu1 %v3375_v8  ;;  %3481 = vmatpush.msrb.mxu0 %v3299_v46  ;;  %v3287_v31 = vld [vmem:[%s8299_s21 + $0x200] sm:$0xff] }
0x1068   :  { %3500 = vmatpush.msra.mxu2 %v3333_v13  ;;  %3537 = vmatpush.msrb.mxu3 %v3403_v4  ;;  %v3357_v13 = vld [vmem:[%s8299_s21 + $0x430] sm:$0xff] }
0x1069   :  { %3516 = vmatpush.msra.mxu1 %v3373_v3  ;;  %3482 = vmatpush.msrb.mxu0 %v3297_v23 }
0x106a   :  { %3501 = vmatpush.msra.mxu2 %v3331_v58  ;;  %3538 = vmatpush.msrb.mxu3 %v3401_v22  ;;  %v3383_v58 = vld [vmem:[%s8299_s21 + $0x500] sm:$0xff] }
0x106b   :  { %3517 = vmatpush.msra.mxu1 %v3371_v11  ;;  %3483 = vmatpush.msrb.mxu0 %v3295_v25 }
0x106c   :  { %3502 = vmatpush.msra.mxu2 %v3329_v49  ;;  %3539 = vmatpush.msrb.mxu3 %v3399_v43  ;;  %v3232_v49 = vld [vmem:[%s8299_s21 + $0x48] sm:$0xff] }
0x106d   :  { %3518 = vmatpush.msra.mxu1 %v3369_v62  ;;  %v7765_v62 = vld [vmem:[%s8300_s20] sm:$0x7f] }
0x106e   :  { %3503 = vmatpush.msra.mxu2 %v3327_v28  ;;  %3540 = vmatpush.msrb.mxu3 %v3397_v55  ;;  %v3293_v28 = vld [vmem:[%s8299_s21 + $0x230] sm:$0xff] }
0x106f   :  { %3519 = vmatpush.msra.mxu1 %v3367_v10  ;;  %3484 = vmatpush.msrb.mxu0 %v3293_v28 }
0x1070   :  { %3504 = vmatpush.msra.mxu2 %v3325_v61  ;;  %3541 = vmatpush.msrb.mxu3 %v3395_v51  ;;  %v3355_v61 = vld [vmem:[%s8299_s21 + $0x420] sm:$0xff] }
0x1071   :  { %3520 = vmatpush.msra.mxu1 %v3365_v63  ;;  %3485 = vmatpush.msrb.mxu0 %v3291_v15  ;;  %v3180_v63 = vperm.slane %v7765_v62, 1 }
0x1072   :  { %3505 = vmatpush.msra.mxu2 %v3323_v14  ;;  %3542 = vmatpush.msrb.mxu3 %v3393_v24  ;;  %v3230_v14 = vld [vmem:[%s8299_s21 + $0x38] sm:$0xff] }
0x1073   :  { %3521 = vmatpush.msra.mxu1 %v3363_v34  ;;  %3486 = vmatpush.msrb.mxu0 %v3289_v20  ;;  %v3202_v20 = vperm.slane %v7770_v39, 0 }
0x1074   :  { %3506 = vmatpush.msra.mxu2 %v3321_v19  ;;  %3543 = vmatpush.msrb.mxu3 %v3391_v48  ;;  %v3228_v19 = vld [vmem:[%s8299_s21 + $0x28] sm:$0xff] }
0x1075   :  { %3522 = vmatpush.msra.mxu1 %v3361_v60  ;;  %3487 = vmatpush.msrb.mxu0 %v3287_v31 }
0x1076   :  { %3507 = vmatpush.msra.mxu2 %v3319_v30  ;;  %3544 = vmatpush.msrb.mxu3 %v3389_v9  ;;  %v3226_v30 = vld [vmem:[%s8299_s21 + $0x18] sm:$0xff]  ;;  %v3203_v9 = vperm.slane %v7770_v39, 1 }
0x1077   :  { %3523 = vmatpush.msra.mxu1 %v3359_v26 }
0x1078   :  { %3572 = vmatpush.msrb.mxu2 %v3254_v21  ;;  %3545 = vmatpush.msrb.mxu3 %v3387_v0  ;;  %v3421_v21 = vld [vmem:[%s8299_s21 + $0x630] sm:$0xff] }
0x1079   :  { %3524 = vmatpush.msra.mxu1 %v3357_v13  ;;  %3564 = vmatpush.msra.mxu0 %v3421_v21  ;;  %v3350_v13 = vld [vmem:[%s8299_s21 + $0x3f8] sm:$0xff]  ;;  %v3205_v21 = vperm.slane %v7770_v39, 3 }
0x107a   :  { %3573 = vmatpush.msrb.mxu2 %v3252_v6  ;;  %3546 = vmatpush.msrb.mxu3 %v3385_v35 }
0x107b   :  { %3525 = vmatpush.msra.mxu1 %v3355_v61  ;;  %3565 = vmatpush.msra.mxu0 %v3419_v2 }
0x107c   :  { %3574 = vmatpush.msrb.mxu2 %v3250_v32  ;;  %3547 = vmatpush.msrb.mxu3 %v3383_v58  ;;  %v3179_v58 = vperm.slane %v7765_v62, 0 }
0x107d   :  { %3526 = vmatpush.msra.mxu1 %v3353_v18  ;;  %3566 = vmatpush.msra.mxu0 %v3417_v7  ;;  %v3182_v18 = vperm.slane %v7765_v62, 3 }
0x107e   :  { %3575 = vmatpush.msrb.mxu2 %v3248_v45 }
0x107f   :  { %3527 = vmatpush.msra.mxu1 %v3351_v29  ;;  %3567 = vmatpush.msra.mxu0 %v3415_v40 }
0x1080   :  { %3576 = vmatpush.msrb.mxu2 %v3246_v56 }
0x1082   :  { %3577 = vmatpush.msrb.mxu2 %v3244_v17 }
0x1084   :  { %3578 = vmatpush.msrb.mxu2 %v3242_v16 }
0x1086   :  { %3579 = vmatpush.msrb.mxu2 %v3240_v53 }
0x1088   :  { %3580 = vmatpush.msrb.mxu2 %v3238_v42 }
0x108a   :  { %3581 = vmatpush.msrb.mxu2 %v3236_v27 }
0x108c   :  { %3582 = vmatpush.msrb.mxu2 %v3234_v37 }
0x108e   :  { %3583 = vmatpush.msrb.mxu2 %v3232_v49 }
0x1090   :  { %3584 = vmatpush.msrb.mxu2 %v3230_v14 }
0x1092   :  { %3585 = vmatpush.msrb.mxu2 %v3228_v19  ;;  %v3348_v19 = vld [vmem:[%s8299_s21 + $0x3e8] sm:$0xff] }
0x1094   :  { %3586 = vmatpush.msrb.mxu2 %v3226_v30 }
0x1096   :  { %3587 = vmatpush.msrb.mxu2 %v3224_v1 }
0x10c4   :  { %v2997_v44 = vpop.f32.mrf.mxu0 }
0x10c5   :  { %v2998_v57 = vadd.f32 1e-05, %v2997_v44 }
0x10c7   :  { %4116 = vrsqrt.f32 %v2998_v57  ;;  %vm3116_vm11 = vweird.f32 %v2998_v57 }
0x10ca   :  { %v2977_v4 = vpop.f32.mrf.mxu2 }
0x10cb   :  { %v2978_v6 = vadd.f32 1e-05, %v2977_v4 }
0x10cc   :  { %v3037_v8 = vpop.f32.mrf.mxu0 }
0x10cd   :  { %v4117_v22 = vpop.eup %4116  ;;  %4118 = vrsqrt.f32 %v2978_v6  ;;  %v3038_v32 = vadd.f32 1e-05, %v3037_v8  ;;  %vm3106_vm14 = vweird.f32 %v2978_v6 }
0x10ce   :  { %v3111_v3 = vmul.f32 %v4117_v22, %v2998_v57  ;;  %vm3117_vm10 = vweird.f32 %v4117_v22 }
0x10cf   :  { %4120 = vrsqrt.f32 %v3038_v32  ;;  %vm3118_vm12 = vmor %vm3116_vm11, %vm3117_vm10  ;;  %vm3136_vm3 = vweird.f32 %v3038_v32 }
0x10d0   :  { %v3112_v43 = vmul.f32 %v4117_v22, %v3111_v3 }
0x10d2   :  { %v3113_v45 = vmul.f32 0.5, %v3112_v43  ;;  %v3017_v41 = vpop.f32.mrf.mxu2 }
0x10d3   :  { %v4119_v11 = vpop.eup %4118  ;;  %v7760_v55 = vadd.f32 1e-05, %v3017_v41 }
0x10d4   :  { %v3114_v56 = vsub.f32 1.5, %v3113_v45  ;;  %v3101_v59 = vmul.f32 %v4119_v11, %v2978_v6  ;;  %v3077_v51 = vpop.f32.mrf.mxu0  ;;  %vm3107_vm13 = vweird.f32 %v4119_v11  ;;  %v3181_v45 = vperm.slane %v7765_v62, 2 }
0x10d5   :  { %v4121_v17 = vpop.eup %4120  ;;  %4122 = vrsqrt.f32 %v7760_v55  ;;  %v7768_v5 = vadd.f32 1e-05, %v3077_v51  ;;  %vm3108_vm2 = vmor %vm3106_vm14, %vm3107_vm13  ;;  %vm3126_vm6 = vweird.f32 %v7760_v55 }
0x10d6   :  { %v3115_v10 = vmul.f32 %v4117_v22, %v3114_v56  ;;  %v3102_v24 = vmul.f32 %v4119_v11, %v3101_v59  ;;  %v3131_v16 = vmul.f32 %v4121_v17, %v3038_v32  ;;  %vm3137_vm15 = vweird.f32 %v4121_v17  ;;  %v3344_v32 = vld [vmem:[%s8299_s21 + $0x3c8] sm:$0xff] }
0x10d7   :  { %4124 = vrsqrt.f32 %v7768_v5  ;;  %vm3138_vm4 = vmor %vm3136_vm3, %vm3137_vm15  ;;  %vm3156_vm9 = vweird.f32 %v7768_v5 }
0x10d8   :  { %v3119_v48 = vsel %vm3118_vm12, %v4117_v22, %v3115_v10  ;;  %v3103_v53 = vmul.f32 0.5, %v3102_v24  ;;  %v3132_v54 = vmul.f32 %v4121_v17, %v3131_v16  ;;  %v3318_v22 = vld [vmem:[%s8299_s21 + $0x2f8] sm:$0xff]  ;;  %v3204_v16 = vperm.slane %v7770_v39, 2 }
0x10d9   :  { %v3171_v34 = vmul.f32 %v3119_v48, %v7360_v50  ;;  %v3314_v24 = vld [vmem:[%s8299_s21 + $0x2d8] sm:$0xff] }
0x10da   :  { %v3104_v42 = vsub.f32 1.5, %v3103_v53  ;;  %v3133_v46 = vmul.f32 0.5, %v3132_v54  ;;  %v3057_v60 = vpop.f32.mrf.mxu2  ;;  %v3380_v53 = vld [vmem:[%s8299_s21 + $0x4e8] sm:$0xff] }
0x10db   :  { %v7776_v0 = vpop.eup %4122  ;;  %v7778_v27 = vadd.f32 1e-05, %v3057_v60  ;;  %v3194_v23 = vmul.f32 %v3180_v63, %v3171_v34  ;;  %v3184_v63 = vperm.slane %v7765_v62, 5 }
0x10dc   :  { %v3105_v26 = vmul.f32 %v4119_v11, %v3104_v42  ;;  %v3134_v35 = vsub.f32 1.5, %v3133_v46  ;;  %v3121_v37 = vmul.f32 %v7776_v0, %v7760_v55  ;;  %vm3127_vm5 = vweird.f32 %v7776_v0  ;;  %v3342_v55 = vld [vmem:[%s8299_s21 + $0x3b8] sm:$0xff] }
0x10dd   :  { %v7782_v25 = vpop.eup %4124  ;;  %4126 = vrsqrt.f32 %v7778_v27  ;;  %v7785_v50 = vadd.f32 %v3203_v9, %v3194_v23  ;;  %vm3128_vm8 = vmor %vm3126_vm6, %vm3127_vm5  ;;  %v3312_v9 = vld [vmem:[%s8299_s21 + $0x2c8] sm:$0xff]  ;;  %v3338_v42 = vld [vmem:[%s8299_s21 + $0x398] sm:$0xff]  ;;  %v3207_v46 = vperm.slane %v7770_v39, 5  ;;  %vm3146_vm11 = vweird.f32 %v7778_v27 }
0x10de   :  { %v3109_v49 = vsel %vm3108_vm2, %v4119_v11, %v3105_v26  ;;  %v3135_v28 = vmul.f32 %v4121_v17, %v3134_v35  ;;  %v3122_v61 = vmul.f32 %v7776_v0, %v3121_v37  ;;  %v3151_v14 = vmul.f32 %v7782_v25, %v7768_v5  ;;  %v3316_v11 = vld [vmem:[%s8299_s21 + $0x2e8] sm:$0xff]  ;;  %v3286_v26 = vld [vmem:[%s8299_s21 + $0x1f8] sm:$0xff] }
0x10df   :  { %v3170_v15 = vmul.f32 %v3109_v49, %v7355_v38  ;;  %3468 = vmatmul.f32.vlgmr.msra.gmra.mxu3 %v7785_v50  ;;  %v3346_v38 = vld [vmem:[%s8299_s21 + $0x3d8] sm:$0xff]  ;;  %vm3157_vm7 = vweird.f32 %v7782_v25  ;;  %v3340_v5 = vld [vmem:[%s8299_s21 + $0x3a8] sm:$0xff] }
0x10e0   :  { %v3139_v44 = vsel %vm3138_vm4, %v4121_v17, %v3135_v28  ;;  %v3123_v29 = vmul.f32 0.5, %v3122_v61  ;;  %v3152_v30 = vmul.f32 %v7782_v25, %v3151_v14  ;;  %3632 = vmatpush.msra.mxu3 %v3350_v13  ;;  %v3382_v17 = vld [vmem:[%s8299_s21 + $0x4f8] sm:$0xff]  ;;  %vm3158_vm1 = vmor %vm3156_vm9, %vm3157_vm7  ;;  %v3376_v49 = vld [vmem:[%s8299_s21 + $0x4c8] sm:$0xff]  ;;  %v3183_v28 = vperm.slane %v7765_v62, 4 }
0x10e1   :  { %v3173_v57 = vmul.f32 %v3139_v44, %v7376_v52  ;;  %v3193_v31 = vmul.f32 %v3179_v58, %v3170_v15  ;;  %v3310_v35 = vld [vmem:[%s8299_s21 + $0x2b8] sm:$0xff]  ;;  %v3336_v58 = vld [vmem:[%s8299_s21 + $0x388] sm:$0xff] }
0x10e2   :  { %v3124_v1 = vsub.f32 1.5, %v3123_v29  ;;  %v3153_v2 = vmul.f32 0.5, %v3152_v30  ;;  %3633 = vmatpush.msra.mxu3 %v3348_v19  ;;  %v3097_v4 = vpop.f32.mrf.mxu2  ;;  %v3284_v15 = vld [vmem:[%s8299_s21 + $0x1e8] sm:$0xff]  ;;  %v3374_v44 = vld [vmem:[%s8299_s21 + $0x4b8] sm:$0xff]  ;;  %v3206_v29 = vperm.slane %v7770_v39, 4 }
0x10e3   :  { %v7808_v6 = vpop.eup %4126  ;;  %v3196_v7 = vmul.f32 %v3182_v18, %v3173_v57  ;;  %v7811_v8 = vadd.f32 1e-05, %v3097_v4  ;;  %v7813_v52 = vadd.f32 %v3202_v20, %v3193_v31  ;;  %v3308_v18 = vld [vmem:[%s8299_s21 + $0x2a8] sm:$0xff]  ;;  %v3334_v20 = vld [vmem:[%s8299_s21 + $0x378] sm:$0xff] }
0x10e4   :  { %v3125_v40 = vmul.f32 %v7776_v0, %v3124_v1  ;;  %v3154_v3 = vsub.f32 1.5, %v3153_v2  ;;  %v3141_v43 = vmul.f32 %v7808_v6, %v7778_v27  ;;  %3634 = vmatpush.msra.mxu3 %v3346_v38  ;;  %vm3147_vm10 = vweird.f32 %v7808_v6  ;;  %v3306_v57 = vld [vmem:[%s8299_s21 + $0x298] sm:$0xff]  ;;  %v3332_v38 = vld [vmem:[%s8299_s21 + $0x368] sm:$0xff] }
0x10e5   :  { %4128 = vrsqrt.f32 %v7811_v8  ;;  %3448 = vmatmul.f32.vlgmr.msrb.gmra.mxu1 %v7813_v52  ;;  %v7830_v41 = vadd.f32 %v3205_v21, %v3196_v7  ;;  %vm3148_vm12 = vmor %vm3146_vm11, %vm3147_vm10  ;;  %v3372_v31 = vld [vmem:[%s8299_s21 + $0x4a8] sm:$0xff]  ;;  %v3370_v7 = vld [vmem:[%s8299_s21 + $0x498] sm:$0xff]  ;;  %vm3166_vm14 = vweird.f32 %v7811_v8 }
0x10e6   :  { %v3129_v56 = vsel %vm3128_vm8, %v7776_v0, %v3125_v40  ;;  %v3155_v59 = vmul.f32 %v7782_v25, %v3154_v3  ;;  %v3142_v51 = vmul.f32 %v7808_v6, %v3141_v43  ;;  %3612 = vmatpush.msrb.mxu1 %v3318_v22  ;;  %3635 = vmatpush.msra.mxu3 %v3344_v32  ;;  %v3280_v2 = vld [vmem:[%s8299_s21 + $0x1c8] sm:$0xff]  ;;  %v3278_v32 = vld [vmem:[%s8299_s21 + $0x1b8] sm:$0xff]  ;;  %v3185_v40 = vperm.slane %v7765_v62, 6 }
0x10e7   :  { %v3172_v10 = vmul.f32 %v3129_v56, %v7368_v36  ;;  %3508 = vmatmul.f32.vlgmr.msra.gmra.mxu2 %v7830_v41  ;;  %v3304_v4 = vld [vmem:[%s8299_s21 + $0x288] sm:$0xff]  ;;  %v3302_v3 = vld [vmem:[%s8299_s21 + $0x278] sm:$0xff] }
0x10e8   :  { %v3159_v48 = vsel %vm3158_vm1, %v7782_v25, %v3155_v59  ;;  %v3143_v36 = vmul.f32 0.5, %v3142_v51  ;;  %3613 = vmatpush.msrb.mxu1 %v3316_v11  ;;  %3636 = vmatpush.msra.mxu3 %v3342_v55  ;;  %v3276_v62 = vld [vmem:[%s8299_s21 + $0x1a8] sm:$0xff]  ;;  %v3208_v55 = vperm.slane %v7770_v39, 6  ;;  %v3326_v59 = vld [vmem:[%s8299_s21 + $0x338] sm:$0xff] }
0x10e9   :  { %v3195_v54 = vmul.f32 %v3181_v45, %v3172_v10  ;;  %v3175_v34 = vmul.f32 %v3159_v48, %v7381_v12  ;;  %3652 = vmatpush.msra.mxu2 %v3382_v17  ;;  %v3378_v12 = vld [vmem:[%s8299_s21 + $0x4d8] sm:$0xff]  ;;  %v3368_v45 = vld [vmem:[%s8299_s21 + $0x488] sm:$0xff] }
0x10ea   :  { %v3144_v60 = vsub.f32 1.5, %v3143_v36  ;;  %3614 = vmatpush.msrb.mxu1 %v3314_v24  ;;  %3637 = vmatpush.msra.mxu3 %v3340_v5  ;;  %v3300_v56 = vld [vmem:[%s8299_s21 + $0x268] sm:$0xff]  ;;  %v3366_v51 = vld [vmem:[%s8299_s21 + $0x478] sm:$0xff] }
0x10eb   :  { %v7873_v0 = vpop.eup %4128  ;;  %3653 = vmatpush.msra.mxu2 %v3380_v53  ;;  %v7875_v23 = vadd.f32 %v3204_v16, %v3195_v54  ;;  %v3198_v37 = vmul.f32 %v3184_v63, %v3175_v34  ;;  %v3298_v17 = vld [vmem:[%s8299_s21 + $0x258] sm:$0xff]  ;;  %v3324_v10 = vld [vmem:[%s8299_s21 + $0x328] sm:$0xff] }
0x10ec   :  { %v3145_v25 = vmul.f32 %v7808_v6, %v3144_v60  ;;  %v3161_v13 = vmul.f32 %v7873_v0, %v7811_v8  ;;  %3615 = vmatpush.msrb.mxu1 %v3312_v9  ;;  %3638 = vmatpush.msra.mxu3 %v3338_v42  ;;  %vm3167_vm13 = vweird.f32 %v7873_v0  ;;  %v3328_v8 = vld [vmem:[%s8299_s21 + $0x348] sm:$0xff]  ;;  %v3322_v48 = vld [vmem:[%s8299_s21 + $0x318] sm:$0xff] }
0x10ed   :  { %3654 = vmatpush.msra.mxu2 %v3378_v12  ;;  %3488 = vmatmul.f32.vlgmr.msrb.gmra.mxu0 %v7875_v23  ;;  %v7896_v27 = vadd.f32 %v3207_v46, %v3198_v37  ;;  %vm3168_vm15 = vmor %vm3166_vm14, %vm3167_vm13  ;;  %v3364_v24 = vld [vmem:[%s8299_s21 + $0x468] sm:$0xff]  ;;  %v3362_v36 = vld [vmem:[%s8299_s21 + $0x458] sm:$0xff] }
0x10ee   :  { %v3149_v61 = vsel %vm3148_vm12, %v7808_v6, %v3145_v25  ;;  %v3162_v14 = vmul.f32 %v7873_v0, %v3161_v13  ;;  %3592 = vmatpush.msrb.mxu0 %v3286_v26  ;;  %3616 = vmatpush.msrb.mxu1 %v3310_v35  ;;  %v3330_v6 = vld [vmem:[%s8299_s21 + $0x358] sm:$0xff]  ;;  %v3272_v5 = vld [vmem:[%s8299_s21 + $0x188] sm:$0xff] }
0x10ef   :  { %v3174_v19 = vmul.f32 %v3149_v61, %v7363_v47  ;;  %3639 = vmatpush.msra.mxu3 %v3336_v58  ;;  %3655 = vmatpush.msra.mxu2 %v3376_v49  ;;  %v3282_v47 = vld [vmem:[%s8299_s21 + $0x1d8] sm:$0xff]  ;;  %v3296_v63 = vld [vmem:[%s8299_s21 + $0x248] sm:$0xff] }
0x10f0   :  { %v3163_v30 = vmul.f32 0.5, %v3162_v14  ;;  %3548 = vmatmul.f32.vlgmr.msrb.gmra.mxu3 %v7896_v27  ;;  %3588 = vmatmul.f32.vlgmr.msrb.gmra.mxu2 %v7813_v52  ;;  %v3270_v53 = vld [vmem:[%s8299_s21 + $0x178] sm:$0xff]  ;;  %v3320_v34 = vld [vmem:[%s8299_s21 + $0x308] sm:$0xff] }
0x10f1   :  { %3593 = vmatpush.msrb.mxu0 %v3284_v15  ;;  %3617 = vmatpush.msrb.mxu1 %v3308_v18  ;;  %v3197_v21 = vmul.f32 %v3183_v28, %v3174_v19  ;;  %v3294_v54 = vld [vmem:[%s8299_s21 + $0x238] sm:$0xff]  ;;  %v3360_v9 = vld [vmem:[%s8299_s21 + $0x448] sm:$0xff] }
0x10f2   :  { %v3164_v1 = vsub.f32 1.5, %v3163_v30  ;;  %3640 = vmatpush.msra.mxu3 %v3334_v20  ;;  %3656 = vmatpush.msra.mxu2 %v3374_v44  ;;  %v3268_v42 = vld [vmem:[%s8299_s21 + $0x168] sm:$0xff]  ;;  %v3358_v60 = vld [vmem:[%s8299_s21 + $0x438] sm:$0xff] }
0x10f3   :  { %3594 = vmatpush.msrb.mxu0 %v3282_v47  ;;  %3618 = vmatpush.msrb.mxu1 %v3306_v57  ;;  %v7942_v52 = vadd.f32 %v3206_v29, %v3197_v21  ;;  %v3292_v46 = vld [vmem:[%s8299_s21 + $0x228] sm:$0xff]  ;;  %v3266_v12 = vld [vmem:[%s8299_s21 + $0x158] sm:$0xff] }
0x10f4   :  { %v3165_v22 = vmul.f32 %v7873_v0, %v3164_v1  ;;  %3641 = vmatpush.msra.mxu3 %v3332_v38  ;;  %3657 = vmatpush.msra.mxu2 %v3372_v31  ;;  %v3356_v26 = vld [vmem:[%s8299_s21 + $0x428] sm:$0xff]  ;;  %v3354_v37 = vld [vmem:[%s8299_s21 + $0x418] sm:$0xff] }
0x10f5   :  { %3595 = vmatpush.msrb.mxu0 %v3280_v2  ;;  %3619 = vmatpush.msrb.mxu1 %v3304_v4  ;;  %v3264_v35 = vld [vmem:[%s8299_s21 + $0x148] sm:$0xff]  ;;  %v3262_v25 = vld [vmem:[%s8299_s21 + $0x138] sm:$0xff] }
0x10f6   :  { %v3169_v43 = vsel %vm3168_vm15, %v7873_v0, %v3165_v22  ;;  %3642 = vmatpush.msra.mxu3 %v3330_v6  ;;  %3658 = vmatpush.msra.mxu2 %v3370_v7  ;;  %v3290_v0 = vld [vmem:[%s8299_s21 + $0x218] sm:$0xff]  ;;  %v3352_v13 = vld [vmem:[%s8299_s21 + $0x408] sm:$0xff] }
0x10f7   :  { %v3176_v11 = vmul.f32 %v3169_v43, %v7387_v33  ;;  %3528 = vmatmul.f32.vlgmr.msra.gmra.mxu1 %v7942_v52  ;;  %3596 = vmatpush.msrb.mxu0 %v3278_v32  ;;  %v3274_v33 = vld [vmem:[%s8299_s21 + $0x198] sm:$0xff]  ;;  %v3260_v49 = vld [vmem:[%s8299_s21 + $0x128] sm:$0xff] }
0x10f8   :  { %3620 = vmatpush.msrb.mxu1 %v3302_v3  ;;  %3643 = vmatpush.msra.mxu3 %v3328_v8  ;;  %v3422_v58 = vld [vmem:[%s8299_s21 + $0x638] sm:$0xff]  ;;  %v3420_v28 = vld [vmem:[%s8299_s21 + $0x628] sm:$0xff] }
0x10f9   :  { %v3199_v39 = vmul.f32 %v3185_v40, %v3176_v11  ;;  %3659 = vmatpush.msra.mxu2 %v3368_v45  ;;  %3597 = vmatpush.msrb.mxu0 %v3276_v62  ;;  %v3258_v61 = vld [vmem:[%s8299_s21 + $0x118] sm:$0xff]  ;;  %v3416_v15 = vld [vmem:[%s8299_s21 + $0x608] sm:$0xff] }
0x10fa   :  { %3621 = vmatpush.msrb.mxu1 %v3300_v56  ;;  %3644 = vmatpush.msra.mxu3 %v3326_v59  ;;  %v3418_v14 = vld [vmem:[%s8299_s21 + $0x618] sm:$0xff]  ;;  %v3412_v19 = vld [vmem:[%s8299_s21 + $0x5e8] sm:$0xff] }
0x10fb   :  { %v7992_v16 = vadd.f32 %v3208_v55, %v3199_v39  ;;  %3660 = vmatpush.msra.mxu2 %v3366_v51  ;;  %3598 = vmatpush.msrb.mxu0 %v3274_v33  ;;  %v3414_v18 = vld [vmem:[%s8299_s21 + $0x5f8] sm:$0xff]  ;;  %v3408_v44 = vld [vmem:[%s8299_s21 + $0x5c8] sm:$0xff] }
0x10fc   :  { %3622 = vmatpush.msrb.mxu1 %v3298_v17  ;;  %3645 = vmatpush.msra.mxu3 %v3324_v10  ;;  %v3410_v20 = vld [vmem:[%s8299_s21 + $0x5d8] sm:$0xff]  ;;  %v3404_v29 = vld [vmem:[%s8299_s21 + $0x5a8] sm:$0xff] }
0x10fd   :  { %3661 = vmatpush.msra.mxu2 %v3364_v24  ;;  %3599 = vmatpush.msrb.mxu0 %v3272_v5  ;;  %v3402_v30 = vld [vmem:[%s8299_s21 + $0x598] sm:$0xff]  ;;  %v3400_v47 = vld [vmem:[%s8299_s21 + $0x588] sm:$0xff] }
0x10fe   :  { %3623 = vmatpush.msrb.mxu1 %v3296_v63  ;;  %3646 = vmatpush.msra.mxu3 %v3322_v48  ;;  %v3398_v57 = vld [vmem:[%s8299_s21 + $0x578] sm:$0xff]  ;;  %v3396_v38 = vld [vmem:[%s8299_s21 + $0x568] sm:$0xff] }
0x10ff   :  { %3662 = vmatpush.msra.mxu2 %v3362_v36  ;;  %4065 = vmatmul.msk.f32.vlgmr.msra.gmra.mxu0 %vm430_vm0, %v7992_v16  ;;  %v3394_v31 = vld [vmem:[%s8299_s21 + $0x558] sm:$0xff]  ;;  %v3392_v21 = vld [vmem:[%s8299_s21 + $0x548] sm:$0xff] }
0x1100   :  { %3600 = vmatpush.msrb.mxu0 %v3270_v53  ;;  %3624 = vmatpush.msrb.mxu1 %v3294_v54  ;;  %v3390_v1 = vld [vmem:[%s8299_s21 + $0x538] sm:$0xff]  ;;  %v3388_v2 = vld [vmem:[%s8299_s21 + $0x528] sm:$0xff] }
0x1101   :  { %3647 = vmatpush.msra.mxu3 %v3320_v34  ;;  %3663 = vmatpush.msra.mxu2 %v3360_v9  ;;  %v3386_v4 = vld [vmem:[%s8299_s21 + $0x518] sm:$0xff]  ;;  %v3384_v6 = vld [vmem:[%s8299_s21 + $0x508] sm:$0xff] }
0x1102   :  { %3648 = vmatmul.f32.vlgmr.msra.gmra.mxu3 %v7830_v41  ;;  %3601 = vmatpush.msrb.mxu0 %v3268_v42  ;;  %v3288_v41 = vld [vmem:[%s8299_s21 + $0x208] sm:$0xff]  ;;  %v3423_v3 = vld [vmem:[#allocation10] sm:$0x3] }
0x1103   :  { %3625 = vmatpush.msrb.mxu1 %v3292_v46  ;;  %3664 = vmatpush.msra.mxu2 %v3358_v60  ;;  %v3426_v8 = vperm.slane %v3423_v3, 1  ;;  %v3425_v62 = vperm.slane %v3423_v3, 0 }
0x1104   :  { %3602 = vmatpush.msrb.mxu0 %v3266_v12 }
0x1105   :  { %3626 = vmatpush.msrb.mxu1 %v3290_v0  ;;  %3665 = vmatpush.msra.mxu2 %v3356_v26 }
0x1106   :  { %3603 = vmatpush.msrb.mxu0 %v3264_v35 }
0x1107   :  { %3627 = vmatpush.msrb.mxu1 %v3288_v41  ;;  %3666 = vmatpush.msra.mxu2 %v3354_v37 }
0x1108   :  { %3628 = vmatmul.f32.vlgmr.msrb.gmra.mxu1 %v7875_v23  ;;  %3604 = vmatpush.msrb.mxu0 %v3262_v25  ;;  %v3256_v23 = vld [vmem:[%s8299_s21 + $0x108] sm:$0xff] }
0x1109   :  { %3667 = vmatpush.msra.mxu2 %v3352_v13  ;;  %3704 = vmatpush.msra.mxu1 %v3422_v58 }
0x110a   :  { %3668 = vmatmul.f32.vlgmr.msra.gmra.mxu2 %v7942_v52  ;;  %3605 = vmatpush.msrb.mxu0 %v3260_v49 }
0x110b   :  { %3705 = vmatpush.msra.mxu1 %v3420_v28 }
0x110c   :  { %3606 = vmatpush.msrb.mxu0 %v3258_v61 }
0x110d   :  { %3706 = vmatpush.msra.mxu1 %v3418_v14 }
0x110e   :  { %3607 = vmatpush.msrb.mxu0 %v3256_v23 }
0x110f   :  { %3707 = vmatpush.msra.mxu1 %v3416_v15  ;;  %3608 = vmatmul.f32.vlgmr.msrb.gmra.mxu0 %v7785_v50  ;;  %v3406_v50 = vld [vmem:[%s8299_s21 + $0x5b8] sm:$0xff]  ;;  %s4548_s21 = smov [#allocation25]  }
0x1110   :  { %3672 = vmatpush.msra.mxu0 %v3414_v18  ;;  %4066 = vmatmul.msk.f32.vlgmr.msra.gmra.mxu1 %vm430_vm0, %v7992_v16  ;;  %s3724_s27 = sshll.u32 %s4548_s21, 4  ;;  %vm3715_vm0 = vcmask 1041408   ;;  %s3725_s27 = int_to_ptr.vmem [resolvable:$true] %s3724_s27 }
0x1112   :  { %3673 = vmatpush.msra.mxu0 %v3412_v19 }
0x1114   :  { %3674 = vmatpush.msra.mxu0 %v3410_v20 }
0x1116   :  { %3675 = vmatpush.msra.mxu0 %v3408_v44 }
0x1118   :  { %3676 = vmatpush.msra.mxu0 %v3406_v50 }
0x111a   :  { %3677 = vmatpush.msra.mxu0 %v3404_v29 }
0x111c   :  { %3678 = vmatpush.msra.mxu0 %v3402_v30 }
0x111e   :  { %3679 = vmatpush.msra.mxu0 %v3400_v47 }
0x1120   :  { %3680 = vmatpush.msra.mxu0 %v3398_v57 }
0x1122   :  { %3681 = vmatpush.msra.mxu0 %v3396_v38 }
0x1124   :  { %3682 = vmatpush.msra.mxu0 %v3394_v31 }
0x1126   :  { %3683 = vmatpush.msra.mxu0 %v3392_v21 }
0x1128   :  { %3684 = vmatpush.msra.mxu0 %v3390_v1 }
0x112a   :  { %3685 = vmatpush.msra.mxu0 %v3388_v2 }
0x112c   :  { %3686 = vmatpush.msra.mxu0 %v3386_v4 }
0x112e   :  { %3687 = vmatpush.msra.mxu0 %v3384_v6 }
0x112f   :  { %3688 = vmatmul.f32.vlgmr.msra.gmra.mxu0 %v7896_v27 }
0x1162   :  { %v3449_v22 = vpop.f32.mrf.mxu1  ;;  %v3469_v40 = vpop.f32.mrf.mxu3 }
0x1163   :  { %v3450_v59 = vadd.f32 %v3449_v22, %v3425_v62 }
0x1165   :  { %v3470_v39 = vadd.f32 %v3469_v40, %v3450_v59 }
0x116a   :  { %v3489_v7 = vpop.f32.mrf.mxu0  ;;  %v3509_v52 = vpop.f32.mrf.mxu2 }
0x116b   :  { %v3490_v10 = vadd.f32 %v3489_v7, %v3470_v39 }
0x116d   :  { %v3510_v5 = vadd.f32 %v3509_v52, %v3490_v10 }
0x1173   :  { %v3589_v45 = vpop.f32.mrf.mxu2  ;;  %v3549_v56 = vpop.f32.mrf.mxu3 }
0x1174   :  { %v3529_v43 = vpop.f32.mrf.mxu1  ;;  %v3590_v55 = vadd.f32 %v3589_v45, %v3426_v8 }
0x1175   :  { %v3530_v63 = vadd.f32 %v3529_v43, %v3510_v5 }
0x1177   :  { %v3550_v34 = vadd.f32 %v3549_v56, %v3530_v63 }
0x117c   :  { %v3569_v32 = vpop.f32.mrf.mxu0 }
0x117d   :  { %v3570_v42 = vadd.f32 %v3569_v32, %v3550_v34 }
0x1185   :  { %v3629_v33 = vpop.f32.mrf.mxu1  ;;  %v3649_v27 = vpop.f32.mrf.mxu3 }
0x118c   :  { %v3609_v11 = vpop.f32.mrf.mxu0 }
0x118d   :  { %v3610_v51 = vadd.f32 %v3609_v11, %v3590_v55  ;;  %v3669_v16 = vpop.f32.mrf.mxu2  ;;  %v3709_v54 = vpop.f32.mrf.mxu1 }
0x118f   :  { %v3630_v17 = vadd.f32 %v3629_v33, %v3610_v51 }
0x1191   :  { %v3650_v24 = vadd.f32 %v3649_v27, %v3630_v17 }
0x1193   :  { %v3670_v48 = vadd.f32 %v3669_v16, %v3650_v24 }
0x11ac   :  { %v3689_v36 = vpop.f32.mrf.mxu0 }
0x11ad   :  { %v3690_v53 = vadd.f32 %v3689_v36, %v3670_v48 }
0x11af   :  { %v3710_v9 = vadd.f32 %v3709_v54, %v3690_v53 }
0x11b1   :  { %v3714_v46 = vrot.slane %v3710_v9, 6 }
0x11b3   :  { %v3716_v60 = vsel %vm3715_vm0, %v3570_v42, %v3714_v46 }
0x11b4   :  { %3718 = vst [vmem:[#allocation25] sm:$0xf] %v3716_v60 }
0x11b5   :  { %3729 = dma.vmem_to_hbm [thread:$0]  %s3725_s27, 64, %s3727_s15, [#allocation4]  }
0x11b6   :  { %4526 = dma.done.wait [#allocation4], 64  }
0x11b7   :  { %4527 = vsyncadd [#allocation4], 4294967232 }
0x11b8   :  { %3734 = vsyncpa [#allocation3], 1 }
0x11b9   :  { %3735 = vsyncpa [#allocation6], 1 }
0x11ba   :  { %3736 = vsyncpa [#allocation9], 1 }
0x11bb   :  { %3737 = vsyncpa [#allocation12], 1 }
0x11bc   :  { %3738 = vsyncpa [#allocation15], 1 }
0x11bd   :  { %3739 = vsyncpa [#allocation18], 1 }
0x11be   :  { %3740 = vsyncpa [#allocation21], 1 }
0x11bf   :  { %3741 = vsyncpa [#allocation24], 1 }
0x11c0   :  { %3742 = vsyncpa [#allocation4], 1 }

</bundles_post_ra>
